<compile_context>
chip_gen: v6e
topology: v6e:2x2x1
jax: 0.10.0
libtpu: 0.0.40
codegen_flags: <defaults>
</compile_context>

<pallas_src>
import functools
import math

import jax
import jax.numpy as jnp
from jax.experimental import pallas as pl
from jax.experimental.pallas import tpu as pltpu

# ----------------------------- model config ---------------------------------
B = 2                      # batch
C_IN = 3                   # RGB
IMG = 16                   # image height / width
PATCH = 8                  # patch size -> 2x2 = 4 patches
N_PATCH = (IMG // PATCH) ** 2
S_VIS = N_PATCH + 1        # + class token (= 5 real tokens)
S_PAD = 8                  # sublane-aligned padded vision sequence
D = 32                     # vision / text width
H = 2                      # attention heads
DH = D // H
MLP = 4 * D
EMBED = 32                 # shared CLIP embedding dim
E_PAD = 128                # lane-dense width for feature slabs
VOCAB = 64
S_TXT = 8                  # text context length
PATCH_DIM = C_IN * PATCH * PATCH   # 192

_NEG_INF = -1e30
EXACT_SOFTMAX_MAX_SUB = False   # True -> reference-style max-subtracted softmax


# ----------------------- slab packing (host side) ----------------------------
def _pack_slab(entries, dtype, lanes=128, row_align=8):
    """entries: list of (name, 2-D array). Returns (slab[rows,lanes], layout).

    layout[name] = (row_offset, n_rows, n_cols); all offsets are static ints.
    """
    layout = {}
    rows = []
    off = 0
    for name, arr in entries:
        arr = jnp.asarray(arr, jnp.float32)
        r, c = arr.shape
        assert c <= lanes, name
        layout[name] = (off, r, c)
        rows.append(jnp.pad(arr, ((0, 0), (0, lanes - c))))
        off += r
    pad = (-off) % row_align
    if pad:
        rows.append(jnp.zeros((pad, lanes), jnp.float32))
    return jnp.concatenate(rows, axis=0).astype(dtype), layout


def _block_w_entries(pfx, blk):
    """Per-head pre-split matmul weights of one transformer block (bf16 slab)."""
    ents = []
    for hi in range(H):
        ents.append((f"{pfx}q_w_h{hi}", blk["qkv_w"][:, hi * DH:(hi + 1) * DH]))
        ents.append((f"{pfx}k_w_h{hi}", blk["qkv_w"][:, D + hi * DH:D + (hi + 1) * DH]))
        ents.append((f"{pfx}v_w_h{hi}", blk["qkv_w"][:, 2 * D + hi * DH:2 * D + (hi + 1) * DH]))
        ents.append((f"{pfx}proj_w_h{hi}", blk["proj_w"][hi * DH:(hi + 1) * DH, :]))
    ents.append((f"{pfx}fc1_w", blk["fc1_w"]))
    ents.append((f"{pfx}fc2_w", blk["fc2_w"]))
    return ents


def _block_p_entries(pfx, blk):
    """Norms / biases of one transformer block (f32 slab)."""
    ents = [(f"{pfx}ln1_g", blk["ln1_g"]), (f"{pfx}ln1_b", blk["ln1_b"])]
    for hi in range(H):
        ents.append((f"{pfx}q_b_h{hi}", blk["qkv_b"][:, hi * DH:(hi + 1) * DH]))
        ents.append((f"{pfx}k_b_h{hi}", blk["qkv_b"][:, D + hi * DH:D + (hi + 1) * DH]))
        ents.append((f"{pfx}v_b_h{hi}", blk["qkv_b"][:, 2 * D + hi * DH:2 * D + (hi + 1) * DH]))
    ents += [(f"{pfx}proj_b", blk["proj_b"]),
             (f"{pfx}ln2_g", blk["ln2_g"]), (f"{pfx}ln2_b", blk["ln2_b"]),
             (f"{pfx}fc1_b", blk["fc1_b"]), (f"{pfx}fc2_b", blk["fc2_b"])]
    return ents


def pack_params(params):
    vp, tp = params["visual"], params["text"]
    pad_proj = lambda w: jnp.pad(w, ((0, 0), (0, E_PAD - w.shape[1])))

    w_entries = ([("v_patch_w", vp["patch_w"])]
                 + _block_w_entries("v_", vp["blk"])
                 + [("v_proj", pad_proj(vp["proj"]))]
                 + _block_w_entries("t_", tp["blk"])
                 + [("t_proj", pad_proj(tp["text_proj"]))])
    w_slab, wlay = _pack_slab(w_entries, jnp.bfloat16, row_align=16)

    # fold the class-token embedding into row 0 of the vision positional table
    pos_cls = vp["pos_emb"] + jnp.pad(vp["cls"], ((0, S_PAD - 1), (0, 0)))
    p_entries = ([("v_pos_cls", pos_cls),
                  ("v_ln_pre_g", vp["ln_pre_g"]), ("v_ln_pre_b", vp["ln_pre_b"])]
                 + _block_p_entries("v_", vp["blk"])
                 + [("v_ln_post_g", vp["ln_post_g"]), ("v_ln_post_b", vp["ln_post_b"]),
                    ("t_pos", tp["pos_emb"])]
                 + _block_p_entries("t_", tp["blk"])
                 + [("t_ln_final_g", tp["ln_final_g"]), ("t_ln_final_b", tp["ln_final_b"])])
    p_slab, play = _pack_slab(p_entries, jnp.float32, row_align=8)

    return {"w_slab": w_slab, "wlay": wlay, "p_slab": p_slab, "play": play,
            "tok_emb": tp["tok_emb"], "logit_scale": params["logit_scale"]}


# ----------------------- in-kernel (traced) helpers --------------------------
def _get(ref, lay, name):
    off, r, c = lay[name]          # static Python ints -> static slice
    return ref[off:off + r, :c]


def _layernorm(x, g, b, eps=1e-5):
    g = g.reshape((1,) * (x.ndim - 1) + (-1,))
    b = b.reshape((1,) * (x.ndim - 1) + (-1,))
    mu = jnp.mean(x, axis=-1, keepdims=True)
    var = jnp.mean((x - mu) ** 2, axis=-1, keepdims=True)
    return (x - mu) * jax.lax.rsqrt(var + eps) * g + b


def _quick_gelu(x):
    # OpenCLIP QuickGELU (force_quick_gelu): x * sigmoid(1.702 x)
    return x * jax.nn.sigmoid(1.702 * x)


def _transformer_block(x, attn_bias, wref, wlay, pref, play, pfx):
    """Pre-LN transformer block, fully fused in VMEM.

    x: [B, S, D] f32; weights carved from the bf16 W slab (per-head pre-split),
    norms/biases from the f32 P slab; attn_bias: [1, S, S].
    """
    b, s, d = x.shape
    scale = 1.0 / math.sqrt(DH)
    w = lambda n: _get(wref, wlay, pfx + n)    # bf16 matmul weights
    g = lambda n: _get(pref, play, pfx + n)    # f32 norms / biases

    # ---- attention -------------------------------------------------------
    h = _layernorm(x, g("ln1_g"), g("ln1_b")).reshape(b * s, d)
    hb = h.astype(jnp.bfloat16)

    attn = jnp.zeros((b * s, d), jnp.float32)
    for hi in range(H):                        # static unroll, per-head matmuls
        q = jnp.dot(hb, w(f"q_w_h{hi}"), preferred_element_type=jnp.float32) + g(f"q_b_h{hi}")
        k = jnp.dot(hb, w(f"k_w_h{hi}"), preferred_element_type=jnp.float32) + g(f"k_b_h{hi}")
        v = jnp.dot(hb, w(f"v_w_h{hi}"), preferred_element_type=jnp.float32) + g(f"v_b_h{hi}")
        q = q.reshape(b, s, DH)
        k = k.reshape(b, s, DH)
        v = v.reshape(b, s, DH)
        sc = jnp.einsum("bqd,bkd->bqk", q.astype(jnp.bfloat16), k.astype(jnp.bfloat16),
                        preferred_element_type=jnp.float32) * scale + attn_bias
        if EXACT_SOFTMAX_MAX_SUB:
            sc = sc - jnp.max(sc, axis=-1, keepdims=True)
        p = jnp.exp(sc)
        p = p * pl.reciprocal(jnp.sum(p, axis=-1, keepdims=True), approx=True)
        o = jnp.einsum("bqk,bkd->bqd", p.astype(jnp.bfloat16), v.astype(jnp.bfloat16),
                       preferred_element_type=jnp.float32)
        # merge heads by accumulating per-head row-blocks of the output projection
        attn = attn + jnp.dot(o.reshape(b * s, DH).astype(jnp.bfloat16),
                              w(f"proj_w_h{hi}"), preferred_element_type=jnp.float32)
    attn = attn + g("proj_b")
    x = x + attn.reshape(b, s, d)

    # ---- MLP ---------------------------------------------------------------
    h = _layernorm(x, g("ln2_g"), g("ln2_b")).reshape(b * s, d)
    h1 = jnp.dot(h.astype(jnp.bfloat16), w("fc1_w"),
                 preferred_element_type=jnp.float32) + g("fc1_b")
    h1 = _quick_gelu(h1)
    h2 = jnp.dot(h1.astype(jnp.bfloat16), w("fc2_w"),
                 preferred_element_type=jnp.float32) + g("fc2_b")
    return x + h2.reshape(b, s, d)


def _l2_normalize(feat):
    ss = jnp.sum(feat * feat, axis=-1, keepdims=True)
    return feat * jax.lax.rsqrt(jnp.maximum(ss, 1e-24))


# ----------------------------- fused kernel ----------------------------------
def _fused_kernel(patches_ref, txt_ref, wref, pref, out_ref, *, wlay, play):
    pid = pl.program_id(0)

    # ---------------- program 0: frozen + adapted vision towers -------------
    @pl.when(pid == 0)
    def _vision():
        # keys >= S_VIS are sublane padding: masked out of every softmax row
        k_idx = jax.lax.broadcasted_iota(jnp.int32, (1, S_PAD, S_PAD), 2)
        attn_bias = jnp.where(k_idx < S_VIS, 0.0, _NEG_INF).astype(jnp.float32)

        # one bf16 patch-embedding matmul covering frozen AND adapted towers
        pe = jnp.dot(patches_ref[...], _get(wref, wlay, "v_patch_w"),
                     preferred_element_type=jnp.float32)          # [2*B*S_PAD, D]
        pos_cls = _get(pref, play, "v_pos_cls")[None]             # [1, S_PAD, D]
        ln_pre_g = _get(pref, play, "v_ln_pre_g")
        ln_pre_b = _get(pref, play, "v_ln_pre_b")

        def tower(pe_slab, extra):
            x = pe_slab.reshape(B, S_PAD, D) + pos_cls            # tokens (+cls/pos)
            if extra is not None:
                x = x + extra
            x = _layernorm(x, ln_pre_g, ln_pre_b)
            return _transformer_block(x, attn_bias, wref, wlay, pref, play, "v_")

        # frozen tower (deepcopy of model.visual -> identical weights)
        ori = tower(pe[:B * S_PAD], None)
        # TODO(synk): exact fusion of ori_image_features inside OpenCLIP's
        # mask-adapted encode_image is not public; additive conditioning is used.
        y = tower(pe[B * S_PAD:], ori)

        # epilogue: static CLS slice -> ln_post -> lane-padded proj -> L2 norm
        cls_tok = y[:, 0, :]                                      # [B, D]
        cls_tok = _layernorm(cls_tok, _get(pref, play, "v_ln_post_g"),
                             _get(pref, play, "v_ln_post_b"))
        feat = jnp.dot(cls_tok.astype(jnp.bfloat16), _get(wref, wlay, "v_proj"),
                       preferred_element_type=jnp.float32)        # [B, E_PAD]
        out_ref[...] = _l2_normalize(feat).reshape(1, B, E_PAD)

    # ---------------- program 1: text transformer ---------------------------
    @pl.when(pid == 1)
    def _text():
        q_idx = jax.lax.broadcasted_iota(jnp.int32, (1, S_TXT, S_TXT), 1)
        k_idx = jax.lax.broadcasted_iota(jnp.int32, (1, S_TXT, S_TXT), 2)
        attn_bias = jnp.where(k_idx <= q_idx, 0.0, _NEG_INF).astype(jnp.float32)

        x = txt_ref[0:B * S_TXT, :].reshape(B, S_TXT, D)
        x = x + _get(pref, play, "t_pos")[None]
        x = _transformer_block(x, attn_bias, wref, wlay, pref, play, "t_")
        x = _layernorm(x, _get(pref, play, "t_ln_final_g"),
                       _get(pref, play, "t_ln_final_b"))

        # CLIP EOT pooling (host-computed one-hot rows) -> text proj -> L2 norm
        eot = txt_ref[B * S_TXT:B * S_TXT + B, 0:S_TXT]           # [B, S_TXT]
        pooled = jnp.sum(eot[:, :, None] * x, axis=1)             # [B, D]
        feat = jnp.dot(pooled.astype(jnp.bfloat16), _get(wref, wlay, "t_proj"),
                       preferred_element_type=jnp.float32)        # [B, E_PAD]
        out_ref[...] = _l2_normalize(feat).reshape(1, B, E_PAD)


# ----------------------------- host-side glue --------------------------------
def _patch_slab(image):
    """NCHW image -> [B*S_PAD, PATCH_DIM] slab.

    Row 0 of each batch (CLS slot) and rows S_VIS..S_PAD-1 (sublane padding)
    are zero; rows 1..N_PATCH carry the flattened patches."""
    b, c, h, w = image.shape
    gh, gw = h // PATCH, w // PATCH
    x = image.reshape(b, c, gh, PATCH, gw, PATCH)
    x = x.transpose(0, 2, 4, 1, 3, 5).reshape(b, N_PATCH, PATCH_DIM)
    x = jnp.pad(x, ((0, 0), (1, S_PAD - S_VIS), (0, 0)))
    return x.reshape(b * S_PAD, PATCH_DIM)


def clip_adapter_forward(packed, original_image, image, text, mask=None):
    """Mirrors ClipAdapter.forward for the (image, text) path with mask=None."""
    del mask  # TODO(synk): mask-conditioned encode_image path not modeled

    patches = jnp.concatenate(
        [_patch_slab(original_image), _patch_slab(image)], axis=0
    ).astype(jnp.bfloat16)                                        # [2*B*S_PAD, 192]

    x_txt = jnp.take(packed["tok_emb"], text, axis=0).reshape(B * S_TXT, D)
    eot = jax.nn.one_hot(jnp.argmax(text, axis=-1), S_TXT, dtype=jnp.float32)
    txt_in = jnp.concatenate(
        [x_txt, jnp.pad(eot, ((0, 0), (0, D - S_TXT)))], axis=0)  # [B*S_TXT+B, D]

    kernel = functools.partial(_fused_kernel, wlay=packed["wlay"], play=packed["play"])
    feats = pl.pallas_call(
        kernel,
        out_shape=jax.ShapeDtypeStruct((2, B, E_PAD), jnp.float32),
        grid=(2,),   # program 0: vision, program 1: text (2 TCs on v7x)
        in_specs=[
            pl.BlockSpec(patches.shape, lambda i: (0, 0)),
            pl.BlockSpec(txt_in.shape, lambda i: (0, 0)),
            pl.BlockSpec(packed["w_slab"].shape, lambda i: (0, 0)),
            pl.BlockSpec(packed["p_slab"].shape, lambda i: (0, 0)),
        ],
        out_specs=pl.BlockSpec((1, B, E_PAD), lambda i: (i, 0, 0)),
        compiler_params=pltpu.CompilerParams(dimension_semantics=("parallel",)),
    )(patches, txt_in, packed["w_slab"], packed["p_slab"])

    return {
        "image_features": feats[0, :, :EMBED],    # projection lanes >= EMBED are zero
        "text_features": feats[1, :, :EMBED],
        "logit_scale": jnp.exp(packed["logit_scale"]),
        # logit_bias is None in this config -> not included (matches reference)
    }


def make_forward(packed):
    @jax.jit
    def fwd(original_image, image, text):
        return clip_adapter_forward(packed, original_image, image, text)
    return fwd


# ----------------------------- parameter init --------------------------------
def _block_params(key, width):
    ks = jax.random.split(key, 4)
    n = lambda k, s: jax.random.normal(k, s, jnp.float32) * 0.02
    return {
        "ln1_g": jnp.ones((1, width), jnp.float32),
        "ln1_b": jnp.zeros((1, width), jnp.float32),
        "qkv_w": n(ks[0], (width, 3 * width)),
        "qkv_b": jnp.zeros((1, 3 * width), jnp.float32),
        "proj_w": n(ks[1], (width, width)),
        "proj_b": jnp.zeros((1, width), jnp.float32),
        "ln2_g": jnp.ones((1, width), jnp.float32),
        "ln2_b": jnp.zeros((1, width), jnp.float32),
        "fc1_w": n(ks[2], (width, 4 * width)),
        "fc1_b": jnp.zeros((1, 4 * width), jnp.float32),
        "fc2_w": n(ks[3], (4 * width, width)),
        "fc2_b": jnp.zeros((1, width), jnp.float32),
    }


def init_params(key):
    ks = jax.random.split(key, 10)
    n = lambda k, s: jax.random.normal(k, s, jnp.float32) * 0.02
    pos_vis = jnp.pad(n(ks[2], (S_VIS, D)), ((0, S_PAD - S_VIS), (0, 0)))
    visual = {
        "patch_w": n(ks[0], (PATCH_DIM, D)),   # CLIP patch conv: no bias
        "cls": n(ks[1], (1, D)),
        "pos_emb": pos_vis,                    # padded rows are zero
        "ln_pre_g": jnp.ones((1, D), jnp.float32),
        "ln_pre_b": jnp.zeros((1, D), jnp.float32),
        "blk": _block_params(ks[3], D),
        "ln_post_g": jnp.ones((1, D), jnp.float32),
        "ln_post_b": jnp.zeros((1, D), jnp.float32),
        "proj": n(ks[4], (D, EMBED)),
    }
    text = {
        "tok_emb": n(ks[5], (VOCAB, D)),
        "pos_emb": n(ks[6], (S_TXT, D)),
        "blk": _block_params(ks[7], D),
        "ln_final_g": jnp.ones((1, D), jnp.float32),
        "ln_final_b": jnp.zeros((1, D), jnp.float32),
        "text_proj": n(ks[8], (D, EMBED)),
    }
    return {
        "visual": visual,
        "text": text,
        "logit_scale": jnp.asarray(math.log(1.0 / 0.07), jnp.float32),
    }


# ----------------------------------- main -------------------------------------
if __name__ == "__main__":
    key = jax.random.PRNGKey(0)
    k_param, k_ori, k_img, k_txt = jax.random.split(key, 4)

    params = init_params(k_param)
    packed = pack_params(params)

    original_image = jax.random.normal(k_ori, (B, C_IN, IMG, IMG), jnp.float32)
    image = jax.random.normal(k_img, (B, C_IN, IMG, IMG), jnp.float32)
    text = jax.random.randint(k_txt, (B, S_TXT), 1, VOCAB, dtype=jnp.int32)

    fwd = make_forward(packed)
    out = fwd(original_image, image, text)
    jax.block_until_ready(out)

    assert out["image_features"].shape == (B, EMBED)
    assert out["text_features"].shape == (B, EMBED)
    assert bool(jnp.all(jnp.isfinite(out["image_features"])))
    assert bool(jnp.all(jnp.isfinite(out["text_features"])))
    # L2-normalized features should have unit norm
    assert bool(jnp.all(jnp.abs(
        jnp.sum(out["image_features"] ** 2, axis=-1) - 1.0) < 1e-3))
    assert bool(jnp.all(jnp.abs(
        jnp.sum(out["text_features"] ** 2, axis=-1) - 1.0) < 1e-3))
    print("KERNEL_OK")
</pallas_src>

<mosaic_0001>
module attributes {stable_mosaic.version = 11 : i64} {
  func.func @_fused_kernel(%arg0: i32, %arg1: memref<32x192xbf16, #tpu.memory_space<vmem>>, %arg2: memref<18x32xf32, #tpu.memory_space<vmem>>, %arg3: memref<1024x128xbf16, #tpu.memory_space<vmem>>, %arg4: memref<48x128xf32, #tpu.memory_space<vmem>>, %arg5: memref<1x2x128xf32, #tpu.memory_space<vmem>>) attributes {dimension_semantics = [#tpu.dimension_semantics<parallel>], iteration_bounds = array<i64: 2>, scalar_prefetch = 0 : i64, scratch_operands = 0 : i64, tpu.core_type = #tpu.core_type<tc>, window_params = [{pipeline_mode = #tpu.pipeline_mode<synchronous>, transform_indices = @transform_0, window_bounds = array<i64: 32, 192>}, {pipeline_mode = #tpu.pipeline_mode<synchronous>, transform_indices = @transform_1, window_bounds = array<i64: 18, 32>}, {pipeline_mode = #tpu.pipeline_mode<synchronous>, transform_indices = @transform_2, window_bounds = array<i64: 1024, 128>}, {pipeline_mode = #tpu.pipeline_mode<synchronous>, transform_indices = @transform_3, window_bounds = array<i64: 48, 128>}, {transform_indices = @transform_4, window_bounds = array<i64: 1, 2, 128>}]} {
    %c0_i32 = arith.constant 0 : i32
    %0 = arith.cmpi eq, %arg0, %c0_i32 : i32
    %1 = arith.extui %0 : i1 to i32
    %c0_i32_0 = arith.constant 0 : i32
    %2 = arith.cmpi ne, %1, %c0_i32_0 : i32
    scf.if %2 {
      %6 = tpu.iota {dimensions = array<i32: 2>} : vector<1x8x8xi32>
      %c5_i32 = arith.constant 5 : i32
      %7 = vector.broadcast %c5_i32 : i32 to vector<1x8x8xi32>
      %8 = arith.cmpi slt, %6, %7 : vector<1x8x8xi32>
      %cst = arith.constant 0.000000e+00 : f32
      %cst_2 = arith.constant -1.000000e+30 : f32
      %9 = vector.broadcast %cst : f32 to vector<1x8x8xf32>
      %10 = vector.broadcast %cst_2 : f32 to vector<1x8x8xf32>
      %11 = arith.select %8, %9, %10 : vector<1x8x8xi1>, vector<1x8x8xf32>
      %c0 = arith.constant 0 : index
      %c0_3 = arith.constant 0 : index
      %12 = vector.load %arg1[%c0, %c0_3] : memref<32x192xbf16, #tpu.memory_space<vmem>>, vector<32x192xbf16>
      %c0_4 = arith.constant 0 : index
      %c0_5 = arith.constant 0 : index
      %13 = vector.load %arg3[%c0_4, %c0_5] : memref<1024x128xbf16, #tpu.memory_space<vmem>>, vector<192x32xbf16>
      %cst_6 = arith.constant dense<0.000000e+00> : vector<32x32xf32>
      %14 = tpu.matmul %12, %13, %cst_6 {dimension_numbers = #tpu.dot_dimension_numbers<[1], [0], [0], [1], [0, 0, 1, 1], [], []>} : vector<32x192xbf16>, vector<192x32xbf16>, vector<32x32xf32> -> vector<32x32xf32>
      %c0_7 = arith.constant 0 : index
      %c0_8 = arith.constant 0 : index
      %15 = vector.load %arg4[%c0_7, %c0_8] : memref<48x128xf32, #tpu.memory_space<vmem>>, vector<8x32xf32>
      %16 = vector.shape_cast %15 : vector<8x32xf32> to vector<1x8x32xf32>
      %c8 = arith.constant 8 : index
      %c0_9 = arith.constant 0 : index
      %17 = vector.load %arg4[%c8, %c0_9] : memref<48x128xf32, #tpu.memory_space<vmem>>, vector<1x32xf32>
      %c9 = arith.constant 9 : index
      %c0_10 = arith.constant 0 : index
      %18 = vector.load %arg4[%c9, %c0_10] : memref<48x128xf32, #tpu.memory_space<vmem>>, vector<1x32xf32>
      %19 = vector.extract_strided_slice %14 {offsets = [0, 0], sizes = [16, 32], strides = [1, 1]} : vector<32x32xf32> to vector<16x32xf32>
      %20 = vector.shape_cast %19 : vector<16x32xf32> to vector<2x8x32xf32>
      %21 = vector.broadcast %16 : vector<1x8x32xf32> to vector<2x8x32xf32>
      %22 = arith.addf %20, %21 : vector<2x8x32xf32>
      %23 = vector.shape_cast %17 : vector<1x32xf32> to vector<1x1x32xf32>
      %24 = vector.shape_cast %18 : vector<1x32xf32> to vector<1x1x32xf32>
      %cst_11 = arith.constant dense<0.000000e+00> : vector<2x8xf32>
      %25 = vector.multi_reduction <add>, %22, %cst_11 [2] : vector<2x8x32xf32> to vector<2x8xf32>
      %26 = vector.shape_cast %25 : vector<2x8xf32> to vector<2x8x1xf32>
      %cst_12 = arith.constant 3.200000e+01 : f32
      %27 = vector.broadcast %cst_12 : f32 to vector<2x8x1xf32>
      %28 = arith.divf %26, %27 : vector<2x8x1xf32>
      %29 = vector.broadcast %28 : vector<2x8x1xf32> to vector<2x8x32xf32>
      %30 = arith.subf %22, %29 : vector<2x8x32xf32>
      %31 = arith.mulf %30, %30 : vector<2x8x32xf32>
      %cst_13 = arith.constant dense<0.000000e+00> : vector<2x8xf32>
      %32 = vector.multi_reduction <add>, %31, %cst_13 [2] : vector<2x8x32xf32> to vector<2x8xf32>
      %33 = vector.shape_cast %32 : vector<2x8xf32> to vector<2x8x1xf32>
      %cst_14 = arith.constant 3.200000e+01 : f32
      %34 = vector.broadcast %cst_14 : f32 to vector<2x8x1xf32>
      %35 = arith.divf %33, %34 : vector<2x8x1xf32>
      %36 = vector.broadcast %28 : vector<2x8x1xf32> to vector<2x8x32xf32>
      %37 = arith.subf %22, %36 : vector<2x8x32xf32>
      %cst_15 = arith.constant 9.99999974E-6 : f32
      %38 = vector.broadcast %cst_15 : f32 to vector<2x8x1xf32>
      %39 = arith.addf %35, %38 : vector<2x8x1xf32>
      %40 = math.rsqrt %39 : vector<2x8x1xf32>
      %41 = vector.broadcast %40 : vector<2x8x1xf32> to vector<2x8x32xf32>
      %42 = arith.mulf %37, %41 : vector<2x8x32xf32>
      %43 = vector.broadcast %23 : vector<1x1x32xf32> to vector<2x8x32xf32>
      %44 = arith.mulf %42, %43 : vector<2x8x32xf32>
      %45 = vector.broadcast %24 : vector<1x1x32xf32> to vector<2x8x32xf32>
      %46 = arith.addf %44, %45 : vector<2x8x32xf32>
      %c10 = arith.constant 10 : index
      %c0_16 = arith.constant 0 : index
      %47 = vector.load %arg4[%c10, %c0_16] : memref<48x128xf32, #tpu.memory_space<vmem>>, vector<1x32xf32>
      %c11 = arith.constant 11 : index
      %c0_17 = arith.constant 0 : index
      %48 = vector.load %arg4[%c11, %c0_17] : memref<48x128xf32, #tpu.memory_space<vmem>>, vector<1x32xf32>
      %49 = vector.shape_cast %47 : vector<1x32xf32> to vector<1x1x32xf32>
      %50 = vector.shape_cast %48 : vector<1x32xf32> to vector<1x1x32xf32>
      %cst_18 = arith.constant dense<0.000000e+00> : vector<2x8xf32>
      %51 = vector.multi_reduction <add>, %46, %cst_18 [2] : vector<2x8x32xf32> to vector<2x8xf32>
      %52 = vector.shape_cast %51 : vector<2x8xf32> to vector<2x8x1xf32>
      %cst_19 = arith.constant 3.200000e+01 : f32
      %53 = vector.broadcast %cst_19 : f32 to vector<2x8x1xf32>
      %54 = arith.divf %52, %53 : vector<2x8x1xf32>
      %55 = vector.broadcast %54 : vector<2x8x1xf32> to vector<2x8x32xf32>
      %56 = arith.subf %46, %55 : vector<2x8x32xf32>
      %57 = arith.mulf %56, %56 : vector<2x8x32xf32>
      %cst_20 = arith.constant dense<0.000000e+00> : vector<2x8xf32>
      %58 = vector.multi_reduction <add>, %57, %cst_20 [2] : vector<2x8x32xf32> to vector<2x8xf32>
      %59 = vector.shape_cast %58 : vector<2x8xf32> to vector<2x8x1xf32>
      %cst_21 = arith.constant 3.200000e+01 : f32
      %60 = vector.broadcast %cst_21 : f32 to vector<2x8x1xf32>
      %61 = arith.divf %59, %60 : vector<2x8x1xf32>
      %62 = vector.broadcast %54 : vector<2x8x1xf32> to vector<2x8x32xf32>
      %63 = arith.subf %46, %62 : vector<2x8x32xf32>
      %cst_22 = arith.constant 9.99999974E-6 : f32
      %64 = vector.broadcast %cst_22 : f32 to vector<2x8x1xf32>
      %65 = arith.addf %61, %64 : vector<2x8x1xf32>
      %66 = math.rsqrt %65 : vector<2x8x1xf32>
      %67 = vector.broadcast %66 : vector<2x8x1xf32> to vector<2x8x32xf32>
      %68 = arith.mulf %63, %67 : vector<2x8x32xf32>
      %69 = vector.broadcast %49 : vector<1x1x32xf32> to vector<2x8x32xf32>
      %70 = arith.mulf %68, %69 : vector<2x8x32xf32>
      %71 = vector.broadcast %50 : vector<1x1x32xf32> to vector<2x8x32xf32>
      %72 = arith.addf %70, %71 : vector<2x8x32xf32>
      %73 = vector.shape_cast %72 : vector<2x8x32xf32> to vector<16x32xf32>
      %74 = arith.truncf %73 : vector<16x32xf32> to vector<16x32xbf16>
      %cst_23 = arith.constant 0.000000e+00 : f32
      %75 = vector.broadcast %cst_23 : f32 to vector<16x32xf32>
      %c192 = arith.constant 192 : index
      %c0_24 = arith.constant 0 : index
      %76 = vector.load %arg3[%c192, %c0_24] : memref<1024x128xbf16, #tpu.memory_space<vmem>>, vector<32x16xbf16>
      %cst_25 = arith.constant dense<0.000000e+00> : vector<16x16xf32>
      %77 = tpu.matmul %74, %76, %cst_25 {dimension_numbers = #tpu.dot_dimension_numbers<[1], [0], [0], [1], [0, 0, 1, 1], [], []>} : vector<16x32xbf16>, vector<32x16xbf16>, vector<16x16xf32> -> vector<16x16xf32>
      %c12 = arith.constant 12 : index
      %c0_26 = arith.constant 0 : index
      %78 = vector.load %arg4[%c12, %c0_26] : memref<48x128xf32, #tpu.memory_space<vmem>>, vector<1x16xf32>
      %79 = vector.broadcast %78 : vector<1x16xf32> to vector<16x16xf32>
      %80 = arith.addf %77, %79 : vector<16x16xf32>
      %c224 = arith.constant 224 : index
      %c0_27 = arith.constant 0 : index
      %81 = vector.load %arg3[%c224, %c0_27] : memref<1024x128xbf16, #tpu.memory_space<vmem>>, vector<32x16xbf16>
      %cst_28 = arith.constant dense<0.000000e+00> : vector<16x16xf32>
      %82 = tpu.matmul %74, %81, %cst_28 {dimension_numbers = #tpu.dot_dimension_numbers<[1], [0], [0], [1], [0, 0, 1, 1], [], []>} : vector<16x32xbf16>, vector<32x16xbf16>, vector<16x16xf32> -> vector<16x16xf32>
      %c13 = arith.constant 13 : index
      %c0_29 = arith.constant 0 : index
      %83 = vector.load %arg4[%c13, %c0_29] : memref<48x128xf32, #tpu.memory_space<vmem>>, vector<1x16xf32>
      %84 = vector.broadcast %83 : vector<1x16xf32> to vector<16x16xf32>
      %85 = arith.addf %82, %84 : vector<16x16xf32>
      %c256 = arith.constant 256 : index
      %c0_30 = arith.constant 0 : index
      %86 = vector.load %arg3[%c256, %c0_30] : memref<1024x128xbf16, #tpu.memory_space<vmem>>, vector<32x16xbf16>
      %cst_31 = arith.constant dense<0.000000e+00> : vector<16x16xf32>
      %87 = tpu.matmul %74, %86, %cst_31 {dimension_numbers = #tpu.dot_dimension_numbers<[1], [0], [0], [1], [0, 0, 1, 1], [], []>} : vector<16x32xbf16>, vector<32x16xbf16>, vector<16x16xf32> -> vector<16x16xf32>
      %c14 = arith.constant 14 : index
      %c0_32 = arith.constant 0 : index
      %88 = vector.load %arg4[%c14, %c0_32] : memref<48x128xf32, #tpu.memory_space<vmem>>, vector<1x16xf32>
      %89 = vector.broadcast %88 : vector<1x16xf32> to vector<16x16xf32>
      %90 = arith.addf %87, %89 : vector<16x16xf32>
      %91 = vector.shape_cast %80 : vector<16x16xf32> to vector<2x8x16xf32>
      %92 = vector.shape_cast %85 : vector<16x16xf32> to vector<2x8x16xf32>
      %93 = vector.shape_cast %90 : vector<16x16xf32> to vector<2x8x16xf32>
      %94 = arith.truncf %91 : vector<2x8x16xf32> to vector<2x8x16xbf16>
      %95 = arith.truncf %92 : vector<2x8x16xf32> to vector<2x8x16xbf16>
      "tpu.trace_start"() <{level = 10 : i32, message = "bqd,bkd->bqk"}> : () -> ()
      %cst_33 = arith.constant dense<0.000000e+00> : vector<2x8x8xf32>
      %96 = tpu.matmul %94, %95, %cst_33 {dimension_numbers = #tpu.dot_dimension_numbers<[2], [2], [1], [1], [0, 0, 0, 1, 1, 1], [0], [0]>} : vector<2x8x16xbf16>, vector<2x8x16xbf16>, vector<2x8x8xf32> -> vector<2x8x8xf32>
      "tpu.trace_stop"() : () -> ()
      %cst_34 = arith.constant 2.500000e-01 : f32
      %97 = vector.broadcast %cst_34 : f32 to vector<2x8x8xf32>
      %98 = arith.mulf %96, %97 : vector<2x8x8xf32>
      %99 = vector.broadcast %11 : vector<1x8x8xf32> to vector<2x8x8xf32>
      %100 = arith.addf %98, %99 : vector<2x8x8xf32>
      %101 = math.exp %100 : vector<2x8x8xf32>
      %cst_35 = arith.constant dense<0.000000e+00> : vector<2x8xf32>
      %102 = vector.multi_reduction <add>, %101, %cst_35 [2] : vector<2x8x8xf32> to vector<2x8xf32>
      %103 = vector.shape_cast %102 : vector<2x8xf32> to vector<2x8x1xf32>
      %104 = tpu.reciprocal %103 {approx = true} : vector<2x8x1xf32> -> vector<2x8x1xf32>
      %105 = vector.broadcast %104 : vector<2x8x1xf32> to vector<2x8x8xf32>
      %106 = arith.mulf %101, %105 : vector<2x8x8xf32>
      %107 = arith.truncf %106 : vector<2x8x8xf32> to vector<2x8x8xbf16>
      %108 = arith.truncf %93 : vector<2x8x16xf32> to vector<2x8x16xbf16>
      "tpu.trace_start"() <{level = 10 : i32, message = "bqk,bkd->bqd"}> : () -> ()
      %cst_36 = arith.constant dense<0.000000e+00> : vector<2x8x16xf32>
      %109 = tpu.matmul %107, %108, %cst_36 {dimension_numbers = #tpu.dot_dimension_numbers<[2], [1], [1], [2], [0, 0, 0, 1, 1, 2], [0], [0]>} : vector<2x8x8xbf16>, vector<2x8x16xbf16>, vector<2x8x16xf32> -> vector<2x8x16xf32>
      "tpu.trace_stop"() : () -> ()
      %110 = vector.shape_cast %109 : vector<2x8x16xf32> to vector<16x16xf32>
      %111 = arith.truncf %110 : vector<16x16xf32> to vector<16x16xbf16>
      %c288 = arith.constant 288 : index
      %c0_37 = arith.constant 0 : index
      %112 = vector.load %arg3[%c288, %c0_37] : memref<1024x128xbf16, #tpu.memory_space<vmem>>, vector<16x32xbf16>
      %cst_38 = arith.constant dense<0.000000e+00> : vector<16x32xf32>
      %113 = tpu.matmul %111, %112, %cst_38 {dimension_numbers = #tpu.dot_dimension_numbers<[1], [0], [0], [1], [0, 0, 1, 1], [], []>} : vector<16x16xbf16>, vector<16x32xbf16>, vector<16x32xf32> -> vector<16x32xf32>
      %114 = arith.addf %75, %113 : vector<16x32xf32>
      %c304 = arith.constant 304 : index
      %c0_39 = arith.constant 0 : index
      %115 = vector.load %arg3[%c304, %c0_39] : memref<1024x128xbf16, #tpu.memory_space<vmem>>, vector<32x16xbf16>
      %cst_40 = arith.constant dense<0.000000e+00> : vector<16x16xf32>
      %116 = tpu.matmul %74, %115, %cst_40 {dimension_numbers = #tpu.dot_dimension_numbers<[1], [0], [0], [1], [0, 0, 1, 1], [], []>} : vector<16x32xbf16>, vector<32x16xbf16>, vector<16x16xf32> -> vector<16x16xf32>
      %c15 = arith.constant 15 : index
      %c0_41 = arith.constant 0 : index
      %117 = vector.load %arg4[%c15, %c0_41] : memref<48x128xf32, #tpu.memory_space<vmem>>, vector<1x16xf32>
      %118 = vector.broadcast %117 : vector<1x16xf32> to vector<16x16xf32>
      %119 = arith.addf %116, %118 : vector<16x16xf32>
      %c336 = arith.constant 336 : index
      %c0_42 = arith.constant 0 : index
      %120 = vector.load %arg3[%c336, %c0_42] : memref<1024x128xbf16, #tpu.memory_space<vmem>>, vector<32x16xbf16>
      %cst_43 = arith.constant dense<0.000000e+00> : vector<16x16xf32>
      %121 = tpu.matmul %74, %120, %cst_43 {dimension_numbers = #tpu.dot_dimension_numbers<[1], [0], [0], [1], [0, 0, 1, 1], [], []>} : vector<16x32xbf16>, vector<32x16xbf16>, vector<16x16xf32> -> vector<16x16xf32>
      %c16 = arith.constant 16 : index
      %c0_44 = arith.constant 0 : index
      %122 = vector.load %arg4[%c16, %c0_44] : memref<48x128xf32, #tpu.memory_space<vmem>>, vector<1x16xf32>
      %123 = vector.broadcast %122 : vector<1x16xf32> to vector<16x16xf32>
      %124 = arith.addf %121, %123 : vector<16x16xf32>
      %c368 = arith.constant 368 : index
      %c0_45 = arith.constant 0 : index
      %125 = vector.load %arg3[%c368, %c0_45] : memref<1024x128xbf16, #tpu.memory_space<vmem>>, vector<32x16xbf16>
      %cst_46 = arith.constant dense<0.000000e+00> : vector<16x16xf32>
      %126 = tpu.matmul %74, %125, %cst_46 {dimension_numbers = #tpu.dot_dimension_numbers<[1], [0], [0], [1], [0, 0, 1, 1], [], []>} : vector<16x32xbf16>, vector<32x16xbf16>, vector<16x16xf32> -> vector<16x16xf32>
      %c17 = arith.constant 17 : index
      %c0_47 = arith.constant 0 : index
      %127 = vector.load %arg4[%c17, %c0_47] : memref<48x128xf32, #tpu.memory_space<vmem>>, vector<1x16xf32>
      %128 = vector.broadcast %127 : vector<1x16xf32> to vector<16x16xf32>
      %129 = arith.addf %126, %128 : vector<16x16xf32>
      %130 = vector.shape_cast %119 : vector<16x16xf32> to vector<2x8x16xf32>
      %131 = vector.shape_cast %124 : vector<16x16xf32> to vector<2x8x16xf32>
      %132 = vector.shape_cast %129 : vector<16x16xf32> to vector<2x8x16xf32>
      %133 = arith.truncf %130 : vector<2x8x16xf32> to vector<2x8x16xbf16>
      %134 = arith.truncf %131 : vector<2x8x16xf32> to vector<2x8x16xbf16>
      "tpu.trace_start"() <{level = 10 : i32, message = "bqd,bkd->bqk"}> : () -> ()
      %cst_48 = arith.constant dense<0.000000e+00> : vector<2x8x8xf32>
      %135 = tpu.matmul %133, %134, %cst_48 {dimension_numbers = #tpu.dot_dimension_numbers<[2], [2], [1], [1], [0, 0, 0, 1, 1, 1], [0], [0]>} : vector<2x8x16xbf16>, vector<2x8x16xbf16>, vector<2x8x8xf32> -> vector<2x8x8xf32>
      "tpu.trace_stop"() : () -> ()
      %cst_49 = arith.constant 2.500000e-01 : f32
      %136 = vector.broadcast %cst_49 : f32 to vector<2x8x8xf32>
      %137 = arith.mulf %135, %136 : vector<2x8x8xf32>
      %138 = vector.broadcast %11 : vector<1x8x8xf32> to vector<2x8x8xf32>
      %139 = arith.addf %137, %138 : vector<2x8x8xf32>
      %140 = math.exp %139 : vector<2x8x8xf32>
      %cst_50 = arith.constant dense<0.000000e+00> : vector<2x8xf32>
      %141 = vector.multi_reduction <add>, %140, %cst_50 [2] : vector<2x8x8xf32> to vector<2x8xf32>
      %142 = vector.shape_cast %141 : vector<2x8xf32> to vector<2x8x1xf32>
      %143 = tpu.reciprocal %142 {approx = true} : vector<2x8x1xf32> -> vector<2x8x1xf32>
      %144 = vector.broadcast %143 : vector<2x8x1xf32> to vector<2x8x8xf32>
      %145 = arith.mulf %140, %144 : vector<2x8x8xf32>
      %146 = arith.truncf %145 : vector<2x8x8xf32> to vector<2x8x8xbf16>
      %147 = arith.truncf %132 : vector<2x8x16xf32> to vector<2x8x16xbf16>
      "tpu.trace_start"() <{level = 10 : i32, message = "bqk,bkd->bqd"}> : () -> ()
      %cst_51 = arith.constant dense<0.000000e+00> : vector<2x8x16xf32>
      %148 = tpu.matmul %146, %147, %cst_51 {dimension_numbers = #tpu.dot_dimension_numbers<[2], [1], [1], [2], [0, 0, 0, 1, 1, 2], [0], [0]>} : vector<2x8x8xbf16>, vector<2x8x16xbf16>, vector<2x8x16xf32> -> vector<2x8x16xf32>
      "tpu.trace_stop"() : () -> ()
      %149 = vector.shape_cast %148 : vector<2x8x16xf32> to vector<16x16xf32>
      %150 = arith.truncf %149 : vector<16x16xf32> to vector<16x16xbf16>
      %c400 = arith.constant 400 : index
      %c0_52 = arith.constant 0 : index
      %151 = vector.load %arg3[%c400, %c0_52] : memref<1024x128xbf16, #tpu.memory_space<vmem>>, vector<16x32xbf16>
      %cst_53 = arith.constant dense<0.000000e+00> : vector<16x32xf32>
      %152 = tpu.matmul %150, %151, %cst_53 {dimension_numbers = #tpu.dot_dimension_numbers<[1], [0], [0], [1], [0, 0, 1, 1], [], []>} : vector<16x16xbf16>, vector<16x32xbf16>, vector<16x32xf32> -> vector<16x32xf32>
      %153 = arith.addf %114, %152 : vector<16x32xf32>
      %c18 = arith.constant 18 : index
      %c0_54 = arith.constant 0 : index
      %154 = vector.load %arg4[%c18, %c0_54] : memref<48x128xf32, #tpu.memory_space<vmem>>, vector<1x32xf32>
      %155 = vector.broadcast %154 : vector<1x32xf32> to vector<16x32xf32>
      %156 = arith.addf %153, %155 : vector<16x32xf32>
      %157 = vector.shape_cast %156 : vector<16x32xf32> to vector<2x8x32xf32>
      %158 = arith.addf %46, %157 : vector<2x8x32xf32>
      %c19 = arith.constant 19 : index
      %c0_55 = arith.constant 0 : index
      %159 = vector.load %arg4[%c19, %c0_55] : memref<48x128xf32, #tpu.memory_space<vmem>>, vector<1x32xf32>
      %c20 = arith.constant 20 : index
      %c0_56 = arith.constant 0 : index
      %160 = vector.load %arg4[%c20, %c0_56] : memref<48x128xf32, #tpu.memory_space<vmem>>, vector<1x32xf32>
      %161 = vector.shape_cast %159 : vector<1x32xf32> to vector<1x1x32xf32>
      %162 = vector.shape_cast %160 : vector<1x32xf32> to vector<1x1x32xf32>
      %cst_57 = arith.constant dense<0.000000e+00> : vector<2x8xf32>
      %163 = vector.multi_reduction <add>, %158, %cst_57 [2] : vector<2x8x32xf32> to vector<2x8xf32>
      %164 = vector.shape_cast %163 : vector<2x8xf32> to vector<2x8x1xf32>
      %cst_58 = arith.constant 3.200000e+01 : f32
      %165 = vector.broadcast %cst_58 : f32 to vector<2x8x1xf32>
      %166 = arith.divf %164, %165 : vector<2x8x1xf32>
      %167 = vector.broadcast %166 : vector<2x8x1xf32> to vector<2x8x32xf32>
      %168 = arith.subf %158, %167 : vector<2x8x32xf32>
      %169 = arith.mulf %168, %168 : vector<2x8x32xf32>
      %cst_59 = arith.constant dense<0.000000e+00> : vector<2x8xf32>
      %170 = vector.multi_reduction <add>, %169, %cst_59 [2] : vector<2x8x32xf32> to vector<2x8xf32>
      %171 = vector.shape_cast %170 : vector<2x8xf32> to vector<2x8x1xf32>
      %cst_60 = arith.constant 3.200000e+01 : f32
      %172 = vector.broadcast %cst_60 : f32 to vector<2x8x1xf32>
      %173 = arith.divf %171, %172 : vector<2x8x1xf32>
      %174 = vector.broadcast %166 : vector<2x8x1xf32> to vector<2x8x32xf32>
      %175 = arith.subf %158, %174 : vector<2x8x32xf32>
      %cst_61 = arith.constant 9.99999974E-6 : f32
      %176 = vector.broadcast %cst_61 : f32 to vector<2x8x1xf32>
      %177 = arith.addf %173, %176 : vector<2x8x1xf32>
      %178 = math.rsqrt %177 : vector<2x8x1xf32>
      %179 = vector.broadcast %178 : vector<2x8x1xf32> to vector<2x8x32xf32>
      %180 = arith.mulf %175, %179 : vector<2x8x32xf32>
      %181 = vector.broadcast %161 : vector<1x1x32xf32> to vector<2x8x32xf32>
      %182 = arith.mulf %180, %181 : vector<2x8x32xf32>
      %183 = vector.broadcast %162 : vector<1x1x32xf32> to vector<2x8x32xf32>
      %184 = arith.addf %182, %183 : vector<2x8x32xf32>
      %185 = vector.shape_cast %184 : vector<2x8x32xf32> to vector<16x32xf32>
      %186 = arith.truncf %185 : vector<16x32xf32> to vector<16x32xbf16>
      %c416 = arith.constant 416 : index
      %c0_62 = arith.constant 0 : index
      %187 = vector.load %arg3[%c416, %c0_62] : memref<1024x128xbf16, #tpu.memory_space<vmem>>, vector<32x128xbf16>
      %cst_63 = arith.constant dense<0.000000e+00> : vector<16x128xf32>
      %188 = tpu.matmul %186, %187, %cst_63 {dimension_numbers = #tpu.dot_dimension_numbers<[1], [0], [0], [1], [0, 0, 1, 1], [], []>} : vector<16x32xbf16>, vector<32x128xbf16>, vector<16x128xf32> -> vector<16x128xf32>
      %c21 = arith.constant 21 : index
      %c0_64 = arith.constant 0 : index
      %189 = vector.load %arg4[%c21, %c0_64] : memref<48x128xf32, #tpu.memory_space<vmem>>, vector<1x128xf32>
      %190 = vector.broadcast %189 : vector<1x128xf32> to vector<16x128xf32>
      %191 = arith.addf %188, %190 : vector<16x128xf32>
      %cst_65 = arith.constant 1.702000e+00 : f32
      %192 = vector.broadcast %cst_65 : f32 to vector<16x128xf32>
      %193 = arith.mulf %192, %191 : vector<16x128xf32>
      %194 = arith.negf %193 : vector<16x128xf32>
      %195 = math.exp %194 : vector<16x128xf32>
      %cst_66 = arith.constant 1.000000e+00 : f32
      %196 = vector.broadcast %cst_66 : f32 to vector<16x128xf32>
      %197 = arith.addf %196, %195 : vector<16x128xf32>
      %198 = arith.divf %196, %197 : vector<16x128xf32>
      %199 = arith.mulf %191, %198 : vector<16x128xf32>
      %200 = arith.truncf %199 : vector<16x128xf32> to vector<16x128xbf16>
      %c448 = arith.constant 448 : index
      %c0_67 = arith.constant 0 : index
      %201 = vector.load %arg3[%c448, %c0_67] : memref<1024x128xbf16, #tpu.memory_space<vmem>>, vector<128x32xbf16>
      %cst_68 = arith.constant dense<0.000000e+00> : vector<16x32xf32>
      %202 = tpu.matmul %200, %201, %cst_68 {dimension_numbers = #tpu.dot_dimension_numbers<[1], [0], [0], [1], [0, 0, 1, 1], [], []>} : vector<16x128xbf16>, vector<128x32xbf16>, vector<16x32xf32> -> vector<16x32xf32>
      %c22 = arith.constant 22 : index
      %c0_69 = arith.constant 0 : index
      %203 = vector.load %arg4[%c22, %c0_69] : memref<48x128xf32, #tpu.memory_space<vmem>>, vector<1x32xf32>
      %204 = vector.broadcast %203 : vector<1x32xf32> to vector<16x32xf32>
      %205 = arith.addf %202, %204 : vector<16x32xf32>
      %206 = vector.shape_cast %205 : vector<16x32xf32> to vector<2x8x32xf32>
      %207 = arith.addf %158, %206 : vector<2x8x32xf32>
      %208 = vector.extract_strided_slice %14 {offsets = [16, 0], sizes = [16, 32], strides = [1, 1]} : vector<32x32xf32> to vector<16x32xf32>
      %209 = vector.shape_cast %208 : vector<16x32xf32> to vector<2x8x32xf32>
      %210 = vector.broadcast %16 : vector<1x8x32xf32> to vector<2x8x32xf32>
      %211 = arith.addf %209, %210 : vector<2x8x32xf32>
      %212 = arith.addf %211, %207 : vector<2x8x32xf32>
      %213 = vector.shape_cast %17 : vector<1x32xf32> to vector<1x1x32xf32>
      %214 = vector.shape_cast %18 : vector<1x32xf32> to vector<1x1x32xf32>
      %cst_70 = arith.constant dense<0.000000e+00> : vector<2x8xf32>
      %215 = vector.multi_reduction <add>, %212, %cst_70 [2] : vector<2x8x32xf32> to vector<2x8xf32>
      %216 = vector.shape_cast %215 : vector<2x8xf32> to vector<2x8x1xf32>
      %cst_71 = arith.constant 3.200000e+01 : f32
      %217 = vector.broadcast %cst_71 : f32 to vector<2x8x1xf32>
      %218 = arith.divf %216, %217 : vector<2x8x1xf32>
      %219 = vector.broadcast %218 : vector<2x8x1xf32> to vector<2x8x32xf32>
      %220 = arith.subf %212, %219 : vector<2x8x32xf32>
      %221 = arith.mulf %220, %220 : vector<2x8x32xf32>
      %cst_72 = arith.constant dense<0.000000e+00> : vector<2x8xf32>
      %222 = vector.multi_reduction <add>, %221, %cst_72 [2] : vector<2x8x32xf32> to vector<2x8xf32>
      %223 = vector.shape_cast %222 : vector<2x8xf32> to vector<2x8x1xf32>
      %cst_73 = arith.constant 3.200000e+01 : f32
      %224 = vector.broadcast %cst_73 : f32 to vector<2x8x1xf32>
      %225 = arith.divf %223, %224 : vector<2x8x1xf32>
      %226 = vector.broadcast %218 : vector<2x8x1xf32> to vector<2x8x32xf32>
      %227 = arith.subf %212, %226 : vector<2x8x32xf32>
      %cst_74 = arith.constant 9.99999974E-6 : f32
      %228 = vector.broadcast %cst_74 : f32 to vector<2x8x1xf32>
      %229 = arith.addf %225, %228 : vector<2x8x1xf32>
      %230 = math.rsqrt %229 : vector<2x8x1xf32>
      %231 = vector.broadcast %230 : vector<2x8x1xf32> to vector<2x8x32xf32>
      %232 = arith.mulf %227, %231 : vector<2x8x32xf32>
      %233 = vector.broadcast %213 : vector<1x1x32xf32> to vector<2x8x32xf32>
      %234 = arith.mulf %232, %233 : vector<2x8x32xf32>
      %235 = vector.broadcast %214 : vector<1x1x32xf32> to vector<2x8x32xf32>
      %236 = arith.addf %234, %235 : vector<2x8x32xf32>
      %c10_75 = arith.constant 10 : index
      %c0_76 = arith.constant 0 : index
      %237 = vector.load %arg4[%c10_75, %c0_76] : memref<48x128xf32, #tpu.memory_space<vmem>>, vector<1x32xf32>
      %c11_77 = arith.constant 11 : index
      %c0_78 = arith.constant 0 : index
      %238 = vector.load %arg4[%c11_77, %c0_78] : memref<48x128xf32, #tpu.memory_space<vmem>>, vector<1x32xf32>
      %239 = vector.shape_cast %237 : vector<1x32xf32> to vector<1x1x32xf32>
      %240 = vector.shape_cast %238 : vector<1x32xf32> to vector<1x1x32xf32>
      %cst_79 = arith.constant dense<0.000000e+00> : vector<2x8xf32>
      %241 = vector.multi_reduction <add>, %236, %cst_79 [2] : vector<2x8x32xf32> to vector<2x8xf32>
      %242 = vector.shape_cast %241 : vector<2x8xf32> to vector<2x8x1xf32>
      %cst_80 = arith.constant 3.200000e+01 : f32
      %243 = vector.broadcast %cst_80 : f32 to vector<2x8x1xf32>
      %244 = arith.divf %242, %243 : vector<2x8x1xf32>
      %245 = vector.broadcast %244 : vector<2x8x1xf32> to vector<2x8x32xf32>
      %246 = arith.subf %236, %245 : vector<2x8x32xf32>
      %247 = arith.mulf %246, %246 : vector<2x8x32xf32>
      %cst_81 = arith.constant dense<0.000000e+00> : vector<2x8xf32>
      %248 = vector.multi_reduction <add>, %247, %cst_81 [2] : vector<2x8x32xf32> to vector<2x8xf32>
      %249 = vector.shape_cast %248 : vector<2x8xf32> to vector<2x8x1xf32>
      %cst_82 = arith.constant 3.200000e+01 : f32
      %250 = vector.broadcast %cst_82 : f32 to vector<2x8x1xf32>
      %251 = arith.divf %249, %250 : vector<2x8x1xf32>
      %252 = vector.broadcast %244 : vector<2x8x1xf32> to vector<2x8x32xf32>
      %253 = arith.subf %236, %252 : vector<2x8x32xf32>
      %cst_83 = arith.constant 9.99999974E-6 : f32
      %254 = vector.broadcast %cst_83 : f32 to vector<2x8x1xf32>
      %255 = arith.addf %251, %254 : vector<2x8x1xf32>
      %256 = math.rsqrt %255 : vector<2x8x1xf32>
      %257 = vector.broadcast %256 : vector<2x8x1xf32> to vector<2x8x32xf32>
      %258 = arith.mulf %253, %257 : vector<2x8x32xf32>
      %259 = vector.broadcast %239 : vector<1x1x32xf32> to vector<2x8x32xf32>
      %260 = arith.mulf %258, %259 : vector<2x8x32xf32>
      %261 = vector.broadcast %240 : vector<1x1x32xf32> to vector<2x8x32xf32>
      %262 = arith.addf %260, %261 : vector<2x8x32xf32>
      %263 = vector.shape_cast %262 : vector<2x8x32xf32> to vector<16x32xf32>
      %264 = arith.truncf %263 : vector<16x32xf32> to vector<16x32xbf16>
      %cst_84 = arith.constant 0.000000e+00 : f32
      %265 = vector.broadcast %cst_84 : f32 to vector<16x32xf32>
      %c192_85 = arith.constant 192 : index
      %c0_86 = arith.constant 0 : index
      %266 = vector.load %arg3[%c192_85, %c0_86] : memref<1024x128xbf16, #tpu.memory_space<vmem>>, vector<32x16xbf16>
      %cst_87 = arith.constant dense<0.000000e+00> : vector<16x16xf32>
      %267 = tpu.matmul %264, %266, %cst_87 {dimension_numbers = #tpu.dot_dimension_numbers<[1], [0], [0], [1], [0, 0, 1, 1], [], []>} : vector<16x32xbf16>, vector<32x16xbf16>, vector<16x16xf32> -> vector<16x16xf32>
      %c12_88 = arith.constant 12 : index
      %c0_89 = arith.constant 0 : index
      %268 = vector.load %arg4[%c12_88, %c0_89] : memref<48x128xf32, #tpu.memory_space<vmem>>, vector<1x16xf32>
      %269 = vector.broadcast %268 : vector<1x16xf32> to vector<16x16xf32>
      %270 = arith.addf %267, %269 : vector<16x16xf32>
      %c224_90 = arith.constant 224 : index
      %c0_91 = arith.constant 0 : index
      %271 = vector.load %arg3[%c224_90, %c0_91] : memref<1024x128xbf16, #tpu.memory_space<vmem>>, vector<32x16xbf16>
      %cst_92 = arith.constant dense<0.000000e+00> : vector<16x16xf32>
      %272 = tpu.matmul %264, %271, %cst_92 {dimension_numbers = #tpu.dot_dimension_numbers<[1], [0], [0], [1], [0, 0, 1, 1], [], []>} : vector<16x32xbf16>, vector<32x16xbf16>, vector<16x16xf32> -> vector<16x16xf32>
      %c13_93 = arith.constant 13 : index
      %c0_94 = arith.constant 0 : index
      %273 = vector.load %arg4[%c13_93, %c0_94] : memref<48x128xf32, #tpu.memory_space<vmem>>, vector<1x16xf32>
      %274 = vector.broadcast %273 : vector<1x16xf32> to vector<16x16xf32>
      %275 = arith.addf %272, %274 : vector<16x16xf32>
      %c256_95 = arith.constant 256 : index
      %c0_96 = arith.constant 0 : index
      %276 = vector.load %arg3[%c256_95, %c0_96] : memref<1024x128xbf16, #tpu.memory_space<vmem>>, vector<32x16xbf16>
      %cst_97 = arith.constant dense<0.000000e+00> : vector<16x16xf32>
      %277 = tpu.matmul %264, %276, %cst_97 {dimension_numbers = #tpu.dot_dimension_numbers<[1], [0], [0], [1], [0, 0, 1, 1], [], []>} : vector<16x32xbf16>, vector<32x16xbf16>, vector<16x16xf32> -> vector<16x16xf32>
      %c14_98 = arith.constant 14 : index
      %c0_99 = arith.constant 0 : index
      %278 = vector.load %arg4[%c14_98, %c0_99] : memref<48x128xf32, #tpu.memory_space<vmem>>, vector<1x16xf32>
      %279 = vector.broadcast %278 : vector<1x16xf32> to vector<16x16xf32>
      %280 = arith.addf %277, %279 : vector<16x16xf32>
      %281 = vector.shape_cast %270 : vector<16x16xf32> to vector<2x8x16xf32>
      %282 = vector.shape_cast %275 : vector<16x16xf32> to vector<2x8x16xf32>
      %283 = vector.shape_cast %280 : vector<16x16xf32> to vector<2x8x16xf32>
      %284 = arith.truncf %281 : vector<2x8x16xf32> to vector<2x8x16xbf16>
      %285 = arith.truncf %282 : vector<2x8x16xf32> to vector<2x8x16xbf16>
      "tpu.trace_start"() <{level = 10 : i32, message = "bqd,bkd->bqk"}> : () -> ()
      %cst_100 = arith.constant dense<0.000000e+00> : vector<2x8x8xf32>
      %286 = tpu.matmul %284, %285, %cst_100 {dimension_numbers = #tpu.dot_dimension_numbers<[2], [2], [1], [1], [0, 0, 0, 1, 1, 1], [0], [0]>} : vector<2x8x16xbf16>, vector<2x8x16xbf16>, vector<2x8x8xf32> -> vector<2x8x8xf32>
      "tpu.trace_stop"() : () -> ()
      %cst_101 = arith.constant 2.500000e-01 : f32
      %287 = vector.broadcast %cst_101 : f32 to vector<2x8x8xf32>
      %288 = arith.mulf %286, %287 : vector<2x8x8xf32>
      %289 = vector.broadcast %11 : vector<1x8x8xf32> to vector<2x8x8xf32>
      %290 = arith.addf %288, %289 : vector<2x8x8xf32>
      %291 = math.exp %290 : vector<2x8x8xf32>
      %cst_102 = arith.constant dense<0.000000e+00> : vector<2x8xf32>
      %292 = vector.multi_reduction <add>, %291, %cst_102 [2] : vector<2x8x8xf32> to vector<2x8xf32>
      %293 = vector.shape_cast %292 : vector<2x8xf32> to vector<2x8x1xf32>
      %294 = tpu.reciprocal %293 {approx = true} : vector<2x8x1xf32> -> vector<2x8x1xf32>
      %295 = vector.broadcast %294 : vector<2x8x1xf32> to vector<2x8x8xf32>
      %296 = arith.mulf %291, %295 : vector<2x8x8xf32>
      %297 = arith.truncf %296 : vector<2x8x8xf32> to vector<2x8x8xbf16>
      %298 = arith.truncf %283 : vector<2x8x16xf32> to vector<2x8x16xbf16>
      "tpu.trace_start"() <{level = 10 : i32, message = "bqk,bkd->bqd"}> : () -> ()
      %cst_103 = arith.constant dense<0.000000e+00> : vector<2x8x16xf32>
      %299 = tpu.matmul %297, %298, %cst_103 {dimension_numbers = #tpu.dot_dimension_numbers<[2], [1], [1], [2], [0, 0, 0, 1, 1, 2], [0], [0]>} : vector<2x8x8xbf16>, vector<2x8x16xbf16>, vector<2x8x16xf32> -> vector<2x8x16xf32>
      "tpu.trace_stop"() : () -> ()
      %300 = vector.shape_cast %299 : vector<2x8x16xf32> to vector<16x16xf32>
      %301 = arith.truncf %300 : vector<16x16xf32> to vector<16x16xbf16>
      %c288_104 = arith.constant 288 : index
      %c0_105 = arith.constant 0 : index
      %302 = vector.load %arg3[%c288_104, %c0_105] : memref<1024x128xbf16, #tpu.memory_space<vmem>>, vector<16x32xbf16>
      %cst_106 = arith.constant dense<0.000000e+00> : vector<16x32xf32>
      %303 = tpu.matmul %301, %302, %cst_106 {dimension_numbers = #tpu.dot_dimension_numbers<[1], [0], [0], [1], [0, 0, 1, 1], [], []>} : vector<16x16xbf16>, vector<16x32xbf16>, vector<16x32xf32> -> vector<16x32xf32>
      %304 = arith.addf %265, %303 : vector<16x32xf32>
      %c304_107 = arith.constant 304 : index
      %c0_108 = arith.constant 0 : index
      %305 = vector.load %arg3[%c304_107, %c0_108] : memref<1024x128xbf16, #tpu.memory_space<vmem>>, vector<32x16xbf16>
      %cst_109 = arith.constant dense<0.000000e+00> : vector<16x16xf32>
      %306 = tpu.matmul %264, %305, %cst_109 {dimension_numbers = #tpu.dot_dimension_numbers<[1], [0], [0], [1], [0, 0, 1, 1], [], []>} : vector<16x32xbf16>, vector<32x16xbf16>, vector<16x16xf32> -> vector<16x16xf32>
      %c15_110 = arith.constant 15 : index
      %c0_111 = arith.constant 0 : index
      %307 = vector.load %arg4[%c15_110, %c0_111] : memref<48x128xf32, #tpu.memory_space<vmem>>, vector<1x16xf32>
      %308 = vector.broadcast %307 : vector<1x16xf32> to vector<16x16xf32>
      %309 = arith.addf %306, %308 : vector<16x16xf32>
      %c336_112 = arith.constant 336 : index
      %c0_113 = arith.constant 0 : index
      %310 = vector.load %arg3[%c336_112, %c0_113] : memref<1024x128xbf16, #tpu.memory_space<vmem>>, vector<32x16xbf16>
      %cst_114 = arith.constant dense<0.000000e+00> : vector<16x16xf32>
      %311 = tpu.matmul %264, %310, %cst_114 {dimension_numbers = #tpu.dot_dimension_numbers<[1], [0], [0], [1], [0, 0, 1, 1], [], []>} : vector<16x32xbf16>, vector<32x16xbf16>, vector<16x16xf32> -> vector<16x16xf32>
      %c16_115 = arith.constant 16 : index
      %c0_116 = arith.constant 0 : index
      %312 = vector.load %arg4[%c16_115, %c0_116] : memref<48x128xf32, #tpu.memory_space<vmem>>, vector<1x16xf32>
      %313 = vector.broadcast %312 : vector<1x16xf32> to vector<16x16xf32>
      %314 = arith.addf %311, %313 : vector<16x16xf32>
      %c368_117 = arith.constant 368 : index
      %c0_118 = arith.constant 0 : index
      %315 = vector.load %arg3[%c368_117, %c0_118] : memref<1024x128xbf16, #tpu.memory_space<vmem>>, vector<32x16xbf16>
      %cst_119 = arith.constant dense<0.000000e+00> : vector<16x16xf32>
      %316 = tpu.matmul %264, %315, %cst_119 {dimension_numbers = #tpu.dot_dimension_numbers<[1], [0], [0], [1], [0, 0, 1, 1], [], []>} : vector<16x32xbf16>, vector<32x16xbf16>, vector<16x16xf32> -> vector<16x16xf32>
      %c17_120 = arith.constant 17 : index
      %c0_121 = arith.constant 0 : index
      %317 = vector.load %arg4[%c17_120, %c0_121] : memref<48x128xf32, #tpu.memory_space<vmem>>, vector<1x16xf32>
      %318 = vector.broadcast %317 : vector<1x16xf32> to vector<16x16xf32>
      %319 = arith.addf %316, %318 : vector<16x16xf32>
      %320 = vector.shape_cast %309 : vector<16x16xf32> to vector<2x8x16xf32>
      %321 = vector.shape_cast %314 : vector<16x16xf32> to vector<2x8x16xf32>
      %322 = vector.shape_cast %319 : vector<16x16xf32> to vector<2x8x16xf32>
      %323 = arith.truncf %320 : vector<2x8x16xf32> to vector<2x8x16xbf16>
      %324 = arith.truncf %321 : vector<2x8x16xf32> to vector<2x8x16xbf16>
      "tpu.trace_start"() <{level = 10 : i32, message = "bqd,bkd->bqk"}> : () -> ()
      %cst_122 = arith.constant dense<0.000000e+00> : vector<2x8x8xf32>
      %325 = tpu.matmul %323, %324, %cst_122 {dimension_numbers = #tpu.dot_dimension_numbers<[2], [2], [1], [1], [0, 0, 0, 1, 1, 1], [0], [0]>} : vector<2x8x16xbf16>, vector<2x8x16xbf16>, vector<2x8x8xf32> -> vector<2x8x8xf32>
      "tpu.trace_stop"() : () -> ()
      %cst_123 = arith.constant 2.500000e-01 : f32
      %326 = vector.broadcast %cst_123 : f32 to vector<2x8x8xf32>
      %327 = arith.mulf %325, %326 : vector<2x8x8xf32>
      %328 = vector.broadcast %11 : vector<1x8x8xf32> to vector<2x8x8xf32>
      %329 = arith.addf %327, %328 : vector<2x8x8xf32>
      %330 = math.exp %329 : vector<2x8x8xf32>
      %cst_124 = arith.constant dense<0.000000e+00> : vector<2x8xf32>
      %331 = vector.multi_reduction <add>, %330, %cst_124 [2] : vector<2x8x8xf32> to vector<2x8xf32>
      %332 = vector.shape_cast %331 : vector<2x8xf32> to vector<2x8x1xf32>
      %333 = tpu.reciprocal %332 {approx = true} : vector<2x8x1xf32> -> vector<2x8x1xf32>
      %334 = vector.broadcast %333 : vector<2x8x1xf32> to vector<2x8x8xf32>
      %335 = arith.mulf %330, %334 : vector<2x8x8xf32>
      %336 = arith.truncf %335 : vector<2x8x8xf32> to vector<2x8x8xbf16>
      %337 = arith.truncf %322 : vector<2x8x16xf32> to vector<2x8x16xbf16>
      "tpu.trace_start"() <{level = 10 : i32, message = "bqk,bkd->bqd"}> : () -> ()
      %cst_125 = arith.constant dense<0.000000e+00> : vector<2x8x16xf32>
      %338 = tpu.matmul %336, %337, %cst_125 {dimension_numbers = #tpu.dot_dimension_numbers<[2], [1], [1], [2], [0, 0, 0, 1, 1, 2], [0], [0]>} : vector<2x8x8xbf16>, vector<2x8x16xbf16>, vector<2x8x16xf32> -> vector<2x8x16xf32>
      "tpu.trace_stop"() : () -> ()
      %339 = vector.shape_cast %338 : vector<2x8x16xf32> to vector<16x16xf32>
      %340 = arith.truncf %339 : vector<16x16xf32> to vector<16x16xbf16>
      %c400_126 = arith.constant 400 : index
      %c0_127 = arith.constant 0 : index
      %341 = vector.load %arg3[%c400_126, %c0_127] : memref<1024x128xbf16, #tpu.memory_space<vmem>>, vector<16x32xbf16>
      %cst_128 = arith.constant dense<0.000000e+00> : vector<16x32xf32>
      %342 = tpu.matmul %340, %341, %cst_128 {dimension_numbers = #tpu.dot_dimension_numbers<[1], [0], [0], [1], [0, 0, 1, 1], [], []>} : vector<16x16xbf16>, vector<16x32xbf16>, vector<16x32xf32> -> vector<16x32xf32>
      %343 = arith.addf %304, %342 : vector<16x32xf32>
      %c18_129 = arith.constant 18 : index
      %c0_130 = arith.constant 0 : index
      %344 = vector.load %arg4[%c18_129, %c0_130] : memref<48x128xf32, #tpu.memory_space<vmem>>, vector<1x32xf32>
      %345 = vector.broadcast %344 : vector<1x32xf32> to vector<16x32xf32>
      %346 = arith.addf %343, %345 : vector<16x32xf32>
      %347 = vector.shape_cast %346 : vector<16x32xf32> to vector<2x8x32xf32>
      %348 = arith.addf %236, %347 : vector<2x8x32xf32>
      %c19_131 = arith.constant 19 : index
      %c0_132 = arith.constant 0 : index
      %349 = vector.load %arg4[%c19_131, %c0_132] : memref<48x128xf32, #tpu.memory_space<vmem>>, vector<1x32xf32>
      %c20_133 = arith.constant 20 : index
      %c0_134 = arith.constant 0 : index
      %350 = vector.load %arg4[%c20_133, %c0_134] : memref<48x128xf32, #tpu.memory_space<vmem>>, vector<1x32xf32>
      %351 = vector.shape_cast %349 : vector<1x32xf32> to vector<1x1x32xf32>
      %352 = vector.shape_cast %350 : vector<1x32xf32> to vector<1x1x32xf32>
      %cst_135 = arith.constant dense<0.000000e+00> : vector<2x8xf32>
      %353 = vector.multi_reduction <add>, %348, %cst_135 [2] : vector<2x8x32xf32> to vector<2x8xf32>
      %354 = vector.shape_cast %353 : vector<2x8xf32> to vector<2x8x1xf32>
      %cst_136 = arith.constant 3.200000e+01 : f32
      %355 = vector.broadcast %cst_136 : f32 to vector<2x8x1xf32>
      %356 = arith.divf %354, %355 : vector<2x8x1xf32>
      %357 = vector.broadcast %356 : vector<2x8x1xf32> to vector<2x8x32xf32>
      %358 = arith.subf %348, %357 : vector<2x8x32xf32>
      %359 = arith.mulf %358, %358 : vector<2x8x32xf32>
      %cst_137 = arith.constant dense<0.000000e+00> : vector<2x8xf32>
      %360 = vector.multi_reduction <add>, %359, %cst_137 [2] : vector<2x8x32xf32> to vector<2x8xf32>
      %361 = vector.shape_cast %360 : vector<2x8xf32> to vector<2x8x1xf32>
      %cst_138 = arith.constant 3.200000e+01 : f32
      %362 = vector.broadcast %cst_138 : f32 to vector<2x8x1xf32>
      %363 = arith.divf %361, %362 : vector<2x8x1xf32>
      %364 = vector.broadcast %356 : vector<2x8x1xf32> to vector<2x8x32xf32>
      %365 = arith.subf %348, %364 : vector<2x8x32xf32>
      %cst_139 = arith.constant 9.99999974E-6 : f32
      %366 = vector.broadcast %cst_139 : f32 to vector<2x8x1xf32>
      %367 = arith.addf %363, %366 : vector<2x8x1xf32>
      %368 = math.rsqrt %367 : vector<2x8x1xf32>
      %369 = vector.broadcast %368 : vector<2x8x1xf32> to vector<2x8x32xf32>
      %370 = arith.mulf %365, %369 : vector<2x8x32xf32>
      %371 = vector.broadcast %351 : vector<1x1x32xf32> to vector<2x8x32xf32>
      %372 = arith.mulf %370, %371 : vector<2x8x32xf32>
      %373 = vector.broadcast %352 : vector<1x1x32xf32> to vector<2x8x32xf32>
      %374 = arith.addf %372, %373 : vector<2x8x32xf32>
      %375 = vector.shape_cast %374 : vector<2x8x32xf32> to vector<16x32xf32>
      %376 = arith.truncf %375 : vector<16x32xf32> to vector<16x32xbf16>
      %c416_140 = arith.constant 416 : index
      %c0_141 = arith.constant 0 : index
      %377 = vector.load %arg3[%c416_140, %c0_141] : memref<1024x128xbf16, #tpu.memory_space<vmem>>, vector<32x128xbf16>
      %cst_142 = arith.constant dense<0.000000e+00> : vector<16x128xf32>
      %378 = tpu.matmul %376, %377, %cst_142 {dimension_numbers = #tpu.dot_dimension_numbers<[1], [0], [0], [1], [0, 0, 1, 1], [], []>} : vector<16x32xbf16>, vector<32x128xbf16>, vector<16x128xf32> -> vector<16x128xf32>
      %c21_143 = arith.constant 21 : index
      %c0_144 = arith.constant 0 : index
      %379 = vector.load %arg4[%c21_143, %c0_144] : memref<48x128xf32, #tpu.memory_space<vmem>>, vector<1x128xf32>
      %380 = vector.broadcast %379 : vector<1x128xf32> to vector<16x128xf32>
      %381 = arith.addf %378, %380 : vector<16x128xf32>
      %cst_145 = arith.constant 1.702000e+00 : f32
      %382 = vector.broadcast %cst_145 : f32 to vector<16x128xf32>
      %383 = arith.mulf %382, %381 : vector<16x128xf32>
      %384 = arith.negf %383 : vector<16x128xf32>
      %385 = math.exp %384 : vector<16x128xf32>
      %cst_146 = arith.constant 1.000000e+00 : f32
      %386 = vector.broadcast %cst_146 : f32 to vector<16x128xf32>
      %387 = arith.addf %386, %385 : vector<16x128xf32>
      %388 = arith.divf %386, %387 : vector<16x128xf32>
      %389 = arith.mulf %381, %388 : vector<16x128xf32>
      %390 = arith.truncf %389 : vector<16x128xf32> to vector<16x128xbf16>
      %c448_147 = arith.constant 448 : index
      %c0_148 = arith.constant 0 : index
      %391 = vector.load %arg3[%c448_147, %c0_148] : memref<1024x128xbf16, #tpu.memory_space<vmem>>, vector<128x32xbf16>
      %cst_149 = arith.constant dense<0.000000e+00> : vector<16x32xf32>
      %392 = tpu.matmul %390, %391, %cst_149 {dimension_numbers = #tpu.dot_dimension_numbers<[1], [0], [0], [1], [0, 0, 1, 1], [], []>} : vector<16x128xbf16>, vector<128x32xbf16>, vector<16x32xf32> -> vector<16x32xf32>
      %c22_150 = arith.constant 22 : index
      %c0_151 = arith.constant 0 : index
      %393 = vector.load %arg4[%c22_150, %c0_151] : memref<48x128xf32, #tpu.memory_space<vmem>>, vector<1x32xf32>
      %394 = vector.broadcast %393 : vector<1x32xf32> to vector<16x32xf32>
      %395 = arith.addf %392, %394 : vector<16x32xf32>
      %396 = vector.shape_cast %395 : vector<16x32xf32> to vector<2x8x32xf32>
      %397 = arith.addf %348, %396 : vector<2x8x32xf32>
      %398 = vector.extract_strided_slice %397 {offsets = [0, 0, 0], sizes = [2, 1, 32], strides = [1, 1, 1]} : vector<2x8x32xf32> to vector<2x1x32xf32>
      %399 = vector.shape_cast %398 : vector<2x1x32xf32> to vector<2x32xf32>
      %c23 = arith.constant 23 : index
      %c0_152 = arith.constant 0 : index
      %400 = vector.load %arg4[%c23, %c0_152] : memref<48x128xf32, #tpu.memory_space<vmem>>, vector<1x32xf32>
      %c24 = arith.constant 24 : index
      %c0_153 = arith.constant 0 : index
      %401 = vector.load %arg4[%c24, %c0_153] : memref<48x128xf32, #tpu.memory_space<vmem>>, vector<1x32xf32>
      %cst_154 = arith.constant dense<0.000000e+00> : vector<2xf32>
      %402 = vector.multi_reduction <add>, %399, %cst_154 [1] : vector<2x32xf32> to vector<2xf32>
      %403 = vector.shape_cast %402 : vector<2xf32> to vector<2x1xf32>
      %cst_155 = arith.constant 3.200000e+01 : f32
      %404 = vector.broadcast %cst_155 : f32 to vector<2x1xf32>
      %405 = arith.divf %403, %404 : vector<2x1xf32>
      %406 = vector.broadcast %405 : vector<2x1xf32> to vector<2x32xf32>
      %407 = arith.subf %399, %406 : vector<2x32xf32>
      %408 = arith.mulf %407, %407 : vector<2x32xf32>
      %cst_156 = arith.constant dense<0.000000e+00> : vector<2xf32>
      %409 = vector.multi_reduction <add>, %408, %cst_156 [1] : vector<2x32xf32> to vector<2xf32>
      %410 = vector.shape_cast %409 : vector<2xf32> to vector<2x1xf32>
      %cst_157 = arith.constant 3.200000e+01 : f32
      %411 = vector.broadcast %cst_157 : f32 to vector<2x1xf32>
      %412 = arith.divf %410, %411 : vector<2x1xf32>
      %413 = vector.broadcast %405 : vector<2x1xf32> to vector<2x32xf32>
      %414 = arith.subf %399, %413 : vector<2x32xf32>
      %cst_158 = arith.constant 9.99999974E-6 : f32
      %415 = vector.broadcast %cst_158 : f32 to vector<2x1xf32>
      %416 = arith.addf %412, %415 : vector<2x1xf32>
      %417 = math.rsqrt %416 : vector<2x1xf32>
      %418 = vector.broadcast %417 : vector<2x1xf32> to vector<2x32xf32>
      %419 = arith.mulf %414, %418 : vector<2x32xf32>
      %420 = vector.broadcast %400 : vector<1x32xf32> to vector<2x32xf32>
      %421 = arith.mulf %419, %420 : vector<2x32xf32>
      %422 = vector.broadcast %401 : vector<1x32xf32> to vector<2x32xf32>
      %423 = arith.addf %421, %422 : vector<2x32xf32>
      %424 = arith.truncf %423 : vector<2x32xf32> to vector<2x32xbf16>
      %c576 = arith.constant 576 : index
      %c0_159 = arith.constant 0 : index
      %425 = vector.load %arg3[%c576, %c0_159] : memref<1024x128xbf16, #tpu.memory_space<vmem>>, vector<32x128xbf16>
      %cst_160 = arith.constant dense<0.000000e+00> : vector<2x128xf32>
      %426 = tpu.matmul %424, %425, %cst_160 {dimension_numbers = #tpu.dot_dimension_numbers<[1], [0], [0], [1], [0, 0, 1, 1], [], []>} : vector<2x32xbf16>, vector<32x128xbf16>, vector<2x128xf32> -> vector<2x128xf32>
      %427 = arith.mulf %426, %426 : vector<2x128xf32>
      %cst_161 = arith.constant dense<0.000000e+00> : vector<2xf32>
      %428 = vector.multi_reduction <add>, %427, %cst_161 [1] : vector<2x128xf32> to vector<2xf32>
      %429 = vector.shape_cast %428 : vector<2xf32> to vector<2x1xf32>
      %cst_162 = arith.constant 1.000000e-24 : f32
      %430 = vector.broadcast %cst_162 : f32 to vector<2x1xf32>
      %431 = arith.maximumf %429, %430 : vector<2x1xf32>
      %432 = math.rsqrt %431 : vector<2x1xf32>
      %433 = vector.broadcast %432 : vector<2x1xf32> to vector<2x128xf32>
      %434 = arith.mulf %426, %433 : vector<2x128xf32>
      %435 = vector.shape_cast %434 : vector<2x128xf32> to vector<1x2x128xf32>
      %c0_163 = arith.constant 0 : index
      %c0_164 = arith.constant 0 : index
      %c0_165 = arith.constant 0 : index
      %436 = vector.load %arg5[%c0_163, %c0_164, %c0_165] : memref<1x2x128xf32, #tpu.memory_space<vmem>>, vector<1x2x128xf32>
      tpu.vector_store %arg5[%c0_163, %c0_164, %c0_165], %435 {strides = array<i32>} : memref<1x2x128xf32, #tpu.memory_space<vmem>>, vector<1x2x128xf32>,
    } else {
    }
    %c1_i32 = arith.constant 1 : i32
    %3 = arith.cmpi eq, %arg0, %c1_i32 : i32
    %4 = arith.extui %3 : i1 to i32
    %c0_i32_1 = arith.constant 0 : i32
    %5 = arith.cmpi ne, %4, %c0_i32_1 : i32
    scf.if %5 {
      %6 = tpu.iota {dimensions = array<i32: 1>} : vector<1x8x8xi32>
      %7 = tpu.iota {dimensions = array<i32: 2>} : vector<1x8x8xi32>
      %8 = arith.cmpi sle, %7, %6 : vector<1x8x8xi32>
      %cst = arith.constant 0.000000e+00 : f32
      %cst_2 = arith.constant -1.000000e+30 : f32
      %9 = vector.broadcast %cst : f32 to vector<1x8x8xf32>
      %10 = vector.broadcast %cst_2 : f32 to vector<1x8x8xf32>
      %11 = arith.select %8, %9, %10 : vector<1x8x8xi1>, vector<1x8x8xf32>
      %c0 = arith.constant 0 : index
      %c0_3 = arith.constant 0 : index
      %12 = vector.load %arg2[%c0, %c0_3] : memref<18x32xf32, #tpu.memory_space<vmem>>, vector<16x32xf32>
      %13 = vector.shape_cast %12 : vector<16x32xf32> to vector<2x8x32xf32>
      %c25 = arith.constant 25 : index
      %c0_4 = arith.constant 0 : index
      %14 = vector.load %arg4[%c25, %c0_4] : memref<48x128xf32, #tpu.memory_space<vmem>>, vector<8x32xf32>
      %15 = vector.shape_cast %14 : vector<8x32xf32> to vector<1x8x32xf32>
      %16 = vector.broadcast %15 : vector<1x8x32xf32> to vector<2x8x32xf32>
      %17 = arith.addf %13, %16 : vector<2x8x32xf32>
      %c33 = arith.constant 33 : index
      %c0_5 = arith.constant 0 : index
      %18 = vector.load %arg4[%c33, %c0_5] : memref<48x128xf32, #tpu.memory_space<vmem>>, vector<1x32xf32>
      %c34 = arith.constant 34 : index
      %c0_6 = arith.constant 0 : index
      %19 = vector.load %arg4[%c34, %c0_6] : memref<48x128xf32, #tpu.memory_space<vmem>>, vector<1x32xf32>
      %20 = vector.shape_cast %18 : vector<1x32xf32> to vector<1x1x32xf32>
      %21 = vector.shape_cast %19 : vector<1x32xf32> to vector<1x1x32xf32>
      %cst_7 = arith.constant dense<0.000000e+00> : vector<2x8xf32>
      %22 = vector.multi_reduction <add>, %17, %cst_7 [2] : vector<2x8x32xf32> to vector<2x8xf32>
      %23 = vector.shape_cast %22 : vector<2x8xf32> to vector<2x8x1xf32>
      %cst_8 = arith.constant 3.200000e+01 : f32
      %24 = vector.broadcast %cst_8 : f32 to vector<2x8x1xf32>
      %25 = arith.divf %23, %24 : vector<2x8x1xf32>
      %26 = vector.broadcast %25 : vector<2x8x1xf32> to vector<2x8x32xf32>
      %27 = arith.subf %17, %26 : vector<2x8x32xf32>
      %28 = arith.mulf %27, %27 : vector<2x8x32xf32>
      %cst_9 = arith.constant dense<0.000000e+00> : vector<2x8xf32>
      %29 = vector.multi_reduction <add>, %28, %cst_9 [2] : vector<2x8x32xf32> to vector<2x8xf32>
      %30 = vector.shape_cast %29 : vector<2x8xf32> to vector<2x8x1xf32>
      %cst_10 = arith.constant 3.200000e+01 : f32
      %31 = vector.broadcast %cst_10 : f32 to vector<2x8x1xf32>
      %32 = arith.divf %30, %31 : vector<2x8x1xf32>
      %33 = vector.broadcast %25 : vector<2x8x1xf32> to vector<2x8x32xf32>
      %34 = arith.subf %17, %33 : vector<2x8x32xf32>
      %cst_11 = arith.constant 9.99999974E-6 : f32
      %35 = vector.broadcast %cst_11 : f32 to vector<2x8x1xf32>
      %36 = arith.addf %32, %35 : vector<2x8x1xf32>
      %37 = math.rsqrt %36 : vector<2x8x1xf32>
      %38 = vector.broadcast %37 : vector<2x8x1xf32> to vector<2x8x32xf32>
      %39 = arith.mulf %34, %38 : vector<2x8x32xf32>
      %40 = vector.broadcast %20 : vector<1x1x32xf32> to vector<2x8x32xf32>
      %41 = arith.mulf %39, %40 : vector<2x8x32xf32>
      %42 = vector.broadcast %21 : vector<1x1x32xf32> to vector<2x8x32xf32>
      %43 = arith.addf %41, %42 : vector<2x8x32xf32>
      %44 = vector.shape_cast %43 : vector<2x8x32xf32> to vector<16x32xf32>
      %45 = arith.truncf %44 : vector<16x32xf32> to vector<16x32xbf16>
      %cst_12 = arith.constant 0.000000e+00 : f32
      %46 = vector.broadcast %cst_12 : f32 to vector<16x32xf32>
      %c608 = arith.constant 608 : index
      %c0_13 = arith.constant 0 : index
      %47 = vector.load %arg3[%c608, %c0_13] : memref<1024x128xbf16, #tpu.memory_space<vmem>>, vector<32x16xbf16>
      %cst_14 = arith.constant dense<0.000000e+00> : vector<16x16xf32>
      %48 = tpu.matmul %45, %47, %cst_14 {dimension_numbers = #tpu.dot_dimension_numbers<[1], [0], [0], [1], [0, 0, 1, 1], [], []>} : vector<16x32xbf16>, vector<32x16xbf16>, vector<16x16xf32> -> vector<16x16xf32>
      %c35 = arith.constant 35 : index
      %c0_15 = arith.constant 0 : index
      %49 = vector.load %arg4[%c35, %c0_15] : memref<48x128xf32, #tpu.memory_space<vmem>>, vector<1x16xf32>
      %50 = vector.broadcast %49 : vector<1x16xf32> to vector<16x16xf32>
      %51 = arith.addf %48, %50 : vector<16x16xf32>
      %c640 = arith.constant 640 : index
      %c0_16 = arith.constant 0 : index
      %52 = vector.load %arg3[%c640, %c0_16] : memref<1024x128xbf16, #tpu.memory_space<vmem>>, vector<32x16xbf16>
      %cst_17 = arith.constant dense<0.000000e+00> : vector<16x16xf32>
      %53 = tpu.matmul %45, %52, %cst_17 {dimension_numbers = #tpu.dot_dimension_numbers<[1], [0], [0], [1], [0, 0, 1, 1], [], []>} : vector<16x32xbf16>, vector<32x16xbf16>, vector<16x16xf32> -> vector<16x16xf32>
      %c36 = arith.constant 36 : index
      %c0_18 = arith.constant 0 : index
      %54 = vector.load %arg4[%c36, %c0_18] : memref<48x128xf32, #tpu.memory_space<vmem>>, vector<1x16xf32>
      %55 = vector.broadcast %54 : vector<1x16xf32> to vector<16x16xf32>
      %56 = arith.addf %53, %55 : vector<16x16xf32>
      %c672 = arith.constant 672 : index
      %c0_19 = arith.constant 0 : index
      %57 = vector.load %arg3[%c672, %c0_19] : memref<1024x128xbf16, #tpu.memory_space<vmem>>, vector<32x16xbf16>
      %cst_20 = arith.constant dense<0.000000e+00> : vector<16x16xf32>
      %58 = tpu.matmul %45, %57, %cst_20 {dimension_numbers = #tpu.dot_dimension_numbers<[1], [0], [0], [1], [0, 0, 1, 1], [], []>} : vector<16x32xbf16>, vector<32x16xbf16>, vector<16x16xf32> -> vector<16x16xf32>
      %c37 = arith.constant 37 : index
      %c0_21 = arith.constant 0 : index
      %59 = vector.load %arg4[%c37, %c0_21] : memref<48x128xf32, #tpu.memory_space<vmem>>, vector<1x16xf32>
      %60 = vector.broadcast %59 : vector<1x16xf32> to vector<16x16xf32>
      %61 = arith.addf %58, %60 : vector<16x16xf32>
      %62 = vector.shape_cast %51 : vector<16x16xf32> to vector<2x8x16xf32>
      %63 = vector.shape_cast %56 : vector<16x16xf32> to vector<2x8x16xf32>
      %64 = vector.shape_cast %61 : vector<16x16xf32> to vector<2x8x16xf32>
      %65 = arith.truncf %62 : vector<2x8x16xf32> to vector<2x8x16xbf16>
      %66 = arith.truncf %63 : vector<2x8x16xf32> to vector<2x8x16xbf16>
      "tpu.trace_start"() <{level = 10 : i32, message = "bqd,bkd->bqk"}> : () -> ()
      %cst_22 = arith.constant dense<0.000000e+00> : vector<2x8x8xf32>
      %67 = tpu.matmul %65, %66, %cst_22 {dimension_numbers = #tpu.dot_dimension_numbers<[2], [2], [1], [1], [0, 0, 0, 1, 1, 1], [0], [0]>} : vector<2x8x16xbf16>, vector<2x8x16xbf16>, vector<2x8x8xf32> -> vector<2x8x8xf32>
      "tpu.trace_stop"() : () -> ()
      %cst_23 = arith.constant 2.500000e-01 : f32
      %68 = vector.broadcast %cst_23 : f32 to vector<2x8x8xf32>
      %69 = arith.mulf %67, %68 : vector<2x8x8xf32>
      %70 = vector.broadcast %11 : vector<1x8x8xf32> to vector<2x8x8xf32>
      %71 = arith.addf %69, %70 : vector<2x8x8xf32>
      %72 = math.exp %71 : vector<2x8x8xf32>
      %cst_24 = arith.constant dense<0.000000e+00> : vector<2x8xf32>
      %73 = vector.multi_reduction <add>, %72, %cst_24 [2] : vector<2x8x8xf32> to vector<2x8xf32>
      %74 = vector.shape_cast %73 : vector<2x8xf32> to vector<2x8x1xf32>
      %75 = tpu.reciprocal %74 {approx = true} : vector<2x8x1xf32> -> vector<2x8x1xf32>
      %76 = vector.broadcast %75 : vector<2x8x1xf32> to vector<2x8x8xf32>
      %77 = arith.mulf %72, %76 : vector<2x8x8xf32>
      %78 = arith.truncf %77 : vector<2x8x8xf32> to vector<2x8x8xbf16>
      %79 = arith.truncf %64 : vector<2x8x16xf32> to vector<2x8x16xbf16>
      "tpu.trace_start"() <{level = 10 : i32, message = "bqk,bkd->bqd"}> : () -> ()
      %cst_25 = arith.constant dense<0.000000e+00> : vector<2x8x16xf32>
      %80 = tpu.matmul %78, %79, %cst_25 {dimension_numbers = #tpu.dot_dimension_numbers<[2], [1], [1], [2], [0, 0, 0, 1, 1, 2], [0], [0]>} : vector<2x8x8xbf16>, vector<2x8x16xbf16>, vector<2x8x16xf32> -> vector<2x8x16xf32>
      "tpu.trace_stop"() : () -> ()
      %81 = vector.shape_cast %80 : vector<2x8x16xf32> to vector<16x16xf32>
      %82 = arith.truncf %81 : vector<16x16xf32> to vector<16x16xbf16>
      %c704 = arith.constant 704 : index
      %c0_26 = arith.constant 0 : index
      %83 = vector.load %arg3[%c704, %c0_26] : memref<1024x128xbf16, #tpu.memory_space<vmem>>, vector<16x32xbf16>
      %cst_27 = arith.constant dense<0.000000e+00> : vector<16x32xf32>
      %84 = tpu.matmul %82, %83, %cst_27 {dimension_numbers = #tpu.dot_dimension_numbers<[1], [0], [0], [1], [0, 0, 1, 1], [], []>} : vector<16x16xbf16>, vector<16x32xbf16>, vector<16x32xf32> -> vector<16x32xf32>
      %85 = arith.addf %46, %84 : vector<16x32xf32>
      %c720 = arith.constant 720 : index
      %c0_28 = arith.constant 0 : index
      %86 = vector.load %arg3[%c720, %c0_28] : memref<1024x128xbf16, #tpu.memory_space<vmem>>, vector<32x16xbf16>
      %cst_29 = arith.constant dense<0.000000e+00> : vector<16x16xf32>
      %87 = tpu.matmul %45, %86, %cst_29 {dimension_numbers = #tpu.dot_dimension_numbers<[1], [0], [0], [1], [0, 0, 1, 1], [], []>} : vector<16x32xbf16>, vector<32x16xbf16>, vector<16x16xf32> -> vector<16x16xf32>
      %c38 = arith.constant 38 : index
      %c0_30 = arith.constant 0 : index
      %88 = vector.load %arg4[%c38, %c0_30] : memref<48x128xf32, #tpu.memory_space<vmem>>, vector<1x16xf32>
      %89 = vector.broadcast %88 : vector<1x16xf32> to vector<16x16xf32>
      %90 = arith.addf %87, %89 : vector<16x16xf32>
      %c752 = arith.constant 752 : index
      %c0_31 = arith.constant 0 : index
      %91 = vector.load %arg3[%c752, %c0_31] : memref<1024x128xbf16, #tpu.memory_space<vmem>>, vector<32x16xbf16>
      %cst_32 = arith.constant dense<0.000000e+00> : vector<16x16xf32>
      %92 = tpu.matmul %45, %91, %cst_32 {dimension_numbers = #tpu.dot_dimension_numbers<[1], [0], [0], [1], [0, 0, 1, 1], [], []>} : vector<16x32xbf16>, vector<32x16xbf16>, vector<16x16xf32> -> vector<16x16xf32>
      %c39 = arith.constant 39 : index
      %c0_33 = arith.constant 0 : index
      %93 = vector.load %arg4[%c39, %c0_33] : memref<48x128xf32, #tpu.memory_space<vmem>>, vector<1x16xf32>
      %94 = vector.broadcast %93 : vector<1x16xf32> to vector<16x16xf32>
      %95 = arith.addf %92, %94 : vector<16x16xf32>
      %c784 = arith.constant 784 : index
      %c0_34 = arith.constant 0 : index
      %96 = vector.load %arg3[%c784, %c0_34] : memref<1024x128xbf16, #tpu.memory_space<vmem>>, vector<32x16xbf16>
      %cst_35 = arith.constant dense<0.000000e+00> : vector<16x16xf32>
      %97 = tpu.matmul %45, %96, %cst_35 {dimension_numbers = #tpu.dot_dimension_numbers<[1], [0], [0], [1], [0, 0, 1, 1], [], []>} : vector<16x32xbf16>, vector<32x16xbf16>, vector<16x16xf32> -> vector<16x16xf32>
      %c40 = arith.constant 40 : index
      %c0_36 = arith.constant 0 : index
      %98 = vector.load %arg4[%c40, %c0_36] : memref<48x128xf32, #tpu.memory_space<vmem>>, vector<1x16xf32>
      %99 = vector.broadcast %98 : vector<1x16xf32> to vector<16x16xf32>
      %100 = arith.addf %97, %99 : vector<16x16xf32>
      %101 = vector.shape_cast %90 : vector<16x16xf32> to vector<2x8x16xf32>
      %102 = vector.shape_cast %95 : vector<16x16xf32> to vector<2x8x16xf32>
      %103 = vector.shape_cast %100 : vector<16x16xf32> to vector<2x8x16xf32>
      %104 = arith.truncf %101 : vector<2x8x16xf32> to vector<2x8x16xbf16>
      %105 = arith.truncf %102 : vector<2x8x16xf32> to vector<2x8x16xbf16>
      "tpu.trace_start"() <{level = 10 : i32, message = "bqd,bkd->bqk"}> : () -> ()
      %cst_37 = arith.constant dense<0.000000e+00> : vector<2x8x8xf32>
      %106 = tpu.matmul %104, %105, %cst_37 {dimension_numbers = #tpu.dot_dimension_numbers<[2], [2], [1], [1], [0, 0, 0, 1, 1, 1], [0], [0]>} : vector<2x8x16xbf16>, vector<2x8x16xbf16>, vector<2x8x8xf32> -> vector<2x8x8xf32>
      "tpu.trace_stop"() : () -> ()
      %cst_38 = arith.constant 2.500000e-01 : f32
      %107 = vector.broadcast %cst_38 : f32 to vector<2x8x8xf32>
      %108 = arith.mulf %106, %107 : vector<2x8x8xf32>
      %109 = vector.broadcast %11 : vector<1x8x8xf32> to vector<2x8x8xf32>
      %110 = arith.addf %108, %109 : vector<2x8x8xf32>
      %111 = math.exp %110 : vector<2x8x8xf32>
      %cst_39 = arith.constant dense<0.000000e+00> : vector<2x8xf32>
      %112 = vector.multi_reduction <add>, %111, %cst_39 [2] : vector<2x8x8xf32> to vector<2x8xf32>
      %113 = vector.shape_cast %112 : vector<2x8xf32> to vector<2x8x1xf32>
      %114 = tpu.reciprocal %113 {approx = true} : vector<2x8x1xf32> -> vector<2x8x1xf32>
      %115 = vector.broadcast %114 : vector<2x8x1xf32> to vector<2x8x8xf32>
      %116 = arith.mulf %111, %115 : vector<2x8x8xf32>
      %117 = arith.truncf %116 : vector<2x8x8xf32> to vector<2x8x8xbf16>
      %118 = arith.truncf %103 : vector<2x8x16xf32> to vector<2x8x16xbf16>
      "tpu.trace_start"() <{level = 10 : i32, message = "bqk,bkd->bqd"}> : () -> ()
      %cst_40 = arith.constant dense<0.000000e+00> : vector<2x8x16xf32>
      %119 = tpu.matmul %117, %118, %cst_40 {dimension_numbers = #tpu.dot_dimension_numbers<[2], [1], [1], [2], [0, 0, 0, 1, 1, 2], [0], [0]>} : vector<2x8x8xbf16>, vector<2x8x16xbf16>, vector<2x8x16xf32> -> vector<2x8x16xf32>
      "tpu.trace_stop"() : () -> ()
      %120 = vector.shape_cast %119 : vector<2x8x16xf32> to vector<16x16xf32>
      %121 = arith.truncf %120 : vector<16x16xf32> to vector<16x16xbf16>
      %c816 = arith.constant 816 : index
      %c0_41 = arith.constant 0 : index
      %122 = vector.load %arg3[%c816, %c0_41] : memref<1024x128xbf16, #tpu.memory_space<vmem>>, vector<16x32xbf16>
      %cst_42 = arith.constant dense<0.000000e+00> : vector<16x32xf32>
      %123 = tpu.matmul %121, %122, %cst_42 {dimension_numbers = #tpu.dot_dimension_numbers<[1], [0], [0], [1], [0, 0, 1, 1], [], []>} : vector<16x16xbf16>, vector<16x32xbf16>, vector<16x32xf32> -> vector<16x32xf32>
      %124 = arith.addf %85, %123 : vector<16x32xf32>
      %c41 = arith.constant 41 : index
      %c0_43 = arith.constant 0 : index
      %125 = vector.load %arg4[%c41, %c0_43] : memref<48x128xf32, #tpu.memory_space<vmem>>, vector<1x32xf32>
      %126 = vector.broadcast %125 : vector<1x32xf32> to vector<16x32xf32>
      %127 = arith.addf %124, %126 : vector<16x32xf32>
      %128 = vector.shape_cast %127 : vector<16x32xf32> to vector<2x8x32xf32>
      %129 = arith.addf %17, %128 : vector<2x8x32xf32>
      %c42 = arith.constant 42 : index
      %c0_44 = arith.constant 0 : index
      %130 = vector.load %arg4[%c42, %c0_44] : memref<48x128xf32, #tpu.memory_space<vmem>>, vector<1x32xf32>
      %c43 = arith.constant 43 : index
      %c0_45 = arith.constant 0 : index
      %131 = vector.load %arg4[%c43, %c0_45] : memref<48x128xf32, #tpu.memory_space<vmem>>, vector<1x32xf32>
      %132 = vector.shape_cast %130 : vector<1x32xf32> to vector<1x1x32xf32>
      %133 = vector.shape_cast %131 : vector<1x32xf32> to vector<1x1x32xf32>
      %cst_46 = arith.constant dense<0.000000e+00> : vector<2x8xf32>
      %134 = vector.multi_reduction <add>, %129, %cst_46 [2] : vector<2x8x32xf32> to vector<2x8xf32>
      %135 = vector.shape_cast %134 : vector<2x8xf32> to vector<2x8x1xf32>
      %cst_47 = arith.constant 3.200000e+01 : f32
      %136 = vector.broadcast %cst_47 : f32 to vector<2x8x1xf32>
      %137 = arith.divf %135, %136 : vector<2x8x1xf32>
      %138 = vector.broadcast %137 : vector<2x8x1xf32> to vector<2x8x32xf32>
      %139 = arith.subf %129, %138 : vector<2x8x32xf32>
      %140 = arith.mulf %139, %139 : vector<2x8x32xf32>
      %cst_48 = arith.constant dense<0.000000e+00> : vector<2x8xf32>
      %141 = vector.multi_reduction <add>, %140, %cst_48 [2] : vector<2x8x32xf32> to vector<2x8xf32>
      %142 = vector.shape_cast %141 : vector<2x8xf32> to vector<2x8x1xf32>
      %cst_49 = arith.constant 3.200000e+01 : f32
      %143 = vector.broadcast %cst_49 : f32 to vector<2x8x1xf32>
      %144 = arith.divf %142, %143 : vector<2x8x1xf32>
      %145 = vector.broadcast %137 : vector<2x8x1xf32> to vector<2x8x32xf32>
      %146 = arith.subf %129, %145 : vector<2x8x32xf32>
      %cst_50 = arith.constant 9.99999974E-6 : f32
      %147 = vector.broadcast %cst_50 : f32 to vector<2x8x1xf32>
      %148 = arith.addf %144, %147 : vector<2x8x1xf32>
      %149 = math.rsqrt %148 : vector<2x8x1xf32>
      %150 = vector.broadcast %149 : vector<2x8x1xf32> to vector<2x8x32xf32>
      %151 = arith.mulf %146, %150 : vector<2x8x32xf32>
      %152 = vector.broadcast %132 : vector<1x1x32xf32> to vector<2x8x32xf32>
      %153 = arith.mulf %151, %152 : vector<2x8x32xf32>
      %154 = vector.broadcast %133 : vector<1x1x32xf32> to vector<2x8x32xf32>
      %155 = arith.addf %153, %154 : vector<2x8x32xf32>
      %156 = vector.shape_cast %155 : vector<2x8x32xf32> to vector<16x32xf32>
      %157 = arith.truncf %156 : vector<16x32xf32> to vector<16x32xbf16>
      %c832 = arith.constant 832 : index
      %c0_51 = arith.constant 0 : index
      %158 = vector.load %arg3[%c832, %c0_51] : memref<1024x128xbf16, #tpu.memory_space<vmem>>, vector<32x128xbf16>
      %cst_52 = arith.constant dense<0.000000e+00> : vector<16x128xf32>
      %159 = tpu.matmul %157, %158, %cst_52 {dimension_numbers = #tpu.dot_dimension_numbers<[1], [0], [0], [1], [0, 0, 1, 1], [], []>} : vector<16x32xbf16>, vector<32x128xbf16>, vector<16x128xf32> -> vector<16x128xf32>
      %c44 = arith.constant 44 : index
      %c0_53 = arith.constant 0 : index
      %160 = vector.load %arg4[%c44, %c0_53] : memref<48x128xf32, #tpu.memory_space<vmem>>, vector<1x128xf32>
      %161 = vector.broadcast %160 : vector<1x128xf32> to vector<16x128xf32>
      %162 = arith.addf %159, %161 : vector<16x128xf32>
      %cst_54 = arith.constant 1.702000e+00 : f32
      %163 = vector.broadcast %cst_54 : f32 to vector<16x128xf32>
      %164 = arith.mulf %163, %162 : vector<16x128xf32>
      %165 = arith.negf %164 : vector<16x128xf32>
      %166 = math.exp %165 : vector<16x128xf32>
      %cst_55 = arith.constant 1.000000e+00 : f32
      %167 = vector.broadcast %cst_55 : f32 to vector<16x128xf32>
      %168 = arith.addf %167, %166 : vector<16x128xf32>
      %169 = arith.divf %167, %168 : vector<16x128xf32>
      %170 = arith.mulf %162, %169 : vector<16x128xf32>
      %171 = arith.truncf %170 : vector<16x128xf32> to vector<16x128xbf16>
      %c864 = arith.constant 864 : index
      %c0_56 = arith.constant 0 : index
      %172 = vector.load %arg3[%c864, %c0_56] : memref<1024x128xbf16, #tpu.memory_space<vmem>>, vector<128x32xbf16>
      %cst_57 = arith.constant dense<0.000000e+00> : vector<16x32xf32>
      %173 = tpu.matmul %171, %172, %cst_57 {dimension_numbers = #tpu.dot_dimension_numbers<[1], [0], [0], [1], [0, 0, 1, 1], [], []>} : vector<16x128xbf16>, vector<128x32xbf16>, vector<16x32xf32> -> vector<16x32xf32>
      %c45 = arith.constant 45 : index
      %c0_58 = arith.constant 0 : index
      %174 = vector.load %arg4[%c45, %c0_58] : memref<48x128xf32, #tpu.memory_space<vmem>>, vector<1x32xf32>
      %175 = vector.broadcast %174 : vector<1x32xf32> to vector<16x32xf32>
      %176 = arith.addf %173, %175 : vector<16x32xf32>
      %177 = vector.shape_cast %176 : vector<16x32xf32> to vector<2x8x32xf32>
      %178 = arith.addf %129, %177 : vector<2x8x32xf32>
      %c46 = arith.constant 46 : index
      %c0_59 = arith.constant 0 : index
      %179 = vector.load %arg4[%c46, %c0_59] : memref<48x128xf32, #tpu.memory_space<vmem>>, vector<1x32xf32>
      %c47 = arith.constant 47 : index
      %c0_60 = arith.constant 0 : index
      %180 = vector.load %arg4[%c47, %c0_60] : memref<48x128xf32, #tpu.memory_space<vmem>>, vector<1x32xf32>
      %181 = vector.shape_cast %179 : vector<1x32xf32> to vector<1x1x32xf32>
      %182 = vector.shape_cast %180 : vector<1x32xf32> to vector<1x1x32xf32>
      %cst_61 = arith.constant dense<0.000000e+00> : vector<2x8xf32>
      %183 = vector.multi_reduction <add>, %178, %cst_61 [2] : vector<2x8x32xf32> to vector<2x8xf32>
      %184 = vector.shape_cast %183 : vector<2x8xf32> to vector<2x8x1xf32>
      %cst_62 = arith.constant 3.200000e+01 : f32
      %185 = vector.broadcast %cst_62 : f32 to vector<2x8x1xf32>
      %186 = arith.divf %184, %185 : vector<2x8x1xf32>
      %187 = vector.broadcast %186 : vector<2x8x1xf32> to vector<2x8x32xf32>
      %188 = arith.subf %178, %187 : vector<2x8x32xf32>
      %189 = arith.mulf %188, %188 : vector<2x8x32xf32>
      %cst_63 = arith.constant dense<0.000000e+00> : vector<2x8xf32>
      %190 = vector.multi_reduction <add>, %189, %cst_63 [2] : vector<2x8x32xf32> to vector<2x8xf32>
      %191 = vector.shape_cast %190 : vector<2x8xf32> to vector<2x8x1xf32>
      %cst_64 = arith.constant 3.200000e+01 : f32
      %192 = vector.broadcast %cst_64 : f32 to vector<2x8x1xf32>
      %193 = arith.divf %191, %192 : vector<2x8x1xf32>
      %194 = vector.broadcast %186 : vector<2x8x1xf32> to vector<2x8x32xf32>
      %195 = arith.subf %178, %194 : vector<2x8x32xf32>
      %cst_65 = arith.constant 9.99999974E-6 : f32
      %196 = vector.broadcast %cst_65 : f32 to vector<2x8x1xf32>
      %197 = arith.addf %193, %196 : vector<2x8x1xf32>
      %198 = math.rsqrt %197 : vector<2x8x1xf32>
      %199 = vector.broadcast %198 : vector<2x8x1xf32> to vector<2x8x32xf32>
      %200 = arith.mulf %195, %199 : vector<2x8x32xf32>
      %201 = vector.broadcast %181 : vector<1x1x32xf32> to vector<2x8x32xf32>
      %202 = arith.mulf %200, %201 : vector<2x8x32xf32>
      %203 = vector.broadcast %182 : vector<1x1x32xf32> to vector<2x8x32xf32>
      %204 = arith.addf %202, %203 : vector<2x8x32xf32>
      %c16 = arith.constant 16 : index
      %c0_66 = arith.constant 0 : index
      %205 = vector.load %arg2[%c16, %c0_66] : memref<18x32xf32, #tpu.memory_space<vmem>>, vector<2x8xf32>
      %206 = vector.shape_cast %205 : vector<2x8xf32> to vector<2x8x1xf32>
      %207 = vector.broadcast %206 : vector<2x8x1xf32> to vector<2x8x32xf32>
      %208 = arith.mulf %207, %204 : vector<2x8x32xf32>
      %cst_67 = arith.constant dense<0.000000e+00> : vector<2x32xf32>
      %209 = vector.multi_reduction <add>, %208, %cst_67 [1] : vector<2x8x32xf32> to vector<2x32xf32>
      %210 = arith.truncf %209 : vector<2x32xf32> to vector<2x32xbf16>
      %c992 = arith.constant 992 : index
      %c0_68 = arith.constant 0 : index
      %211 = vector.load %arg3[%c992, %c0_68] : memref<1024x128xbf16, #tpu.memory_space<vmem>>, vector<32x128xbf16>
      %cst_69 = arith.constant dense<0.000000e+00> : vector<2x128xf32>
      %212 = tpu.matmul %210, %211, %cst_69 {dimension_numbers = #tpu.dot_dimension_numbers<[1], [0], [0], [1], [0, 0, 1, 1], [], []>} : vector<2x32xbf16>, vector<32x128xbf16>, vector<2x128xf32> -> vector<2x128xf32>
      %213 = arith.mulf %212, %212 : vector<2x128xf32>
      %cst_70 = arith.constant dense<0.000000e+00> : vector<2xf32>
      %214 = vector.multi_reduction <add>, %213, %cst_70 [1] : vector<2x128xf32> to vector<2xf32>
      %215 = vector.shape_cast %214 : vector<2xf32> to vector<2x1xf32>
      %cst_71 = arith.constant 1.000000e-24 : f32
      %216 = vector.broadcast %cst_71 : f32 to vector<2x1xf32>
      %217 = arith.maximumf %215, %216 : vector<2x1xf32>
      %218 = math.rsqrt %217 : vector<2x1xf32>
      %219 = vector.broadcast %218 : vector<2x1xf32> to vector<2x128xf32>
      %220 = arith.mulf %212, %219 : vector<2x128xf32>
      %221 = vector.shape_cast %220 : vector<2x128xf32> to vector<1x2x128xf32>
      %c0_72 = arith.constant 0 : index
      %c0_73 = arith.constant 0 : index
      %c0_74 = arith.constant 0 : index
      %222 = vector.load %arg5[%c0_72, %c0_73, %c0_74] : memref<1x2x128xf32, #tpu.memory_space<vmem>>, vector<1x2x128xf32>
      tpu.vector_store %arg5[%c0_72, %c0_73, %c0_74], %221 {strides = array<i32>} : memref<1x2x128xf32, #tpu.memory_space<vmem>>, vector<1x2x128xf32>,
    } else {
    }
    return
  }
  func.func @transform_0(%arg0: i32) -> (i32, i32) {
    %c0_i32 = arith.constant 0 : i32
    %c0_i32_0 = arith.constant 0 : i32
    %c0_i32_1 = arith.constant 0 : i32
    return %c0_i32, %c0_i32_0 : i32, i32
  }
  func.func @transform_1(%arg0: i32) -> (i32, i32) {
    %c0_i32 = arith.constant 0 : i32
    %c0_i32_0 = arith.constant 0 : i32
    %c0_i32_1 = arith.constant 0 : i32
    return %c0_i32, %c0_i32_0 : i32, i32
  }
  func.func @transform_2(%arg0: i32) -> (i32, i32) {
    %c0_i32 = arith.constant 0 : i32
    %c0_i32_0 = arith.constant 0 : i32
    %c0_i32_1 = arith.constant 0 : i32
    return %c0_i32, %c0_i32_0 : i32, i32
  }
  func.func @transform_3(%arg0: i32) -> (i32, i32) {
    %c0_i32 = arith.constant 0 : i32
    %c0_i32_0 = arith.constant 0 : i32
    %c0_i32_1 = arith.constant 0 : i32
    return %c0_i32, %c0_i32_0 : i32, i32
  }
  func.func @transform_4(%arg0: i32) -> (i32, i32, i32) {
    %c0_i32 = arith.constant 0 : i32
    %c0_i32_0 = arith.constant 0 : i32
    %c0_i32_1 = arith.constant 0 : i32
    return %arg0, %c0_i32, %c0_i32_0 : i32, i32, i32
  }
}

</mosaic_0001>

<bundles_post_ra>
// kernel: fwd.1
= control target key start
LH: loop header
LB: loop body
LE: loop exit
PB: predicated region body
PF: predicated region fallthrough
CT: control target
= control target key end

     0   :  { %s5385_s15 = smov 0   ;;  %s6380_s0 = inlined_call_operand.vmem [shape: bf16[32,192], index: 0, kind: input, shape index: {}]   ;;  %s6381_s1 = inlined_call_operand.vmem [shape: f32[18,32], index: 1, kind: input, shape index: {}]   ;;  %s6382_s2 = inlined_call_operand.vmem [shape: bf16[1024,128], index: 2, kind: input, shape index: {}]   ;;  %s6383_s3 = inlined_call_operand.vmem [shape: f32[48,128], index: 3, kind: input, shape index: {}]   ;;  %s6384_s4 = inlined_call_operand.vmem [shape: f32[2,2,128], index: 4, kind: output, shape index: {}]  }
   0x1 LB: > { %s5391_s16 = sadd.s32 4294967295, %s5351_s15   ;;  %p4338_p0 = scmp.ge.s32.totalorder %s5351_s15, 1  ;;  %s5351_s15 = sphi %s5385_s15, %s14_s15  }
   0x2   : > { %p152_p1 = scmp.lt.s32.totalorder %s5351_s15, 3 }
   0x4   : > { %p153_p2 = pnand %p4338_p0, %p152_p1 }
   0x5   : > { %p172_p3 = scmp.lt.s32.totalorder (!%p153_p2), %s5391_s16, 1  ;;  %p4340_p4 = scmp.ne.s32.totalorder (!%p153_p2), %s5391_s16, 0 }
   0x6   : > { %156 = sbr.rel (%p153_p2) target bundleno = 10147 (0x27a3), region = 36 }
   0xb   : > { %s173_s17 = scalar_select %p172_p3, %s5391_s16, 1 }
   0xc   : > { %180 = sbr.rel (%p4340_p4) target bundleno = 6819 (0x1aa3), region = 40 }
   0xd   : > { %s4339_s18 = sshll.u32 %s173_s17, 1 }
   0xe   : > { %s5400_s21 = scalar_lea.vmem %s6384_s4, %s4339_s18 }
  0x11   : > { %v5137_v0 = vld [vmem:[%s6382_s2 + $0x38] sm:$0xff]   ;;  %v5353_v1 = vmov 0   ;;  %v5138_v2 = vld [vmem:[%s6382_s2 + $0x30] sm:$0xff]   ;;  %v5139_v3 = vld [vmem:[%s6382_s2 + $0x28] sm:$0xff]   ;;  %vm303_vm0 = vcmask 523264   ;;  %vm364_vm1 = vcmask 261120  }
  0x12   : > { %310 = vmatprep.subr.bf16.mxu0 %v5353_v1  ;;  %v5140_v4 = vld [vmem:[%s6382_s2 + $0x20] sm:$0xff]   ;;  %v5141_v5 = vld [vmem:[%s6382_s2 + $0x18] sm:$0xff]   ;;  %v5142_v7 = vld [vmem:[%s6382_s2 + $0x10] sm:$0xff]   ;;  %vm5355_vm2 = vmmov 0   ;;  %vm638_vm3 = vcmask 130048   ;;  %vm757_vm4 = vcmask 1043456  }
  0x13   : > { %311 = vmatpush1.bf16.msra.mxu0 %v5137_v0  ;;  %v5151_v6 = vld [vmem:[%s6380_s0 + $0x4] ss:$8 sps:$4 sm:$0xff]   ;;  %v5145_v10 = vld [vmem:[%s6382_s2 + $0x58] sm:$0xff]   ;;  %v5146_v11 = vld [vmem:[%s6382_s2 + $0x50] sm:$0xff]   ;;  %vm739_vm6 = vcmask 64512   ;;  %vm2818_vm7 = vcmask 1041409  }
  0x14   : > { %312 = vmatprep.subr.bf16.mxu0 %v5353_v1  ;;  %4357 = vmatprep.mubr.msk.bf16.mxu0 %vm303_vm0, %v5151_v6  ;;  %v5143_v8 = vld [vmem:[%s6382_s2 + $0x8] sm:$0xff]   ;;  %v5144_v9 = vld [vmem:[%s6382_s2] sm:$0xff]   ;;  %v5152_v62 = vld [vmem:[%s6380_s0 + $0x14] ss:$8 sps:$4 sm:$0xff]   ;;  %vm2821_vm8 = vcmask 254976   ;;  %vm2932_vm9 = vcmask 1041408  }
  0x15   : > { %v5147_v12 = vld [vmem:[%s6382_s2 + $0x48] sm:$0xff]   ;;  %v5148_v13 = vld [vmem:[%s6382_s2 + $0x40] sm:$0xff]   ;;  %v5154_v63 = vld [vmem:[%s6380_s0 + $0x10] ss:$8 sps:$4 sm:$0xff]  }
  0x16   : > { %v5149_v14 = vld [vmem:[%s6380_s0] ss:$8 sps:$4 sm:$0xff]  }
  0x17   : > { %313 = vmatpush1.bf16.msra.mxu0 %v5138_v2  ;;  %v5449_v15 = vld [vmem:[%s6383_s3] sm:$0xff]  ;;  %v5460_v41 = vld [vmem:[%s6383_s3 + $0x8] ss:$0 sm:$0xff]  ;;  %v5465_v43 = vld [vmem:[%s6383_s3 + $0x9] ss:$0 sm:$0xff]  ;;  %v5354_v2 = vmov 0.0  }
  0x18   : > { %314 = vmatprep.subr.bf16.mxu0 %v5353_v1  ;;  %v5155_v0 = vld [vmem:[%s6382_s2 + $0x68] sm:$0xff]   ;;  %4706 = vmatprep.subr.bf16.mxu1 %v5354_v2 }
  0x19   : > { %4710 = vmatprep.mubr.msk.bf16.mxu1 %vm5355_vm2, %v5354_v2 }
  0x1b   : > { %315 = vmatpush1.bf16.msra.mxu0 %v5139_v3  ;;  %v5157_v3 = vld [vmem:[%s6382_s2 + $0x60] sm:$0xff]  }
  0x1c   : > { %316 = vmatprep.subr.bf16.mxu0 %v5353_v1 }
  0x1f   : > { %317 = vmatpush1.bf16.msra.mxu0 %v5140_v4  ;;  %v5158_v4 = vld [vmem:[%s6382_s2 + $0x70] sm:$0xff]  }
  0x20   : > { %318 = vmatprep.subr.bf16.mxu0 %v5353_v1 }
  0x23   : > { %319 = vmatpush1.bf16.msra.mxu0 %v5141_v5 }
  0x24   : > { %320 = vmatprep.subr.bf16.mxu0 %v5353_v1 }
  0x27   : > { %321 = vmatpush1.bf16.msra.mxu0 %v5142_v7 }
  0x28   : > { %322 = vmatprep.subr.bf16.mxu0 %v5353_v1 }
  0x2b   : > { %323 = vmatpush1.bf16.msra.mxu0 %v5143_v8 }
  0x2c   : > { %324 = vmatprep.subr.bf16.mxu0 %v5353_v1 }
  0x2f   : > { %325 = vmatpush1.bf16.msra.mxu0 %v5144_v9 }
  0x30   : > { %334 = vmatprep.subr.bf16.mxu0 %v5353_v1 }
  0x33   : > { %335 = vmatpush2.bf16.msra.mxu0 %v5145_v10 }
  0x34   : > { %336 = vmatprep.subr.bf16.mxu0 %v5353_v1 }
  0x37   : > { %337 = vmatpush2.bf16.msra.mxu0 %v5146_v11 }
  0x38   : > { %338 = vmatprep.subr.bf16.mxu0 %v5353_v1 }
  0x3b   : > { %339 = vmatpush2.bf16.msra.mxu0 %v5147_v12 }
  0x3c   : > { %340 = vmatprep.subr.bf16.mxu0 %v5353_v1  ;;  %v5156_v1 = vld [vmem:[%s6382_s2 + $0x78] sm:$0xff]  }
  0x3d   : > { %4707 = vmatpush3.bf16.msra.mxu1 %v5156_v1 }
  0x3e   : > { %4708 = vmatprep.subr.bf16.mxu1 %v5354_v2 }
  0x3f   : > { %341 = vmatpush2.bf16.msra.mxu0 %v5148_v13  ;;  %v5515_v13 = vld [vmem:[%s6383_s3 + $0xa] ss:$0 sm:$0xff] }
  0x40   : > { %4698 = vmatprep.subr.bf16.mxu0 %v5354_v2 }
  0x41   : > { %4709 = vmatpush3.bf16.msra.mxu1 %v5158_v4 }
  0x42   : > { %343 = vmatmul.mubr.bf16.vlgmr.msra.gmra.mxu0 %v5149_v14  ;;  %4714 = vmatprep.subr.bf16.mxu1 %v5354_v2 }
  0x43   : > { %4358 = vmatprep.mubr.msk.bf16.mxu0 %vm303_vm0, %v5152_v62  ;;  %4699 = vmatpush3.bf16.msra.mxu0 %v5155_v0 }
  0x44   : > { %4700 = vmatprep.subr.bf16.mxu0 %v5354_v2 }
  0x47   : > { %4701 = vmatpush3.bf16.msra.mxu0 %v5157_v3 }
  0x48   : > { %4746 = vmatprep.subr.bf16.mxu0 %v5354_v2 }
  0x4a   : > { %351 = vmatmul.mubr.bf16.gmra.mxu0 %v5154_v63 }
  0x4b   : > { %4702 = vmatprep.mubr.msk.bf16.mxu0 %vm5355_vm2, %v5354_v2 }
 0x102   : > { %v344_v16 = vpop.f32.mrf.mxu0 }
 0x103   : > { %v362_v17 = vadd.f32 %v5449_v15, %v344_v16 }
 0x104   : > { %v346_v18 = vpop.f32.mrf.mxu0 }
 0x105   : > { %v365_v19 = vsel %vm364_vm1, %v362_v17, 0.0  ;;  %v5521_v18 = vld [vmem:[%s6383_s3 + $0xb] ss:$0 sm:$0xff] }
 0x106   : > { %366 = vadd.xlane.f32.xlu0 %v365_v19  ;;  %v347_v20 = vpop.f32.mrf.mxu0 }
 0x107   : > { %v363_v21 = vadd.f32 %v5449_v15, %v347_v20 }
 0x108   : > { %v349_v22 = vpop.f32.mrf.mxu0 }
 0x109   : > { %v368_v23 = vsel %vm364_vm1, %v363_v21, 0.0  ;;  %v5159_v22 = vld [vmem:[%s6382_s2 + $0x88] sm:$0xff]  }
 0x10a   : > { %369 = vadd.xlane.f32.xlu0 %v368_v23  ;;  %v5160_v23 = vld [vmem:[%s6382_s2 + $0xa0] sm:$0xff]  }
 0x18f   : > { %v367_v24 = vpop.xlane.xlu0 %366 }
 0x190   : > { %v372_v25 = vmul.f32 0.03125, %v367_v24 }
 0x192   : > { %v374_v26 = vsub.f32 %v362_v17, %v372_v25  ;;  %v5161_v25 = vld [vmem:[%s6382_s2 + $0x80] sm:$0xff]  }
 0x193   : > { %v370_v27 = vpop.xlane.xlu0 %369 }
 0x194   : > { %v373_v28 = vmul.f32 0.03125, %v370_v27  ;;  %v376_v29 = vmul.f32 %v374_v26, %v374_v26  ;;  %v5163_v27 = vld [vmem:[%s6382_s2 + $0xc0] sm:$0xff]  }
 0x196   : > { %v375_v30 = vsub.f32 %v363_v21, %v373_v28  ;;  %v378_v31 = vsel %vm364_vm1, %v376_v29, 0.0  ;;  %v5164_v28 = vld [vmem:[%s6382_s2 + $0xb8] sm:$0xff]   ;;  %v5572_v29 = vpop.f32.mrf.mxu0 }
 0x197   : > { %379 = vadd.xlane.f32.xlu1 %v378_v31 }
 0x198   : > { %v377_v32 = vmul.f32 %v375_v30, %v375_v30 }
 0x19a   : > { %v381_v33 = vsel %vm364_vm1, %v377_v32, 0.0 }
 0x19b   : > { %382 = vadd.xlane.f32.xlu1 %v381_v33  ;;  %v5579_v33 = vld [vmem:[%s6383_s3 + $0xd] ss:$0 sm:$0xff] }
 0x220   : > { %v380_v34 = vpop.xlane.xlu1 %379 }
 0x221   : > { %v384_v35 = vmul.f32 0.03125, %v380_v34 }
 0x223   : > { %v386_v36 = vadd.f32 1e-05, %v384_v35 }
 0x224   : > { %v383_v37 = vpop.xlane.xlu1 %382 }
 0x225   : > { %5205 = vrsqrt.f32 %v386_v36  ;;  %v385_v38 = vmul.f32 0.03125, %v383_v37 }
 0x227   : > { %v387_v39 = vadd.f32 1e-05, %v385_v38 }
 0x229   : > { %5207 = vrsqrt.f32 %v387_v39 }
 0x232   : > { %v5206_v40 = vpop.eup %5205 }
 0x233   : > { %v390_v42 = vmul.f32 %v5206_v40, %v374_v26  ;;  %v5162_v26 = vld [vmem:[%s6382_s2 + $0x98] sm:$0xff]   ;;  %v5585_v40 = vld [vmem:[%s6383_s3 + $0xc] ss:$0 sm:$0xff] }
 0x235   : > { %v396_v44 = vmul.f32 %v5460_v41, %v390_v42 }
 0x236   : > { %v5208_v45 = vpop.eup %5207 }
 0x237   : > { %v5469_v46 = vadd.f32 %v5465_v43, %v396_v44  ;;  %v391_v47 = vmul.f32 %v5208_v45, %v375_v30  ;;  %v354_v30 = vpop.f32.mrf.mxu0 }
 0x239   : > { %v406_v48 = vsel %vm364_vm1, %v5469_v46, 0.0  ;;  %v397_v49 = vmul.f32 %v5460_v41, %v391_v47  ;;  %v5574_v31 = vpop.f32.mrf.mxu0 }
 0x23a   : > { %407 = vadd.xlane.f32.xlu0 %v406_v48 }
 0x23b   : > { %v5475_v50 = vadd.f32 %v5465_v43, %v397_v49  ;;  %v357_v32 = vpop.f32.mrf.mxu0 }
 0x23d   : > { %v409_v51 = vsel %vm364_vm1, %v5475_v50, 0.0 }
 0x23e   : > { %410 = vadd.xlane.f32.xlu1 %v409_v51 }
 0x2c3   : > { %v408_v52 = vpop.xlane.xlu0 %407 }
 0x2c4   : > { %v412_v53 = vmul.f32 0.03125, %v408_v52 }
 0x2c6   : > { %v414_v54 = vsub.f32 %v5469_v46, %v412_v53 }
 0x2c7   : > { %v411_v55 = vpop.xlane.xlu1 %410 }
 0x2c8   : > { %v413_v56 = vmul.f32 0.03125, %v411_v55  ;;  %v416_v57 = vmul.f32 %v414_v54, %v414_v54  ;;  %v5596_v55 = vld [vmem:[%s6383_s3 + $0xe] ss:$0 sm:$0xff] }
 0x2ca   : > { %v415_v58 = vsub.f32 %v5475_v50, %v413_v56  ;;  %v418_v59 = vsel %vm364_vm1, %v416_v57, 0.0 }
 0x2cb   : > { %419 = vadd.xlane.f32.xlu0 %v418_v59 }
 0x2cc   : > { %v417_v60 = vmul.f32 %v415_v58, %v415_v58 }
 0x2ce   : > { %v421_v61 = vsel %vm364_vm1, %v417_v60, 0.0 }
 0x2cf   : > { %422 = vadd.xlane.f32.xlu1 %v421_v61 }
 0x354   : > { %v420_v5 = vpop.xlane.xlu0 %419 }
 0x355   : > { %v424_v6 = vmul.f32 0.03125, %v420_v5 }
 0x357   : > { %v426_v7 = vadd.f32 1e-05, %v424_v6 }
 0x358   : > { %v423_v8 = vpop.xlane.xlu1 %422 }
 0x359   : > { %5209 = vrsqrt.f32 %v426_v7  ;;  %v425_v9 = vmul.f32 0.03125, %v423_v8 }
 0x35b   : > { %v427_v10 = vadd.f32 1e-05, %v425_v9 }
 0x35d   : > { %5211 = vrsqrt.f32 %v427_v10  ;;  %v181_v10 = vlaneseq }
 0x366   : > { %v5210_v11 = vpop.eup %5209 }
 0x367   : > { %v430_v12 = vmul.f32 %v5210_v11, %v414_v54  ;;  %v182_v11 = vand.u32 127, %v181_v10  ;;  %v4387_v10 = vld [vmem:[%s6383_s3 + $0x11] ss:$0 sm:$0xff] }
 0x369   : > { %v436_v16 = vmul.f32 %v5515_v13, %v430_v12  ;;  %vm183_vm5 = vcmp.lt.s32.totalorder %v182_v11, 5  ;;  %v5356_v12 = vmov -1e+30  }
 0x36a   : > { %v5212_v14 = vpop.eup %5211 }
 0x36b   : > { %v431_v17 = vmul.f32 %v5212_v14, %v415_v58  ;;  %v442_v20 = vadd.f32 %v5521_v18, %v436_v16  ;;  %v5616_v14 = vsel %vm183_vm5, 0.0, %v5356_v12 }
 0x36d   : > { %v437_v19 = vmul.f32 %v5515_v13, %v431_v17 }
 0x36f   : > { %v443_v21 = vadd.f32 %v5521_v18, %v437_v19 }
 0x371   : > { %v5532_v24 = vpack.c.bf16 %v443_v21, %v442_v20 }
 0x373   : > { %4703 = vmatmul.mubr.msk.bf16.vlgmr.msra.gmra.mxu0 %vm364_vm1, %v5532_v24  ;;  %4711 = vmatmul.mubr.msk.bf16.vlgmr.msra.gmra.mxu1 %vm364_vm1, %v5532_v24 }
 0x374   : > { %4715 = vmatpush3.bf16.msra.mxu1 %v5159_v22  ;;  %4747 = vmatpush3.bf16.msra.mxu0 %v5160_v23 }
 0x375   : > { %4716 = vmatprep.subr.bf16.mxu1 %v5354_v2  ;;  %4748 = vmatprep.subr.bf16.mxu0 %v5354_v2 }
 0x376   : > { %4718 = vmatprep.mubr.msk.bf16.mxu1 %vm5355_vm2, %v5354_v2  ;;  %4750 = vmatprep.mubr.msk.bf16.mxu0 %vm5355_vm2, %v5354_v2 }
 0x378   : > { %4717 = vmatpush3.bf16.msra.mxu1 %v5161_v25  ;;  %4749 = vmatpush3.bf16.msra.mxu0 %v5162_v26 }
 0x379   : > { %4762 = vmatprep.subr.bf16.mxu0 %v5354_v2  ;;  %4722 = vmatprep.subr.bf16.mxu1 %v5354_v2 }
 0x37b   : > { %4719 = vmatmul.mubr.msk.bf16.vlgmr.msra.gmra.mxu1 %vm364_vm1, %v5532_v24  ;;  %4751 = vmatmul.mubr.msk.bf16.vlgmr.msra.gmra.mxu0 %vm364_vm1, %v5532_v24 }
 0x37c   : > { %4763 = vmatpush3.bf16.msra.mxu0 %v5163_v27  ;;  %4766 = vmatprep.mubr.msk.bf16.mxu0 %vm5355_vm2, %v5354_v2 }
 0x37d   : > { %4764 = vmatprep.subr.bf16.mxu0 %v5354_v2  ;;  %4724 = vmatprep.mubr.msk.bf16.mxu1 %vm5355_vm2, %v5354_v2 }
 0x380   : > { %4765 = vmatpush3.bf16.msra.mxu0 %v5164_v28 }
 0x381   : > { %4776 = vmatprep.subr.bf16.mxu0 %v5354_v2 }
 0x383   : > { %4767 = vmatmul.mubr.msk.bf16.vlgmr.msra.gmra.mxu0 %vm364_vm1, %v5532_v24 }
 0x384   : > { %4778 = vmatprep.mubr.msk.bf16.mxu0 %vm5355_vm2, %v5354_v2 }
 0x433   : > { %v503_v34 = vpop.f32.mrf.mxu0  ;;  %v565_v35 = vpop.f32.mrf.mxu1 }
 0x434   : > { %v566_v36 = vadd.f32 %v5579_v33, %v565_v35  ;;  %v504_v51 = vadd.f32 %v5585_v40, %v503_v34 }
 0x435   : > { %v4704_v37 = vpop.f32.mrf.mxu0  ;;  %v4712_v38 = vpop.f32.mrf.mxu1 }
 0x436   : > { %v636_v39 = vpack.c.bf16 %v566_v36, %v566_v36  ;;  %v634_v58 = vpack.c.bf16 %v504_v51, %v504_v51 }
 0x437   : > { %v506_v42 = vpop.f32.mrf.mxu0  ;;  %v568_v44 = vpop.f32.mrf.mxu1 }
 0x438   : > { %v643_v45 = vsel %vm638_vm3, %v636_v39, 0  ;;  %v569_v47 = vadd.f32 %v5579_v33, %v568_v44  ;;  %v507_v1 = vadd.f32 %v5585_v40, %v506_v42 }
 0x439   : > { %v4705_v48 = vpop.f32.mrf.mxu0  ;;  %v4713_v49 = vpop.f32.mrf.mxu1  ;;  %4723 = vmatpush3.bf16.xpose.msra.mxu1 %v643_v45 }
 0x43a   : > { %4728 = vmatprep.subr.bf16.mxu1 %v5354_v2  ;;  %v637_v54 = vpack.c.bf16 %v569_v47, %v569_v47  ;;  %v635_v6 = vpack.c.bf16 %v507_v1, %v507_v1 }
 0x43b   : > { %v627_v52 = vpop.f32.mrf.mxu1  ;;  %v5591_v53 = vpop.f32.mrf.mxu0 }
 0x43c   : > { %v689_v61 = vsel %vm638_vm3, %v637_v54, 0  ;;  %v628_v62 = vadd.f32 %v5596_v55, %v627_v52 }
 0x43d   : > { %v4720_v56 = vpop.f32.mrf.mxu1  ;;  %v4752_v57 = vpop.f32.mrf.mxu0 }
 0x43e   : > { %v752_v4 = vpack.c.bf16 %v628_v62, %v628_v62  ;;  %v5165_v56 = vld [vmem:[%s6382_s2 + $0xb0] sm:$0xff]  }
 0x43f   : > { %v630_v59 = vpop.f32.mrf.mxu1  ;;  %v5598_v60 = vpop.f32.mrf.mxu0 }
 0x440   : > { %4725 = vmatmul.mubr.msk.bf16.vlgmr.msra.gmra.mxu1 %vm638_vm3, %v634_v58  ;;  %v759_v8 = vsel %vm757_vm4, %v752_v4, 0  ;;  %v631_v44 = vadd.f32 %v5596_v55, %v630_v59  ;;  %v5166_v58 = vld [vmem:[%s6382_s2 + $0xa8] sm:$0xff]  }
 0x441   : > { %v4721_v63 = vpop.f32.mrf.mxu1  ;;  %4729 = vmatpush3.bf16.xpose.msra.mxu1 %v689_v61  ;;  %v4753_v0 = vpop.f32.mrf.mxu0  ;;  %4730 = vmatprep.mubr.msk.bf16.mxu1 %vm5355_vm2, %v5354_v2 }
 0x442   : > { %4734 = vmatprep.subr.bf16.mxu1 %v5354_v2  ;;  %v753_v47 = vpack.c.bf16 %v631_v44, %v631_v44 }
 0x443   : > { %v5607_v3 = vpop.f32.mrf.mxu0 }
 0x444   : > { %v805_v51 = vsel %vm757_vm4, %v753_v47, 0 }
 0x445   : > { %v4768_v5 = vpop.f32.mrf.mxu0 }
 0x447   : > { %v5609_v7 = vpop.f32.mrf.mxu0 }
 0x448   : > { %4731 = vmatmul.mubr.msk.bf16.vlgmr.msra.gmra.mxu1 %vm638_vm3, %v635_v6 }
 0x449   : > { %4735 = vmatpush3.bf16.msra.mxu1 %v759_v8  ;;  %v4769_v9 = vpop.f32.mrf.mxu0  ;;  %4736 = vmatprep.mubr.msk.bf16.mxu1 %vm5355_vm2, %v5354_v2 }
 0x44a   : > { %4740 = vmatprep.subr.bf16.mxu1 %v5354_v2 }
 0x500   : > { %v679_v16 = vpop.f32.mrf.mxu1 }
 0x501   : > { %v731_v17 = vmul.f32 0.25, %v679_v16  ;;  %v4379_v16 = vld [vmem:[%s6383_s3 + $0xf] ss:$0 sm:$0xff] }
 0x502   : > { %v4726_v19 = vpop.f32.mrf.mxu1 }
 0x503   : > { %v733_v20 = vadd.f32 %v731_v17, %v5616_v14  ;;  %v1030_v19 = vadd.f32 %v4387_v10, %v5607_v3  ;;  %v909_v3 = vadd.f32 %v4379_v16, %v5598_v60 }
 0x504   : > { %v682_v21 = vpop.f32.mrf.mxu1 }
 0x505   : > { %v735_v22 = vmul.f32 1.442695, %v733_v20 }
 0x506   : > { %v4727_v23 = vpop.f32.mrf.mxu1 }
 0x507   : > { %5213 = vpow2.f32 %v735_v22  ;;  %v906_v23 = vadd.f32 %v4379_v16, %v5591_v53  ;;  %v1037_v53 = vpack.c.bf16 %v909_v3, %v909_v3 }
 0x508   : > { %v725_v25 = vpop.f32.mrf.mxu1 }
 0x509   : > { %v732_v26 = vmul.f32 0.25, %v725_v25 }
 0x50a   : > { %v4732_v27 = vpop.f32.mrf.mxu1 }
 0x50b   : > { %v734_v28 = vadd.f32 %v732_v26, %v5616_v14  ;;  %v1152_v26 = vpack.c.bf16 %v1030_v19, %v1030_v19  ;;  %v1033_v27 = vadd.f32 %v4387_v10, %v5609_v7 }
 0x50c   : > { %v728_v30 = vpop.f32.mrf.mxu1 }
 0x50d   : > { %v737_v32 = vmul.f32 1.442695, %v734_v28  ;;  %v1036_v30 = vpack.c.bf16 %v906_v23, %v906_v23 }
 0x50e   : > { %v4733_v34 = vpop.f32.mrf.mxu1 }
 0x50f   : > { %5215 = vpow2.f32 %v737_v32  ;;  %v1158_v32 = vsel %vm757_vm4, %v1152_v26, 0  ;;  %v1153_v34 = vpack.c.bf16 %v1033_v27, %v1033_v27 }
 0x511   : > { %v1204_v7 = vsel %vm757_vm4, %v1153_v34, 0 }
 0x514   : > { %v5214_v35 = vpop.eup %5213 }
 0x515   : > { %v740_v36 = vsel %vm739_vm6, %v5214_v35, 0.0 }
 0x516   : > { %741 = vadd.xlane.f32.xlu0 %v740_v36 }
 0x51c   : > { %v5216_v37 = vpop.eup %5215 }
 0x51d   : > { %v743_v38 = vsel %vm739_vm6, %v5216_v37, 0.0 }
 0x51e   : > { %744 = vadd.xlane.f32.xlu1 %v743_v38 }
 0x59f   : > { %v742_v39 = vpop.xlane.xlu0 %741 }
 0x5a0   : > { %5217 = vrcp.f32 %v742_v39 }
 0x5a7   : > { %v745_v42 = vpop.xlane.xlu1 %744 }
 0x5a8   : > { %5219 = vrcp.f32 %v745_v42 }
 0x5ad   : > { %v5218_v45 = vpop.eup %5217 }
 0x5ae   : > { %v748_v48 = vmul.f32 %v5218_v45, %v5214_v35 }
 0x5b0   : > { %v750_v49 = vpack.c.bf16 %v748_v48, %v748_v48 }
 0x5b2   : > { %4737 = vmatmul.mubr.msk.bf16.vlgmr.msra.gmra.mxu1 %vm739_vm6, %v750_v49 }
 0x5b3   : > { %4741 = vmatpush3.bf16.msra.mxu1 %v805_v51  ;;  %4742 = vmatprep.mubr.msk.bf16.mxu1 %vm5355_vm2, %v5354_v2 }
 0x5b4   : > { %4754 = vmatprep.subr.bf16.mxu1 %v5354_v2 }
 0x5b5   : > { %v5220_v52 = vpop.eup %5219 }
 0x5b6   : > { %v749_v54 = vmul.f32 %v5220_v52, %v5216_v37 }
 0x5b8   : > { %v751_v57 = vpack.c.bf16 %v749_v54, %v749_v54 }
 0x5ba   : > { %4743 = vmatmul.mubr.msk.bf16.vlgmr.msra.gmra.mxu1 %vm739_vm6, %v751_v57 }
 0x5bb   : > { %4755 = vmatpush3.bf16.msra.mxu1 %v5165_v56  ;;  %4758 = vmatprep.mubr.msk.bf16.mxu1 %vm5355_vm2, %v5354_v2 }
 0x5bc   : > { %4756 = vmatprep.subr.bf16.mxu1 %v5354_v2 }
 0x5bf   : > { %4757 = vmatpush3.bf16.msra.mxu1 %v5166_v58 }
 0x5c0   : > { %4770 = vmatprep.subr.bf16.mxu1 %v5354_v2 }
 0x5c2   : > { %4759 = vmatmul.mubr.msk.bf16.vlgmr.msra.gmra.mxu1 %vm364_vm1, %v5532_v24  ;;  %v5652_v24 = vld [vmem:[%s6383_s3 + $0x10] ss:$0 sm:$0xff] }
 0x5c3   : > { %4772 = vmatprep.mubr.msk.bf16.mxu1 %vm5355_vm2, %v5354_v2 }
 0x672   : > { %v5643_v59 = vpop.f32.mrf.mxu1 }
 0x674   : > { %v4738_v61 = vpop.f32.mrf.mxu1 }
 0x676   : > { %v798_v62 = vpop.f32.mrf.mxu1 }
 0x678   : > { %v4739_v63 = vpop.f32.mrf.mxu1 }
 0x67a   : > { %v5645_v0 = vpop.f32.mrf.mxu1 }
 0x67b   : > { %v847_v1 = vpack.c.bf16 %v5645_v0, %v5643_v59 }
 0x67c   : > { %v4744_v4 = vpop.f32.mrf.mxu1 }
 0x67e   : > { %v844_v5 = vpop.f32.mrf.mxu1 }
 0x680   : > { %v4745_v6 = vpop.f32.mrf.mxu1 }
 0x682   : > { %v967_v8 = vpop.f32.mrf.mxu1 }
 0x683   : > { %v968_v9 = vadd.f32 %v5652_v24, %v967_v8 }
 0x684   : > { %v4760_v11 = vpop.f32.mrf.mxu1 }
 0x685   : > { %v1038_v12 = vpack.c.bf16 %v968_v9, %v968_v9  ;;  %v5167_v9 = vld [vmem:[%s6382_s2 + $0x90] sm:$0xff]   ;;  %v5168_v11 = vld [vmem:[%s6382_s2 + $0xc8] sm:$0xff]  }
 0x686   : > { %v970_v17 = vpop.f32.mrf.mxu1 }
 0x687   : > { %v1044_v20 = vsel %vm638_vm3, %v1038_v12, 0  ;;  %v971_v21 = vadd.f32 %v5652_v24, %v970_v17 }
 0x688   : > { %v4761_v22 = vpop.f32.mrf.mxu1  ;;  %4771 = vmatpush3.bf16.xpose.msra.mxu1 %v1044_v20 }
 0x689   : > { %v1039_v25 = vpack.c.bf16 %v971_v21, %v971_v21  ;;  %4782 = vmatprep.subr.bf16.mxu1 %v5354_v2 }
 0x68b   : > { %v1090_v28 = vsel %vm638_vm3, %v1039_v25, 0 }
 0x68c   : > { %4777 = vmatpush3.bf16.xpose.msra.mxu0 %v1090_v28  ;;  %v5710_v28 = vld [vmem:[%s6383_s3 + $0x12] ss:$0 sm:$0xff] }
 0x68d   : > { %4788 = vmatprep.subr.bf16.mxu0 %v5354_v2 }
 0x68f   : > { %4773 = vmatmul.mubr.msk.bf16.vlgmr.msra.gmra.mxu1 %vm638_vm3, %v1036_v30 }
 0x690   : > { %4783 = vmatpush3.bf16.msra.mxu1 %v1158_v32  ;;  %4784 = vmatprep.mubr.msk.bf16.mxu1 %vm5355_vm2, %v5354_v2 }
 0x691   : > { %4794 = vmatprep.subr.bf16.mxu1 %v5354_v2 }
 0x693   : > { %4779 = vmatmul.mubr.msk.bf16.vlgmr.msra.gmra.mxu0 %vm638_vm3, %v1037_v53 }
 0x694   : > { %4789 = vmatpush3.bf16.msra.mxu0 %v1204_v7  ;;  %4790 = vmatprep.mubr.msk.bf16.mxu0 %vm5355_vm2, %v5354_v2 }
 0x695   : > { %4800 = vmatprep.subr.bf16.mxu0 %v5354_v2 }
 0x74f   : > { %v1080_v60 = vpop.f32.mrf.mxu1 }
 0x750   : > { %v1132_v35 = vmul.f32 0.25, %v1080_v60 }
 0x751   : > { %v4774_v36 = vpop.f32.mrf.mxu1 }
 0x752   : > { %v1134_v37 = vadd.f32 %v1132_v35, %v5616_v14 }
 0x753   : > { %v1083_v38 = vpop.f32.mrf.mxu1  ;;  %v1126_v39 = vpop.f32.mrf.mxu0 }
 0x754   : > { %v1136_v42 = vmul.f32 1.442695, %v1134_v37  ;;  %v1133_v44 = vmul.f32 0.25, %v1126_v39 }
 0x755   : > { %v4775_v45 = vpop.f32.mrf.mxu1  ;;  %v4780_v47 = vpop.f32.mrf.mxu0 }
 0x756   : > { %5221 = vpow2.f32 %v1136_v42  ;;  %v1135_v48 = vadd.f32 %v1133_v44, %v5616_v14 }
 0x757   : > { %v1129_v49 = vpop.f32.mrf.mxu0 }
 0x758   : > { %v1138_v51 = vmul.f32 1.442695, %v1135_v48 }
 0x759   : > { %v4781_v52 = vpop.f32.mrf.mxu0 }
 0x75a   : > { %5223 = vpow2.f32 %v1138_v51  ;;  %v5169_v52 = vld [vmem:[%s6382_s2 + $0xd8] sm:$0xff]  }
 0x763   : > { %v5222_v54 = vpop.eup %5221 }
 0x764   : > { %v1140_v56 = vsel %vm739_vm6, %v5222_v54, 0.0 }
 0x765   : > { %1141 = vadd.xlane.f32.xlu0 %v1140_v56 }
 0x767   : > { %v5224_v57 = vpop.eup %5223 }
 0x768   : > { %v1143_v58 = vsel %vm739_vm6, %v5224_v57, 0.0 }
 0x769   : > { %1144 = vadd.xlane.f32.xlu1 %v1143_v58 }
 0x7ee   : > { %v1142_v61 = vpop.xlane.xlu0 %1141 }
 0x7ef   : > { %5225 = vrcp.f32 %v1142_v61 }
 0x7f2   : > { %v1145_v62 = vpop.xlane.xlu1 %1144 }
 0x7f3   : > { %5227 = vrcp.f32 %v1145_v62 }
 0x7fc   : > { %v5226_v63 = vpop.eup %5225 }
 0x7fd   : > { %v1148_v4 = vmul.f32 %v5226_v63, %v5222_v54  ;;  %v5170_v54 = vld [vmem:[%s6382_s2 + $0xd0] sm:$0xff]  }
 0x7ff   : > { %v1150_v5 = vpack.c.bf16 %v1148_v4, %v1148_v4 }
 0x800   : > { %v5228_v6 = vpop.eup %5227 }
 0x801   : > { %4785 = vmatmul.mubr.msk.bf16.vlgmr.msra.gmra.mxu1 %vm739_vm6, %v1150_v5  ;;  %v1149_v8 = vmul.f32 %v5228_v6, %v5224_v57  ;;  %v5739_v6 = vld [vmem:[%s6383_s3 + $0x13] ss:$0 sm:$0xff] }
 0x802   : > { %4796 = vmatprep.mubr.msk.bf16.mxu1 %vm5355_vm2, %v5354_v2  ;;  %4795 = vmatpush3.bf16.msra.mxu1 %v5168_v11  ;;  %v5745_v11 = vld [vmem:[%s6383_s3 + $0x14] ss:$0 sm:$0xff] }
 0x803   : > { %v1151_v10 = vpack.c.bf16 %v1149_v8, %v1149_v8  ;;  %4806 = vmatprep.subr.bf16.mxu1 %v5354_v2 }
 0x805   : > { %4791 = vmatmul.mubr.msk.bf16.vlgmr.msra.gmra.mxu0 %vm739_vm6, %v1151_v10 }
 0x806   : > { %4801 = vmatpush3.bf16.msra.mxu0 %v5167_v9  ;;  %4802 = vmatprep.mubr.msk.bf16.mxu0 %vm5355_vm2, %v5354_v2 }
 0x807   : > { %4814 = vmatprep.subr.bf16.mxu0 %v5354_v2 }
 0x80d   : > { %4803 = vmatmul.mubr.msk.bf16.vlgmr.msra.gmra.mxu0 %vm638_vm3, %v847_v1 }
 0x80e   : > { %4830 = vmatprep.mubr.msk.bf16.mxu0 %vm5355_vm2, %v5354_v2 }
 0x8c1   : > { %v1194_v12 = vpop.f32.mrf.mxu1 }
 0x8c3   : > { %v4786_v16 = vpop.f32.mrf.mxu1 }
 0x8c5   : > { %v1197_v17 = vpop.f32.mrf.mxu1  ;;  %v1240_v19 = vpop.f32.mrf.mxu0 }
 0x8c6   : > { %v1246_v20 = vpack.c.bf16 %v1240_v19, %v1194_v12 }
 0x8c7   : > { %v4787_v21 = vpop.f32.mrf.mxu1  ;;  %v4792_v22 = vpop.f32.mrf.mxu0 }
 0x8c8   : > { %4797 = vmatmul.mubr.msk.bf16.vlgmr.msra.gmra.mxu1 %vm638_vm3, %v1246_v20  ;;  %v5171_v20 = vld [vmem:[%s6382_s2 + $0x118] sm:$0xff]   ;;  %v5172_v21 = vld [vmem:[%s6382_s2 + $0x110] sm:$0xff]   ;;  %v5173_v22 = vld [vmem:[%s6382_s2 + $0x108] sm:$0xff]  }
 0x8c9   : > { %v1243_v59 = vpop.f32.mrf.mxu0  ;;  %4810 = vmatprep.mubr.msk.bf16.mxu1 %vm5355_vm2, %v5354_v2  ;;  %4807 = vmatpush3.bf16.msra.mxu1 %v5169_v52 }
 0x8ca   : > { %4808 = vmatprep.subr.bf16.mxu1 %v5354_v2  ;;  %4815 = vmatpush3.bf16.msra.mxu0 %v5171_v20  ;;  %v5174_v59 = vld [vmem:[%s6382_s2 + $0x100] sm:$0xff]  }
 0x8cb   : > { %v4793_v0 = vpop.f32.mrf.mxu0  ;;  %4816 = vmatprep.subr.bf16.mxu0 %v5354_v2 }
 0x8cc   : > { %v5175_v0 = vld [vmem:[%s6382_s2 + $0xf8] sm:$0xff]  }
 0x8cd   : > { %v1342_v1 = vpop.f32.mrf.mxu0  ;;  %4809 = vmatpush3.bf16.msra.mxu1 %v5170_v54 }
 0x8ce   : > { %4834 = vmatprep.subr.bf16.mxu1 %v5354_v2  ;;  %4817 = vmatpush3.bf16.msra.mxu0 %v5172_v21 }
 0x8cf   : > { %v4804_v23 = vpop.f32.mrf.mxu0  ;;  %4818 = vmatprep.subr.bf16.mxu0 %v5354_v2 }
 0x8d0   : > { %v5177_v23 = vld [vmem:[%s6382_s2 + $0xe8] sm:$0xff]  }
 0x8d1   : > { %v1345_v25 = vpop.f32.mrf.mxu0 }
 0x8d2   : > { %4819 = vmatpush3.bf16.msra.mxu0 %v5173_v22 }
 0x8d3   : > { %v4805_v26 = vpop.f32.mrf.mxu0  ;;  %4820 = vmatprep.subr.bf16.mxu0 %v5354_v2 }
 0x8d4   : > { %v5788_v26 = vld [vmem:[%s6383_s3 + $0x15] ss:$0 sm:$0xff] }
 0x8d6   : > { %4821 = vmatpush3.bf16.msra.mxu0 %v5174_v59 }
 0x8d7   : > { %4822 = vmatprep.subr.bf16.mxu0 %v5354_v2 }
 0x8da   : > { %4823 = vmatpush3.bf16.msra.mxu0 %v5175_v0 }
 0x8db   : > { %4824 = vmatprep.subr.bf16.mxu0 %v5354_v2 }
 0x988   : > { %v1292_v27 = vpop.f32.mrf.mxu1 }
 0x989   : > { %v1343_v30 = vadd.f32 %v1342_v1, %v1292_v27  ;;  %v5176_v1 = vld [vmem:[%s6382_s2 + $0xf0] sm:$0xff]  }
 0x98a   : > { %v4798_v3 = vpop.f32.mrf.mxu1  ;;  %4825 = vmatpush3.bf16.msra.mxu0 %v5176_v1 }
 0x98b   : > { %v1354_v32 = vadd.f32 %v5710_v28, %v1343_v30  ;;  %4826 = vmatprep.subr.bf16.mxu0 %v5354_v2 }
 0x98c   : > { %v1295_v34 = vpop.f32.mrf.mxu1 }
 0x98d   : > { %v5714_v53 = vadd.f32 %v1354_v32, %v5469_v46  ;;  %v1346_v7 = vadd.f32 %v1345_v25, %v1295_v34  ;;  %v5178_v25 = vld [vmem:[%s6382_s2 + $0xe0] sm:$0xff]  }
 0x98e   : > { %v4799_v60 = vpop.f32.mrf.mxu1  ;;  %4827 = vmatpush3.bf16.msra.mxu0 %v5177_v23 }
 0x98f   : > { %v1355_v35 = vadd.f32 %v5710_v28, %v1346_v7  ;;  %v1360_v36 = vsel %vm364_vm1, %v5714_v53, 0.0  ;;  %4828 = vmatprep.subr.bf16.mxu0 %v5354_v2 }
 0x990   : > { %1361 = vadd.xlane.f32.xlu0 %v1360_v36 }
 0x991   : > { %v5720_v37 = vadd.f32 %v1355_v35, %v5475_v50 }
 0x992   : > { %4829 = vmatpush3.bf16.msra.mxu0 %v5178_v25 }
 0x993   : > { %v1363_v38 = vsel %vm364_vm1, %v5720_v37, 0.0  ;;  %4864 = vmatprep.subr.bf16.mxu0 %v5354_v2 }
 0x994   : > { %1364 = vadd.xlane.f32.xlu1 %v1363_v38 }
 0xa19   : > { %v1362_v39 = vpop.xlane.xlu0 %1361 }
 0xa1a   : > { %v1366_v42 = vmul.f32 0.03125, %v1362_v39 }
 0xa1c   : > { %v1368_v46 = vsub.f32 %v5714_v53, %v1366_v42 }
 0xa1d   : > { %v1365_v44 = vpop.xlane.xlu1 %1364 }
 0xa1e   : > { %v1367_v45 = vmul.f32 0.03125, %v1365_v44  ;;  %v1370_v47 = vmul.f32 %v1368_v46, %v1368_v46 }
 0xa20   : > { %v1369_v48 = vsub.f32 %v5720_v37, %v1367_v45  ;;  %v1372_v49 = vsel %vm364_vm1, %v1370_v47, 0.0 }
 0xa21   : > { %1373 = vadd.xlane.f32.xlu0 %v1372_v49 }
 0xa22   : > { %v1371_v51 = vmul.f32 %v1369_v48, %v1369_v48 }
 0xa24   : > { %v1375_v50 = vsel %vm364_vm1, %v1371_v51, 0.0 }
 0xa25   : > { %1376 = vadd.xlane.f32.xlu1 %v1375_v50  ;;  %v5797_v50 = vld [vmem:[%s6383_s3 + $0x16] ss:$0 sm:$0xff] }
 0xaaa   : > { %v1374_v56 = vpop.xlane.xlu0 %1373 }
 0xaab   : > { %v1378_v57 = vmul.f32 0.03125, %v1374_v56 }
 0xaad   : > { %v1380_v58 = vadd.f32 1e-05, %v1378_v57  ;;  %v1593_v57 = vadd.f32 %v5449_v15, %v5572_v29 }
 0xaae   : > { %v1377_v61 = vpop.xlane.xlu1 %1376 }
 0xaaf   : > { %5229 = vrsqrt.f32 %v1380_v58  ;;  %v1379_v62 = vmul.f32 0.03125, %v1377_v61 }
 0xab1   : > { %v1381_v63 = vadd.f32 1e-05, %v1379_v62 }
 0xab3   : > { %5231 = vrsqrt.f32 %v1381_v63 }
 0xabc   : > { %v5230_v4 = vpop.eup %5229 }
 0xabd   : > { %v1384_v5 = vmul.f32 %v5230_v4, %v1368_v46 }
 0xabf   : > { %v1390_v10 = vmul.f32 %v5739_v6, %v1384_v5  ;;  %v1594_v5 = vadd.f32 %v5449_v15, %v5574_v31 }
 0xac0   : > { %v5232_v8 = vpop.eup %5231 }
 0xac1   : > { %v1385_v9 = vmul.f32 %v5232_v8, %v1369_v48  ;;  %v1396_v16 = vadd.f32 %v5745_v11, %v1390_v10 }
 0xac3   : > { %v1391_v12 = vmul.f32 %v5739_v6, %v1385_v9 }
 0xac5   : > { %v1397_v17 = vadd.f32 %v5745_v11, %v1391_v12 }
 0xac7   : > { %v1398_v19 = vpack.c.bf16 %v1397_v17, %v1396_v16 }
 0xac9   : > { %4811 = vmatmul.mubr.msk.bf16.vlgmr.msra.gmra.mxu1 %vm364_vm1, %v1398_v19 }
 0xaca   : > { %4838 = vmatprep.mubr.msk.bf16.mxu1 %vm5355_vm2, %v5354_v2 }
 0xb89   : > { %v1457_v27 = vpop.f32.mrf.mxu1 }
 0xb8a   : > { %v1458_v30 = vadd.f32 %v5788_v26, %v1457_v27 }
 0xb8b   : > { %v4812_v3 = vpop.f32.mrf.mxu1 }
 0xb8c   : > { %v4406_v32 = vmul.f32 -1.702, %v1458_v30 }
 0xb8d   : > { %v1460_v34 = vpop.f32.mrf.mxu1 }
 0xb8e   : > { %v1468_v7 = vmul.f32 1.442695, %v4406_v32  ;;  %v1461_v60 = vadd.f32 %v5788_v26, %v1460_v34 }
 0xb8f   : > { %v4813_v35 = vpop.f32.mrf.mxu1 }
 0xb90   : > { %5233 = vpow2.f32 %v1468_v7  ;;  %v4407_v36 = vmul.f32 -1.702, %v1461_v60 }
 0xb92   : > { %v1470_v38 = vmul.f32 1.442695, %v4407_v36 }
 0xb94   : > { %5235 = vpow2.f32 %v1470_v38 }
 0xb9d   : > { %v5234_v39 = vpop.eup %5233 }
 0xb9e   : > { %v1472_v42 = vadd.f32 1.0, %v5234_v39 }
 0xba0   : > { %5237 = vrcp.f32 %v1472_v42 }
 0xba1   : > { %v5236_v46 = vpop.eup %5235 }
 0xba2   : > { %v1473_v44 = vadd.f32 1.0, %v5236_v46 }
 0xba4   : > { %5239 = vrcp.f32 %v1473_v44 }
 0xbad   : > { %v5238_v45 = vpop.eup %5237 }
 0xbae   : > { %v1478_v48 = vmul.f32 %v5238_v45, %v1458_v30 }
 0xbb1   : > { %v5240_v47 = vpop.eup %5239 }
 0xbb2   : > { %v1479_v49 = vmul.f32 %v5240_v47, %v1461_v60 }
 0xbb4   : > { %v1480_v51 = vpack.c.bf16 %v1479_v49, %v1478_v48 }
 0xbb6   : > { %4831 = vmatmul.mubr.bf16.vlgmr.msra.gmra.mxu0 %v1480_v51  ;;  %v5179_v51 = vld [vmem:[%s6382_s2 + $0x68] sm:$0xff]  }
 0xbb7   : > { %4866 = vmatprep.mubr.msk.bf16.mxu0 %vm5355_vm2, %v5354_v2  ;;  %4835 = vmatpush3.bf16.msra.mxu1 %v5179_v51 }
 0xbb8   : > { %4836 = vmatprep.subr.bf16.mxu1 %v5354_v2 }
 0xc76   : > { %v1584_v52 = vpop.f32.mrf.mxu0 }
 0xc77   : > { %v1585_v54 = vadd.f32 %v5797_v50, %v1584_v52  ;;  %v5180_v52 = vld [vmem:[%s6382_s2 + $0x60] sm:$0xff]  }
 0xc78   : > { %v4832_v56 = vpop.f32.mrf.mxu0  ;;  %4837 = vmatpush3.bf16.msra.mxu1 %v5180_v52 }
 0xc79   : > { %v1591_v58 = vadd.f32 %v1585_v54, %v5714_v53  ;;  %4842 = vmatprep.subr.bf16.mxu1 %v5354_v2 }
 0xc7a   : > { %v1587_v61 = vpop.f32.mrf.mxu0 }
 0xc7b   : > { %v1588_v62 = vadd.f32 %v5797_v50, %v1587_v61  ;;  %v1595_v63 = vadd.f32 %v1593_v57, %v1591_v58 }
 0xc7c   : > { %v4833_v4 = vpop.f32.mrf.mxu0 }
 0xc7d   : > { %v1592_v8 = vadd.f32 %v1588_v62, %v5720_v37  ;;  %v1597_v9 = vsel %vm364_vm1, %v1595_v63, 0.0 }
 0xc7e   : > { %1598 = vadd.xlane.f32.xlu0 %v1597_v9 }
 0xc7f   : > { %v1596_v10 = vadd.f32 %v1594_v5, %v1592_v8 }
 0xc81   : > { %v1600_v12 = vsel %vm364_vm1, %v1596_v10, 0.0 }
 0xc82   : > { %1601 = vadd.xlane.f32.xlu1 %v1600_v12 }
 0xd07   : > { %v1599_v29 = vpop.xlane.xlu0 %1598 }
 0xd08   : > { %v1603_v16 = vmul.f32 0.03125, %v1599_v29 }
 0xd0a   : > { %v1605_v53 = vsub.f32 %v1595_v63, %v1603_v16  ;;  %v5181_v16 = vld [vmem:[%s6382_s2 + $0x78] sm:$0xff]  }
 0xd0b   : > { %v1602_v17 = vpop.xlane.xlu1 %1601 }
 0xd0c   : > { %v1604_v19 = vmul.f32 0.03125, %v1602_v17  ;;  %v1607_v20 = vmul.f32 %v1605_v53, %v1605_v53  ;;  %v5182_v17 = vld [vmem:[%s6382_s2 + $0x70] sm:$0xff]  }
 0xd0e   : > { %v1606_v21 = vsub.f32 %v1596_v10, %v1604_v19  ;;  %v1609_v22 = vsel %vm364_vm1, %v1607_v20, 0.0 }
 0xd0f   : > { %1610 = vadd.xlane.f32.xlu0 %v1609_v22 }
 0xd10   : > { %v1608_v15 = vmul.f32 %v1606_v21, %v1606_v21 }
 0xd12   : > { %v1612_v31 = vsel %vm364_vm1, %v1608_v15, 0.0 }
 0xd13   : > { %1613 = vadd.xlane.f32.xlu1 %v1612_v31 }
 0xd98   : > { %v1611_v37 = vpop.xlane.xlu0 %1610 }
 0xd99   : > { %v1615_v59 = vmul.f32 0.03125, %v1611_v37 }
 0xd9b   : > { %v1617_v0 = vadd.f32 1e-05, %v1615_v59 }
 0xd9c   : > { %v1614_v1 = vpop.xlane.xlu1 %1613 }
 0xd9d   : > { %5241 = vrsqrt.f32 %v1617_v0  ;;  %v1616_v23 = vmul.f32 0.03125, %v1614_v1 }
 0xd9f   : > { %v1618_v25 = vadd.f32 1e-05, %v1616_v23 }
 0xda1   : > { %5243 = vrsqrt.f32 %v1618_v25 }
 0xdaa   : > { %v5242_v27 = vpop.eup %5241 }
 0xdab   : > { %v1621_v30 = vmul.f32 %v5242_v27, %v1605_v53 }
 0xdad   : > { %v1623_v3 = vmul.f32 %v5460_v41, %v1621_v30 }
 0xdae   : > { %v5244_v32 = vpop.eup %5243 }
 0xdaf   : > { %v5813_v34 = vadd.f32 %v5465_v43, %v1623_v3  ;;  %v1622_v7 = vmul.f32 %v5244_v32, %v1606_v21 }
 0xdb1   : > { %v1629_v60 = vsel %vm364_vm1, %v5813_v34, 0.0  ;;  %v1624_v35 = vmul.f32 %v5460_v41, %v1622_v7 }
 0xdb2   : > { %1630 = vadd.xlane.f32.xlu0 %v1629_v60 }
 0xdb3   : > { %v5819_v36 = vadd.f32 %v5465_v43, %v1624_v35 }
 0xdb5   : > { %v1632_v38 = vsel %vm364_vm1, %v5819_v36, 0.0 }
 0xdb6   : > { %1633 = vadd.xlane.f32.xlu1 %v1632_v38 }
 0xe3b   : > { %v1631_v39 = vpop.xlane.xlu0 %1630 }
 0xe3c   : > { %v1635_v42 = vmul.f32 0.03125, %v1631_v39 }
 0xe3e   : > { %v1637_v46 = vsub.f32 %v5813_v34, %v1635_v42 }
 0xe3f   : > { %v1634_v44 = vpop.xlane.xlu1 %1633 }
 0xe40   : > { %v1636_v45 = vmul.f32 0.03125, %v1634_v44  ;;  %v1639_v47 = vmul.f32 %v1637_v46, %v1637_v46 }
 0xe42   : > { %v1638_v48 = vsub.f32 %v5819_v36, %v1636_v45  ;;  %v1641_v49 = vsel %vm364_vm1, %v1639_v47, 0.0 }
 0xe43   : > { %1642 = vadd.xlane.f32.xlu0 %v1641_v49 }
 0xe44   : > { %v1640_v41 = vmul.f32 %v1638_v48, %v1638_v48 }
 0xe46   : > { %v1644_v43 = vsel %vm364_vm1, %v1640_v41, 0.0 }
 0xe47   : > { %1645 = vadd.xlane.f32.xlu1 %v1644_v43 }
 0xecc   : > { %v1643_v54 = vpop.xlane.xlu0 %1642 }
 0xecd   : > { %v1647_v56 = vmul.f32 0.03125, %v1643_v54 }
 0xecf   : > { %v1649_v57 = vadd.f32 1e-05, %v1647_v56 }
 0xed0   : > { %v1646_v58 = vpop.xlane.xlu1 %1645 }
 0xed1   : > { %5245 = vrsqrt.f32 %v1649_v57  ;;  %v1648_v61 = vmul.f32 0.03125, %v1646_v58 }
 0xed3   : > { %v1650_v62 = vadd.f32 1e-05, %v1648_v61 }
 0xed5   : > { %5247 = vrsqrt.f32 %v1650_v62 }
 0xede   : > { %v5246_v63 = vpop.eup %5245 }
 0xedf   : > { %v1653_v4 = vmul.f32 %v5246_v63, %v1637_v46 }
 0xee1   : > { %v1659_v8 = vmul.f32 %v5515_v13, %v1653_v4 }
 0xee2   : > { %v5248_v5 = vpop.eup %5247 }
 0xee3   : > { %v1654_v9 = vmul.f32 %v5248_v5, %v1638_v48  ;;  %v1665_v12 = vadd.f32 %v5521_v18, %v1659_v8 }
 0xee5   : > { %v1660_v10 = vmul.f32 %v5515_v13, %v1654_v9  ;;  %v5183_v13 = vld [vmem:[%s6382_s2 + $0x88] sm:$0xff]  }
 0xee7   : > { %v1666_v29 = vadd.f32 %v5521_v18, %v1660_v10  ;;  %v5184_v18 = vld [vmem:[%s6382_s2 + $0x80] sm:$0xff]  }
 0xee9   : > { %v5842_v53 = vpack.c.bf16 %v1666_v29, %v1665_v12 }
 0xeeb   : > { %4839 = vmatmul.mubr.msk.bf16.vlgmr.msra.gmra.mxu1 %vm364_vm1, %v5842_v53 }
 0xeec   : > { %4843 = vmatpush3.bf16.msra.mxu1 %v5181_v16  ;;  %4846 = vmatprep.mubr.msk.bf16.mxu1 %vm5355_vm2, %v5354_v2 }
 0xeed   : > { %4844 = vmatprep.subr.bf16.mxu1 %v5354_v2 }
 0xef0   : > { %4845 = vmatpush3.bf16.msra.mxu1 %v5182_v17  ;;  %v5185_v17 = vld [vmem:[%s6382_s2 + $0xa0] sm:$0xff]  }
 0xef1   : > { %4850 = vmatprep.subr.bf16.mxu1 %v5354_v2 }
 0xef3   : > { %4847 = vmatmul.mubr.msk.bf16.vlgmr.msra.gmra.mxu1 %vm364_vm1, %v5842_v53 }
 0xef4   : > { %4851 = vmatpush3.bf16.msra.mxu1 %v5183_v13  ;;  %4854 = vmatprep.mubr.msk.bf16.mxu1 %vm5355_vm2, %v5354_v2 }
 0xef5   : > { %4852 = vmatprep.subr.bf16.mxu1 %v5354_v2 }
 0xef8   : > { %4853 = vmatpush3.bf16.msra.mxu1 %v5184_v18 }
 0xef9   : > { %4858 = vmatprep.subr.bf16.mxu1 %v5354_v2 }
 0xefb   : > { %4855 = vmatmul.mubr.msk.bf16.vlgmr.msra.gmra.mxu1 %vm364_vm1, %v5842_v53 }
 0xefc   : > { %4860 = vmatprep.mubr.msk.bf16.mxu1 %vm5355_vm2, %v5354_v2 }
 0xfab   : > { %v1726_v19 = vpop.f32.mrf.mxu1 }
 0xfac   : > { %v1727_v27 = vadd.f32 %v5585_v40, %v1726_v19 }
 0xfad   : > { %v4840_v20 = vpop.f32.mrf.mxu1 }
 0xfae   : > { %v1857_v35 = vpack.c.bf16 %v1727_v27, %v1727_v27  ;;  %v5186_v20 = vld [vmem:[%s6382_s2 + $0x98] sm:$0xff]  }
 0xfaf   : > { %v1729_v21 = vpop.f32.mrf.mxu1 }
 0xfb0   : > { %v1730_v38 = vadd.f32 %v5585_v40, %v1729_v21  ;;  %v5187_v21 = vld [vmem:[%s6382_s2 + $0xb0] sm:$0xff]  }
 0xfb1   : > { %v4841_v22 = vpop.f32.mrf.mxu1 }
 0xfb2   : > { %v1858_v45 = vpack.c.bf16 %v1730_v38, %v1730_v38 }
 0xfb3   : > { %v1788_v15 = vpop.f32.mrf.mxu1 }
 0xfb4   : > { %v1789_v31 = vadd.f32 %v5579_v33, %v1788_v15  ;;  %v5188_v15 = vld [vmem:[%s6382_s2 + $0xa8] sm:$0xff]  }
 0xfb5   : > { %v4848_v37 = vpop.f32.mrf.mxu1 }
 0xfb6   : > { %v1859_v59 = vpack.c.bf16 %v1789_v31, %v1789_v31  ;;  %v5189_v31 = vld [vmem:[%s6382_s2 + $0xc0] sm:$0xff]   ;;  %v5190_v37 = vld [vmem:[%s6382_s2 + $0xb8] sm:$0xff]  }
 0xfb7   : > { %v1791_v0 = vpop.f32.mrf.mxu1 }
 0xfb8   : > { %v1865_v1 = vsel %vm638_vm3, %v1859_v59, 0  ;;  %v1792_v23 = vadd.f32 %v5579_v33, %v1791_v0 }
 0xfb9   : > { %v4849_v25 = vpop.f32.mrf.mxu1  ;;  %4859 = vmatpush3.bf16.xpose.msra.mxu1 %v1865_v1 }
 0xfba   : > { %v1860_v30 = vpack.c.bf16 %v1792_v23, %v1792_v23  ;;  %4870 = vmatprep.subr.bf16.mxu1 %v5354_v2 }
 0xfbb   : > { %v1850_v3 = vpop.f32.mrf.mxu1 }
 0xfbc   : > { %v1911_v32 = vsel %vm638_vm3, %v1860_v30, 0  ;;  %v1851_v7 = vadd.f32 %v5596_v55, %v1850_v3 }
 0xfbd   : > { %v4856_v60 = vpop.f32.mrf.mxu1  ;;  %4865 = vmatpush3.bf16.xpose.msra.mxu0 %v1911_v32 }
 0xfbe   : > { %v1973_v39 = vpack.c.bf16 %v1851_v7, %v1851_v7  ;;  %4876 = vmatprep.subr.bf16.mxu0 %v5354_v2 }
 0xfbf   : > { %v1853_v33 = vpop.f32.mrf.mxu1 }
 0xfc0   : > { %v1979_v42 = vsel %vm757_vm4, %v1973_v39, 0  ;;  %v1854_v46 = vadd.f32 %v5596_v55, %v1853_v33  ;;  %4861 = vmatmul.mubr.msk.bf16.vlgmr.msra.gmra.mxu1 %vm638_vm3, %v1857_v35 }
 0xfc1   : > { %v4857_v44 = vpop.f32.mrf.mxu1  ;;  %4871 = vmatpush3.bf16.msra.mxu1 %v1979_v42  ;;  %4872 = vmatprep.mubr.msk.bf16.mxu1 %vm5355_vm2, %v5354_v2  ;;  %v4443_v42 = vld [vmem:[%s6383_s3 + $0x11] ss:$0 sm:$0xff] }
 0xfc2   : > { %v1974_v47 = vpack.c.bf16 %v1854_v46, %v1854_v46  ;;  %4882 = vmatprep.subr.bf16.mxu1 %v5354_v2  ;;  %v4435_v44 = vld [vmem:[%s6383_s3 + $0xf] ss:$0 sm:$0xff] }
 0xfc4   : > { %v2025_v40 = vsel %vm757_vm4, %v1974_v47, 0  ;;  %4867 = vmatmul.mubr.msk.bf16.vlgmr.msra.gmra.mxu0 %vm638_vm3, %v1858_v45 }
 0xfc5   : > { %4877 = vmatpush3.bf16.msra.mxu0 %v2025_v40  ;;  %4878 = vmatprep.mubr.msk.bf16.mxu0 %vm5355_vm2, %v5354_v2 }
 0xfc6   : > { %4890 = vmatprep.subr.bf16.mxu0 %v5354_v2 }
0x1080   : > { %v1901_v55 = vpop.f32.mrf.mxu1 }
0x1081   : > { %v1953_v48 = vmul.f32 0.25, %v1901_v55 }
0x1082   : > { %v4862_v49 = vpop.f32.mrf.mxu1 }
0x1083   : > { %v1955_v41 = vadd.f32 %v1953_v48, %v5616_v14 }
0x1084   : > { %v1904_v43 = vpop.f32.mrf.mxu1  ;;  %v1947_v51 = vpop.f32.mrf.mxu0 }
0x1085   : > { %v1957_v52 = vmul.f32 1.442695, %v1955_v41  ;;  %v1954_v54 = vmul.f32 0.25, %v1947_v51 }
0x1086   : > { %v4863_v56 = vpop.f32.mrf.mxu1  ;;  %v4868_v57 = vpop.f32.mrf.mxu0 }
0x1087   : > { %5249 = vpow2.f32 %v1957_v52  ;;  %v1956_v58 = vadd.f32 %v1954_v54, %v5616_v14 }
0x1088   : > { %v1950_v61 = vpop.f32.mrf.mxu0 }
0x1089   : > { %v1959_v62 = vmul.f32 1.442695, %v1956_v58 }
0x108a   : > { %v4869_v63 = vpop.f32.mrf.mxu0 }
0x108b   : > { %5251 = vpow2.f32 %v1959_v62 }
0x1094   : > { %v5250_v4 = vpop.eup %5249 }
0x1095   : > { %v1961_v5 = vsel %vm739_vm6, %v5250_v4, 0.0 }
0x1096   : > { %1962 = vadd.xlane.f32.xlu1 %v1961_v5 }
0x1098   : > { %v5252_v8 = vpop.eup %5251 }
0x1099   : > { %v1964_v9 = vsel %vm739_vm6, %v5252_v8, 0.0 }
0x109a   : > { %1965 = vadd.xlane.f32.xlu0 %v1964_v9 }
0x111f   : > { %v1963_v10 = vpop.xlane.xlu1 %1962 }
0x1120   : > { %5253 = vrcp.f32 %v1963_v10 }
0x1123   : > { %v1966_v12 = vpop.xlane.xlu0 %1965 }
0x1124   : > { %5255 = vrcp.f32 %v1966_v12 }
0x112d   : > { %v5254_v29 = vpop.eup %5253 }
0x112e   : > { %v1969_v16 = vmul.f32 %v5254_v29, %v5250_v4 }
0x1130   : > { %v1971_v13 = vpack.c.bf16 %v1969_v16, %v1969_v16 }
0x1131   : > { %v5256_v18 = vpop.eup %5255 }
0x1132   : > { %4873 = vmatmul.mubr.msk.bf16.vlgmr.msra.gmra.mxu1 %vm739_vm6, %v1971_v13  ;;  %v1970_v19 = vmul.f32 %v5256_v18, %v5252_v8 }
0x1133   : > { %4883 = vmatpush3.bf16.msra.mxu1 %v5185_v17  ;;  %4886 = vmatprep.mubr.msk.bf16.mxu1 %vm5355_vm2, %v5354_v2 }
0x1134   : > { %v1972_v22 = vpack.c.bf16 %v1970_v19, %v1970_v19  ;;  %4884 = vmatprep.subr.bf16.mxu1 %v5354_v2 }
0x1136   : > { %4879 = vmatmul.mubr.msk.bf16.vlgmr.msra.gmra.mxu0 %vm739_vm6, %v1972_v22 }
0x1137   : > { %4885 = vmatpush3.bf16.msra.mxu1 %v5186_v20  ;;  %4891 = vmatpush3.bf16.msra.mxu0 %v5187_v21 }
0x1138   : > { %4892 = vmatprep.subr.bf16.mxu0 %v5354_v2  ;;  %4898 = vmatprep.subr.bf16.mxu1 %v5354_v2 }
0x1139   : > { %4894 = vmatprep.mubr.msk.bf16.mxu0 %vm5355_vm2, %v5354_v2 }
0x113a   : > { %4887 = vmatmul.mubr.msk.bf16.vlgmr.msra.gmra.mxu1 %vm364_vm1, %v5842_v53 }
0x113b   : > { %4893 = vmatpush3.bf16.msra.mxu0 %v5188_v15  ;;  %4899 = vmatpush3.bf16.msra.mxu1 %v5189_v31 }
0x113c   : > { %4900 = vmatprep.subr.bf16.mxu1 %v5354_v2  ;;  %4902 = vmatprep.mubr.msk.bf16.mxu1 %vm5355_vm2, %v5354_v2 }
0x113d   : > { %4906 = vmatprep.subr.bf16.mxu0 %v5354_v2 }
0x113e   : > { %4895 = vmatmul.mubr.msk.bf16.vlgmr.msra.gmra.mxu0 %vm364_vm1, %v5842_v53 }
0x113f   : > { %4901 = vmatpush3.bf16.msra.mxu1 %v5190_v37  ;;  %4908 = vmatprep.mubr.msk.bf16.mxu0 %vm5355_vm2, %v5354_v2 }
0x1140   : > { %4912 = vmatprep.subr.bf16.mxu1 %v5354_v2 }
0x1142   : > { %4903 = vmatmul.mubr.msk.bf16.vlgmr.msra.gmra.mxu1 %vm364_vm1, %v5842_v53 }
0x1143   : > { %4914 = vmatprep.mubr.msk.bf16.mxu1 %vm5355_vm2, %v5354_v2 }
0x11f2   : > { %v5935_v59 = vpop.f32.mrf.mxu1 }
0x11f4   : > { %v4874_v0 = vpop.f32.mrf.mxu1 }
0x11f6   : > { %v2018_v1 = vpop.f32.mrf.mxu1  ;;  %v5937_v23 = vpop.f32.mrf.mxu0 }
0x11f7   : > { %v2067_v25 = vpack.c.bf16 %v5937_v23, %v5935_v59 }
0x11f8   : > { %v4875_v27 = vpop.f32.mrf.mxu1  ;;  %v4880_v30 = vpop.f32.mrf.mxu0 }
0x11fa   : > { %v2064_v3 = vpop.f32.mrf.mxu0  ;;  %v2125_v32 = vpop.f32.mrf.mxu1 }
0x11fb   : > { %v2126_v43 = vadd.f32 %v4435_v44, %v2125_v32 }
0x11fc   : > { %v4881_v7 = vpop.f32.mrf.mxu0  ;;  %v4888_v60 = vpop.f32.mrf.mxu1 }
0x11fd   : > { %v2256_v61 = vpack.c.bf16 %v2126_v43, %v2126_v43 }
0x11fe   : > { %v2128_v35 = vpop.f32.mrf.mxu1  ;;  %v2187_v53 = vpop.f32.mrf.mxu0 }
0x11ff   : > { %v2188_v38 = vadd.f32 %v5652_v24, %v2187_v53  ;;  %v2129_v62 = vadd.f32 %v4435_v44, %v2128_v35  ;;  %v5191_v35 = vld [vmem:[%s6382_s2 + $0x90] sm:$0xff]  }
0x1200   : > { %v4889_v39 = vpop.f32.mrf.mxu1  ;;  %v4896_v33 = vpop.f32.mrf.mxu0 }
0x1201   : > { %v2258_v46 = vpack.c.bf16 %v2188_v38, %v2188_v38  ;;  %v2257_v4 = vpack.c.bf16 %v2129_v62, %v2129_v62  ;;  %v5192_v38 = vld [vmem:[%s6382_s2 + $0xc8] sm:$0xff]  }
0x1202   : > { %v2190_v45 = vpop.f32.mrf.mxu0  ;;  %v2249_v47 = vpop.f32.mrf.mxu1 }
0x1203   : > { %v2264_v40 = vsel %vm638_vm3, %v2258_v46, 0  ;;  %v2191_v55 = vadd.f32 %v5652_v24, %v2190_v45  ;;  %v2250_v48 = vadd.f32 %v4443_v42, %v2249_v47 }
0x1204   : > { %v4897_v49 = vpop.f32.mrf.mxu0  ;;  %v4904_v41 = vpop.f32.mrf.mxu1  ;;  %4907 = vmatpush3.bf16.xpose.msra.mxu0 %v2264_v40 }
0x1205   : > { %v2259_v51 = vpack.c.bf16 %v2191_v55, %v2191_v55  ;;  %4918 = vmatprep.subr.bf16.mxu0 %v5354_v2  ;;  %v2372_v56 = vpack.c.bf16 %v2250_v48, %v2250_v48 }
0x1206   : > { %v2252_v52 = vpop.f32.mrf.mxu1 }
0x1207   : > { %v2310_v54 = vsel %vm638_vm3, %v2259_v51, 0  ;;  %v2253_v57 = vadd.f32 %v4443_v42, %v2252_v52  ;;  %v2378_v24 = vsel %vm757_vm4, %v2372_v56, 0 }
0x1208   : > { %v4905_v58 = vpop.f32.mrf.mxu1  ;;  %4913 = vmatpush3.bf16.xpose.msra.mxu1 %v2310_v54 }
0x1209   : > { %4924 = vmatprep.subr.bf16.mxu1 %v5354_v2  ;;  %v2373_v63 = vpack.c.bf16 %v2253_v57, %v2253_v57 }
0x120b   : > { %4909 = vmatmul.mubr.msk.bf16.vlgmr.msra.gmra.mxu0 %vm638_vm3, %v2256_v61  ;;  %v2424_v5 = vsel %vm757_vm4, %v2373_v63, 0 }
0x120c   : > { %4919 = vmatpush3.bf16.msra.mxu0 %v2378_v24  ;;  %4920 = vmatprep.mubr.msk.bf16.mxu0 %vm5355_vm2, %v5354_v2 }
0x120d   : > { %4930 = vmatprep.subr.bf16.mxu0 %v5354_v2 }
0x120f   : > { %4915 = vmatmul.mubr.msk.bf16.vlgmr.msra.gmra.mxu1 %vm638_vm3, %v2257_v4 }
0x1210   : > { %4925 = vmatpush3.bf16.msra.mxu1 %v2424_v5  ;;  %4926 = vmatprep.mubr.msk.bf16.mxu1 %vm5355_vm2, %v5354_v2 }
0x1211   : > { %4936 = vmatprep.subr.bf16.mxu1 %v5354_v2 }
0x12cb   : > { %v2300_v8 = vpop.f32.mrf.mxu0 }
0x12cc   : > { %v2352_v9 = vmul.f32 0.25, %v2300_v8 }
0x12cd   : > { %v4910_v10 = vpop.f32.mrf.mxu0 }
0x12ce   : > { %v2354_v12 = vadd.f32 %v2352_v9, %v5616_v14 }
0x12cf   : > { %v2303_v29 = vpop.f32.mrf.mxu0  ;;  %v2346_v16 = vpop.f32.mrf.mxu1 }
0x12d0   : > { %v2356_v17 = vmul.f32 1.442695, %v2354_v12  ;;  %v2353_v13 = vmul.f32 0.25, %v2346_v16  ;;  %v5193_v29 = vld [vmem:[%s6382_s2 + $0xd8] sm:$0xff]   ;;  %v5194_v16 = vld [vmem:[%s6382_s2 + $0xd0] sm:$0xff]  }
0x12d1   : > { %v4911_v18 = vpop.f32.mrf.mxu0  ;;  %v4916_v19 = vpop.f32.mrf.mxu1 }
0x12d2   : > { %5257 = vpow2.f32 %v2356_v17  ;;  %v2355_v20 = vadd.f32 %v2353_v13, %v5616_v14 }
0x12d3   : > { %v2349_v21 = vpop.f32.mrf.mxu1 }
0x12d4   : > { %v2358_v22 = vmul.f32 1.442695, %v2355_v20 }
0x12d5   : > { %v4917_v15 = vpop.f32.mrf.mxu1 }
0x12d6   : > { %5259 = vpow2.f32 %v2358_v22 }
0x12df   : > { %v5258_v31 = vpop.eup %5257 }
0x12e0   : > { %v2360_v37 = vsel %vm739_vm6, %v5258_v31, 0.0 }
0x12e1   : > { %2361 = vadd.xlane.f32.xlu0 %v2360_v37 }
0x12e3   : > { %v5260_v0 = vpop.eup %5259 }
0x12e4   : > { %v2363_v1 = vsel %vm739_vm6, %v5260_v0, 0.0 }
0x12e5   : > { %2364 = vadd.xlane.f32.xlu1 %v2363_v1 }
0x136a   : > { %v2362_v27 = vpop.xlane.xlu0 %2361 }
0x136b   : > { %5261 = vrcp.f32 %v2362_v27 }
0x136e   : > { %v2365_v30 = vpop.xlane.xlu1 %2364 }
0x136f   : > { %5263 = vrcp.f32 %v2365_v30 }
0x1378   : > { %v5262_v3 = vpop.eup %5261 }
0x1379   : > { %v2368_v32 = vmul.f32 %v5262_v3, %v5258_v31 }
0x137b   : > { %v2370_v7 = vpack.c.bf16 %v2368_v32, %v2368_v32  ;;  %v5195_v32 = vld [vmem:[%s6382_s2 + $0x118] sm:$0xff]  }
0x137c   : > { %v5264_v14 = vpop.eup %5263 }
0x137d   : > { %4921 = vmatmul.mubr.msk.bf16.vlgmr.msra.gmra.mxu0 %vm739_vm6, %v2370_v7  ;;  %v2369_v60 = vmul.f32 %v5264_v14, %v5260_v0  ;;  %v5198_v7 = vld [vmem:[%s6382_s2 + $0x100] sm:$0xff]   ;;  %v5199_v14 = vld [vmem:[%s6382_s2 + $0xf8] sm:$0xff]  }
0x137e   : > { %4932 = vmatprep.mubr.msk.bf16.mxu0 %vm5355_vm2, %v5354_v2  ;;  %4931 = vmatpush3.bf16.msra.mxu0 %v5192_v38 }
0x137f   : > { %v2371_v53 = vpack.c.bf16 %v2369_v60, %v2369_v60  ;;  %4942 = vmatprep.subr.bf16.mxu0 %v5354_v2  ;;  %v5200_v60 = vld [vmem:[%s6382_s2 + $0xf0] sm:$0xff]  }
0x1381   : > { %4927 = vmatmul.mubr.msk.bf16.vlgmr.msra.gmra.mxu1 %vm739_vm6, %v2371_v53  ;;  %v5202_v53 = vld [vmem:[%s6382_s2 + $0xe0] sm:$0xff]  }
0x1382   : > { %4937 = vmatpush3.bf16.msra.mxu1 %v5191_v35  ;;  %4938 = vmatprep.mubr.msk.bf16.mxu1 %vm5355_vm2, %v5354_v2  ;;  %v5201_v35 = vld [vmem:[%s6382_s2 + $0xe8] sm:$0xff]  }
0x1383   : > { %4950 = vmatprep.subr.bf16.mxu1 %v5354_v2 }
0x1389   : > { %4939 = vmatmul.mubr.msk.bf16.vlgmr.msra.gmra.mxu1 %vm638_vm3, %v2067_v25 }
0x138a   : > { %4966 = vmatprep.mubr.msk.bf16.mxu1 %vm5355_vm2, %v5354_v2  ;;  %4951 = vmatpush3.bf16.msra.mxu1 %v5195_v32 }
0x138b   : > { %4952 = vmatprep.subr.bf16.mxu1 %v5354_v2 }
0x143d   : > { %v2414_v39 = vpop.f32.mrf.mxu0 }
0x143f   : > { %v4922_v33 = vpop.f32.mrf.mxu0 }
0x1441   : > { %v2417_v42 = vpop.f32.mrf.mxu0  ;;  %v2460_v46 = vpop.f32.mrf.mxu1 }
0x1442   : > { %v2466_v44 = vpack.c.bf16 %v2460_v46, %v2414_v39 }
0x1443   : > { %v4923_v45 = vpop.f32.mrf.mxu0  ;;  %v4928_v47 = vpop.f32.mrf.mxu1 }
0x1444   : > { %4933 = vmatmul.mubr.msk.bf16.vlgmr.msra.gmra.mxu0 %vm638_vm3, %v2466_v44 }
0x1445   : > { %v2463_v59 = vpop.f32.mrf.mxu1  ;;  %4946 = vmatprep.mubr.msk.bf16.mxu0 %vm5355_vm2, %v5354_v2  ;;  %4943 = vmatpush3.bf16.msra.mxu0 %v5193_v29 }
0x1446   : > { %4944 = vmatprep.subr.bf16.mxu0 %v5354_v2 }
0x1447   : > { %v4929_v23 = vpop.f32.mrf.mxu1 }
0x1449   : > { %v2562_v25 = vpop.f32.mrf.mxu1  ;;  %4945 = vmatpush3.bf16.msra.mxu0 %v5194_v16 }
0x144a   : > { %4970 = vmatprep.subr.bf16.mxu0 %v5354_v2 }
0x144b   : > { %v4940_v40 = vpop.f32.mrf.mxu1 }
0x144d   : > { %v2565_v55 = vpop.f32.mrf.mxu1 }
0x144f   : > { %v4941_v48 = vpop.f32.mrf.mxu1 }
0x1504   : > { %v2512_v49 = vpop.f32.mrf.mxu0 }
0x1505   : > { %v2563_v41 = vadd.f32 %v2562_v25, %v2512_v49 }
0x1506   : > { %v4934_v43 = vpop.f32.mrf.mxu0 }
0x1507   : > { %v2574_v51 = vadd.f32 %v5710_v28, %v2563_v41 }
0x1508   : > { %v2515_v52 = vpop.f32.mrf.mxu0 }
0x1509   : > { %v5992_v54 = vadd.f32 %v2574_v51, %v5813_v34  ;;  %v2566_v56 = vadd.f32 %v2565_v55, %v2515_v52 }
0x150a   : > { %v4935_v57 = vpop.f32.mrf.mxu0 }
0x150b   : > { %v2575_v58 = vadd.f32 %v5710_v28, %v2566_v56  ;;  %v2580_v61 = vsel %vm364_vm1, %v5992_v54, 0.0 }
0x150c   : > { %2581 = vadd.xlane.f32.xlu0 %v2580_v61 }
0x150d   : > { %v5998_v62 = vadd.f32 %v2575_v58, %v5819_v36 }
0x150f   : > { %v2583_v24 = vsel %vm364_vm1, %v5998_v62, 0.0 }
0x1510   : > { %2584 = vadd.xlane.f32.xlu1 %v2583_v24 }
0x1595   : > { %v2582_v63 = vpop.xlane.xlu0 %2581 }
0x1596   : > { %v2586_v4 = vmul.f32 0.03125, %v2582_v63 }
0x1598   : > { %v2588_v34 = vsub.f32 %v5992_v54, %v2586_v4 }
0x1599   : > { %v2585_v5 = vpop.xlane.xlu1 %2584 }
0x159a   : > { %v2587_v8 = vmul.f32 0.03125, %v2585_v5  ;;  %v2590_v9 = vmul.f32 %v2588_v34, %v2588_v34 }
0x159c   : > { %v2589_v28 = vsub.f32 %v5998_v62, %v2587_v8  ;;  %v2592_v10 = vsel %vm364_vm1, %v2590_v9, 0.0 }
0x159d   : > { %2593 = vadd.xlane.f32.xlu0 %v2592_v10 }
0x159e   : > { %v2591_v12 = vmul.f32 %v2589_v28, %v2589_v28 }
0x15a0   : > { %v2595_v36 = vsel %vm364_vm1, %v2591_v12, 0.0 }
0x15a1   : > { %2596 = vadd.xlane.f32.xlu1 %v2595_v36 }
0x1626   : > { %v2594_v17 = vpop.xlane.xlu0 %2593 }
0x1627   : > { %v2598_v13 = vmul.f32 0.03125, %v2594_v17 }
0x1629   : > { %v2600_v18 = vadd.f32 1e-05, %v2598_v13  ;;  %v5204_v13 = vld [vmem:[%s6382_s2 + $0x120] sm:$0xff]  }
0x162a   : > { %v2597_v19 = vpop.xlane.xlu1 %2596 }
0x162b   : > { %5265 = vrsqrt.f32 %v2600_v18  ;;  %v2599_v20 = vmul.f32 0.03125, %v2597_v19 }
0x162d   : > { %v2601_v21 = vadd.f32 1e-05, %v2599_v20 }
0x162f   : > { %5267 = vrsqrt.f32 %v2601_v21 }
0x1638   : > { %v5266_v22 = vpop.eup %5265 }
0x1639   : > { %v2604_v15 = vmul.f32 %v5266_v22, %v2588_v34  ;;  %v4473_v22 = vld [vmem:[%s6383_s3 + $0x17] ss:$0 sm:$0xff] }
0x163b   : > { %v2610_v0 = vmul.f32 %v5739_v6, %v2604_v15 }
0x163c   : > { %v5268_v31 = vpop.eup %5267 }
0x163d   : > { %v2605_v37 = vmul.f32 %v5268_v31, %v2589_v28  ;;  %v2616_v27 = vadd.f32 %v5745_v11, %v2610_v0 }
0x163f   : > { %v2611_v1 = vmul.f32 %v5739_v6, %v2605_v37  ;;  %v5196_v6 = vld [vmem:[%s6382_s2 + $0x110] sm:$0xff]   ;;  %v4474_v37 = vld [vmem:[%s6383_s3 + $0x18] ss:$0 sm:$0xff] }
0x1640   : > { %4953 = vmatpush3.bf16.msra.mxu1 %v5196_v6 }
0x1641   : > { %v2617_v30 = vadd.f32 %v5745_v11, %v2611_v1  ;;  %4954 = vmatprep.subr.bf16.mxu1 %v5354_v2  ;;  %v5197_v11 = vld [vmem:[%s6382_s2 + $0x108] sm:$0xff]  }
0x1643   : > { %v2618_v3 = vpack.c.bf16 %v2617_v30, %v2616_v27 }
0x1644   : > { %4955 = vmatpush3.bf16.msra.mxu1 %v5197_v11 }
0x1645   : > { %4947 = vmatmul.mubr.msk.bf16.vlgmr.msra.gmra.mxu0 %vm364_vm1, %v2618_v3  ;;  %4956 = vmatprep.subr.bf16.mxu1 %v5354_v2 }
0x1646   : > { %4974 = vmatprep.mubr.msk.bf16.mxu0 %vm5355_vm2, %v5354_v2 }
0x1648   : > { %4957 = vmatpush3.bf16.msra.mxu1 %v5198_v7 }
0x1649   : > { %4958 = vmatprep.subr.bf16.mxu1 %v5354_v2 }
0x164c   : > { %4959 = vmatpush3.bf16.msra.mxu1 %v5199_v14 }
0x164d   : > { %4960 = vmatprep.subr.bf16.mxu1 %v5354_v2 }
0x1650   : > { %4961 = vmatpush3.bf16.msra.mxu1 %v5200_v60 }
0x1651   : > { %4962 = vmatprep.subr.bf16.mxu1 %v5354_v2 }
0x1654   : > { %4963 = vmatpush3.bf16.msra.mxu1 %v5201_v35 }
0x1655   : > { %4964 = vmatprep.subr.bf16.mxu1 %v5354_v2 }
0x1658   : > { %4965 = vmatpush3.bf16.msra.mxu1 %v5202_v53 }
0x1705   : > { %v2677_v38 = vpop.f32.mrf.mxu0 }
0x1706   : > { %v2678_v39 = vadd.f32 %v5788_v26, %v2677_v38 }
0x1707   : > { %v4948_v33 = vpop.f32.mrf.mxu0 }
0x1708   : > { %v4462_v42 = vmul.f32 -1.702, %v2678_v39 }
0x1709   : > { %v2680_v46 = vpop.f32.mrf.mxu0 }
0x170a   : > { %v2688_v44 = vmul.f32 1.442695, %v4462_v42  ;;  %v2681_v45 = vadd.f32 %v5788_v26, %v2680_v46 }
0x170b   : > { %v4949_v47 = vpop.f32.mrf.mxu0 }
0x170c   : > { %5269 = vpow2.f32 %v2688_v44  ;;  %v4463_v59 = vmul.f32 -1.702, %v2681_v45 }
0x170e   : > { %v2690_v23 = vmul.f32 1.442695, %v4463_v59 }
0x1710   : > { %5271 = vpow2.f32 %v2690_v23 }
0x1719   : > { %v5270_v25 = vpop.eup %5269 }
0x171a   : > { %v2692_v40 = vadd.f32 1.0, %v5270_v25 }
0x171c   : > { %5273 = vrcp.f32 %v2692_v40 }
0x171d   : > { %v5272_v55 = vpop.eup %5271 }
0x171e   : > { %v2693_v48 = vadd.f32 1.0, %v5272_v55 }
0x1720   : > { %5275 = vrcp.f32 %v2693_v48 }
0x1729   : > { %v5274_v49 = vpop.eup %5273 }
0x172a   : > { %v2698_v43 = vmul.f32 %v5274_v49, %v2678_v39 }
0x172d   : > { %v5276_v41 = vpop.eup %5275 }
0x172e   : > { %v2699_v51 = vmul.f32 %v5276_v41, %v2681_v45 }
0x1730   : > { %v2700_v52 = vpack.c.bf16 %v2699_v51, %v2698_v43 }
0x1732   : > { %4967 = vmatmul.mubr.bf16.vlgmr.msra.gmra.mxu1 %v2700_v52 }
0x17f2   : > { %v2804_v56 = vpop.f32.mrf.mxu1 }
0x17f3   : > { %v2805_v58 = vadd.f32 %v5797_v50, %v2804_v56 }
0x17f4   : > { %v4968_v57 = vpop.f32.mrf.mxu1 }
0x17f5   : > { %v2811_v4 = vadd.f32 %v2805_v58, %v5992_v54  ;;  %v5203_v54 = vld [vmem:[%s6382_s2 + $0x128] sm:$0xff]  }
0x17f6   : > { %v2807_v26 = vpop.f32.mrf.mxu1  ;;  %4971 = vmatpush3.bf16.msra.mxu0 %v5203_v54 }
0x17f7   : > { %v2808_v61 = vadd.f32 %v5797_v50, %v2807_v26  ;;  %4972 = vmatprep.subr.bf16.mxu0 %v5354_v2 }
0x17f8   : > { %v4969_v24 = vpop.f32.mrf.mxu1 }
0x17f9   : > { %v2812_v63 = vadd.f32 %v2808_v61, %v5998_v62 }
0x17fa   : > { %4973 = vmatpush3.bf16.msra.mxu0 %v5204_v13 }
0x17fb   : > { %v2817_v34 = vrot.slane %v2812_v63, 7 }
0x17fd   : > { %v2819_v5 = vsel %vm2818_vm7, %v2817_v34, %v2811_v4 }
0x17fe   : > { %v2822_v8 = vsel %vm2821_vm8, %v2819_v5, 0.0 }
0x17ff   : > { %2823 = vadd.xlane.f32.xlu0 %v2822_v8 }
0x1888   : > { %v2824_v9 = vpop.xlane.xlu0 %2823 }
0x1889   : > { %v2825_v28 = vmul.f32 0.03125, %v2824_v9 }
0x188b   : > { %v2827_v10 = vrot.slane %v2825_v28, 1  ;;  %v2830_v12 = vsub.f32 %v2811_v4, %v2825_v28 }
0x188d   : > { %v2831_v36 = vsub.f32 %v2812_v63, %v2827_v10  ;;  %v2832_v16 = vmul.f32 %v2830_v12, %v2830_v12 }
0x188f   : > { %v2833_v29 = vmul.f32 %v2831_v36, %v2831_v36 }
0x1891   : > { %v2836_v50 = vrot.slane %v2833_v29, 7 }
0x1893   : > { %v2837_v17 = vsel %vm2818_vm7, %v2836_v50, %v2832_v16 }
0x1894   : > { %v2839_v62 = vsel %vm2821_vm8, %v2837_v17, 0.0 }
0x1895   : > { %2840 = vadd.xlane.f32.xlu1 %v2839_v62 }
0x191e   : > { %v2841_v18 = vpop.xlane.xlu1 %2840 }
0x191f   : > { %v2842_v19 = vmul.f32 0.03125, %v2841_v18 }
0x1921   : > { %v2843_v20 = vadd.f32 1e-05, %v2842_v19 }
0x1923   : > { %5277 = vrsqrt.f32 %v2843_v20 }
0x1930   : > { %v5278_v21 = vpop.eup %5277 }
0x1931   : > { %v2846_v15 = vrot.slane %v5278_v21, 1  ;;  %v2849_v31 = vmul.f32 %v5278_v21, %v2830_v12 }
0x1933   : > { %v2850_v0 = vmul.f32 %v2846_v15, %v2831_v36  ;;  %v2855_v1 = vmul.f32 %v4473_v22, %v2849_v31 }
0x1935   : > { %v2856_v27 = vmul.f32 %v4473_v22, %v2850_v0  ;;  %v2861_v2 = vadd.f32 %v4474_v37, %v2855_v1 }
0x1937   : > { %v2862_v30 = vadd.f32 %v4474_v37, %v2856_v27  ;;  %v2863_v3 = vpack.c.bf16 %v2861_v2, %v2861_v2 }
0x1939   : > { %v2864_v32 = vpack.c.bf16 %v2862_v30, %v2862_v30  ;;  %v2871_v11 = vunpack.c.l.b16 %v2863_v3 }
0x193b   : > { %v2872_v6 = vunpack.c.l.b16 %v2864_v32 }
0x193d   : > { %v2873_v7 = vrot.slane %v2872_v6, 7 }
0x193f   : > { %v2874_v14 = vsel %vm2818_vm7, %v2873_v7, %v2871_v11 }
0x1940   : > { %v2875_v60 = vpack.c.b16 %v2874_v14, %v2874_v14 }
0x1942   : > { %4975 = vmatmul.mubr.msk.bf16.vlgmr.msra.gmra.mxu0 %vm364_vm1, %v2875_v60 }
0x1a02   : > { %v2925_v35 = vpop.f32.mrf.mxu0 }
0x1a03   : > { %v2931_v53 = vmul.f32 %v2925_v35, %v2925_v35 }
0x1a04   : > { %v4976_v38 = vpop.f32.mrf.mxu0 }
0x1a05   : > { %v2933_v39 = vsel %vm2932_vm9, %v2931_v53, 0.0 }
0x1a06   : > { %2934 = vadd.xlane.f32.xlu0 %v2933_v39  ;;  %v2928_v33 = vpop.f32.mrf.mxu0 }
0x1a08   : > { %v4977_v42 = vpop.f32.mrf.mxu0 }
0x1a8f   : > { %v2935_v46 = vpop.xlane.xlu0 %2934 }
0x1a90   : > { %v2936_v44 = vmax.f32 %v2935_v46, 1e-24 }
0x1a92   : > { %5279 = vrsqrt.f32 %v2936_v44 }
0x1a9f   : > { %v5280_v45 = vpop.eup %5279 }
0x1aa0   : > { %v2938_v47 = vmul.f32 %v5280_v45, %v2925_v35 }
0x1aa2   : > { %2939 = vst [vmem:[%s5400_s21] sm:$0x3] %v2938_v47 }
0x1aa3 PF: > { %p4478_p5 = scmp.ne.s32.totalorder %s5391_s16, 1 }
0x1aa5   : > { %2943 = sbr.rel (%p4478_p5) target bundleno = 10147 (0x27a3), region = 44 }
0x1aaa   : > { %v2950_v59 = vld [vmem:[%s6381_s1] sm:$0xff]  ;;  %vm2957_vm10 = vcmask 261120   ;;  %v2951_v25 = vld [vmem:[%s6381_s1 + $0x8] sm:$0xff]  ;;  %v5281_v63 = vld [vmem:[%s6382_s2 + $0x138] sm:$0xff]   ;;  %v5357_v4 = vmov 0.0   ;;  %vm5358_vm11 = vmmov 0  }
0x1aab   : > { %v2952_v23 = vld [vmem:[%s6383_s3 + $0x19] sm:$0xff]  ;;  %4978 = vmatprep.subr.bf16.mxu0 %v5357_v4  ;;  %5002 = vmatprep.subr.bf16.mxu1 %v5357_v4  ;;  %v5282_v34 = vld [vmem:[%s6382_s2 + $0x130] sm:$0xff]   ;;  %v4479_v16 = vld [vmem:[%s6383_s3 + $0x21] ss:$0 sm:$0xff]  ;;  %vm3191_vm12 = vcmask 130048   ;;  %vm3310_vm13 = vcmask 1043456  }
0x1aac   : > { %v6086_v40 = vadd.f32 %v2952_v23, %v2950_v59  ;;  %v6088_v55 = vadd.f32 %v2952_v23, %v2951_v25  ;;  %4979 = vmatpush3.bf16.msra.mxu0 %v5281_v63  ;;  %4982 = vmatprep.mubr.msk.bf16.mxu0 %vm5358_vm11, %v5357_v4  ;;  %v4480_v54 = vld [vmem:[%s6383_s3 + $0x22] ss:$0 sm:$0xff]  ;;  %v5283_v20 = vld [vmem:[%s6382_s2 + $0x148] sm:$0xff]   ;;  %v5285_v15 = vld [vmem:[%s6382_s2 + $0x158] sm:$0xff]   ;;  %vm3292_vm15 = vcmask 64512   ;;  %vm4227_vm0 = vcmask 1041409  }
0x1aad   : > { %4980 = vmatprep.subr.bf16.mxu0 %v5357_v4  ;;  %5004 = vmatprep.mubr.msk.bf16.mxu1 %vm5358_vm11, %v5357_v4  ;;  %v5284_v22 = vld [vmem:[%s6382_s2 + $0x140] sm:$0xff]   ;;  %v5286_v31 = vld [vmem:[%s6382_s2 + $0x150] sm:$0xff]   ;;  %vm4286_vm1 = vcmask 1041408  }
0x1aae   : > { %v2958_v48 = vsel %vm2957_vm10, %v6086_v40, 0.0  ;;  %v2961_v49 = vsel %vm2957_vm10, %v6088_v55, 0.0  ;;  %v4485_v2 = vld [vmem:[%s6383_s3 + $0x24] ss:$0 sm:$0xff]  ;;  %v4481_v11 = vld [vmem:[%s6383_s3 + $0x23] ss:$0 sm:$0xff] }
0x1aaf   : > { %2959 = vadd.xlane.f32.xlu0 %v2958_v48  ;;  %v4489_v53 = vld [vmem:[%s6383_s3 + $0x25] ss:$0 sm:$0xff] }
0x1ab0   : > { %4981 = vmatpush3.bf16.msra.mxu0 %v5282_v34 }
0x1ab1   : > { %4986 = vmatprep.subr.bf16.mxu0 %v5357_v4 }
0x1ab3   : > { %2962 = vadd.xlane.f32.xlu0 %v2961_v49 }
0x1b38   : > { %v2960_v41 = vpop.xlane.xlu0 %2959 }
0x1b39   : > { %v2965_v43 = vmul.f32 0.03125, %v2960_v41 }
0x1b3b   : > { %v2967_v51 = vsub.f32 %v6086_v40, %v2965_v43 }
0x1b3c   : > { %v2963_v52 = vpop.xlane.xlu0 %2962 }
0x1b3d   : > { %v2966_v56 = vmul.f32 0.03125, %v2963_v52  ;;  %v2969_v57 = vmul.f32 %v2967_v51, %v2967_v51  ;;  %v2944_v52 = vlaneseq }
0x1b3f   : > { %v2968_v26 = vsub.f32 %v6088_v55, %v2966_v56  ;;  %v2971_v58 = vsel %vm2957_vm10, %v2969_v57, 0.0  ;;  %v6171_v56 = vshrl.u32 %v2944_v52, 7  ;;  %v2947_v57 = vand.u32 127, %v2944_v52 }
0x1b40   : > { %2972 = vadd.xlane.f32.xlu1 %v2971_v58 }
0x1b41   : > { %v2970_v61 = vmul.f32 %v2968_v26, %v2968_v26  ;;  %vm2948_vm14 = vcmp.le.s32.totalorder %v2947_v57, %v6171_v56 }
0x1b43   : > { %v2974_v24 = vsel %vm2957_vm10, %v2970_v61, 0.0 }
0x1b44   : > { %2975 = vadd.xlane.f32.xlu1 %v2974_v24 }
0x1bc9   : > { %v2973_v5 = vpop.xlane.xlu1 %2972 }
0x1bca   : > { %v2977_v8 = vmul.f32 0.03125, %v2973_v5 }
0x1bcc   : > { %v2979_v9 = vadd.f32 1e-05, %v2977_v8 }
0x1bcd   : > { %v2976_v28 = vpop.xlane.xlu1 %2975 }
0x1bce   : > { %5307 = vrsqrt.f32 %v2979_v9  ;;  %v2978_v10 = vmul.f32 0.03125, %v2976_v28 }
0x1bd0   : > { %v2980_v12 = vadd.f32 1e-05, %v2978_v10 }
0x1bd2   : > { %5309 = vrsqrt.f32 %v2980_v12 }
0x1bdb   : > { %v5308_v36 = vpop.eup %5307 }
0x1bdc   : > { %v2983_v29 = vmul.f32 %v5308_v36, %v2967_v51 }
0x1bde   : > { %v2989_v17 = vmul.f32 %v4479_v16, %v2983_v29 }
0x1bdf   : > { %v5310_v50 = vpop.eup %5309 }
0x1be0   : > { %v2984_v62 = vmul.f32 %v5310_v50, %v2968_v26  ;;  %v2995_v18 = vadd.f32 %v4480_v54, %v2989_v17  ;;  %v5359_v26 = vmov -1e+30  }
0x1be1   : > { %v6174_v58 = vsel %vm2948_vm14, 0.0, %v5359_v26 }
0x1be2   : > { %v2990_v13 = vmul.f32 %v4479_v16, %v2984_v62 }
0x1be4   : > { %v2996_v19 = vadd.f32 %v4480_v54, %v2990_v13 }
0x1be6   : > { %v6121_v21 = vpack.c.bf16 %v2996_v19, %v2995_v18 }
0x1be8   : > { %4983 = vmatmul.mubr.msk.bf16.vlgmr.msra.gmra.mxu0 %vm2957_vm10, %v6121_v21 }
0x1be9   : > { %4987 = vmatpush3.bf16.msra.mxu0 %v5283_v20  ;;  %4990 = vmatprep.mubr.msk.bf16.mxu0 %vm5358_vm11, %v5357_v4 }
0x1bea   : > { %4988 = vmatprep.subr.bf16.mxu0 %v5357_v4 }
0x1bed   : > { %4989 = vmatpush3.bf16.msra.mxu0 %v5284_v22 }
0x1bee   : > { %4994 = vmatprep.subr.bf16.mxu0 %v5357_v4 }
0x1bf0   : > { %4991 = vmatmul.mubr.msk.bf16.vlgmr.msra.gmra.mxu0 %vm2957_vm10, %v6121_v21 }
0x1bf1   : > { %4995 = vmatpush3.bf16.msra.mxu0 %v5285_v15  ;;  %4998 = vmatprep.mubr.msk.bf16.mxu0 %vm5358_vm11, %v5357_v4  ;;  %v5287_v15 = vld [vmem:[%s6382_s2 + $0x170] sm:$0xff]  }
0x1bf2   : > { %4996 = vmatprep.subr.bf16.mxu0 %v5357_v4 }
0x1bf5   : > { %4997 = vmatpush3.bf16.msra.mxu0 %v5286_v31 }
0x1bf6   : > { %5008 = vmatprep.subr.bf16.mxu0 %v5357_v4 }
0x1bf8   : > { %4999 = vmatmul.mubr.msk.bf16.vlgmr.msra.gmra.mxu0 %vm2957_vm10, %v6121_v21 }
0x1bf9   : > { %5010 = vmatprep.mubr.msk.bf16.mxu0 %vm5358_vm11, %v5357_v4 }
0x1ca8   : > { %v3056_v37 = vpop.f32.mrf.mxu0 }
0x1ca9   : > { %v3057_v38 = vadd.f32 %v4481_v11, %v3056_v37 }
0x1caa   : > { %v4984_v0 = vpop.f32.mrf.mxu0 }
0x1cab   : > { %v3187_v45 = vpack.c.bf16 %v3057_v38, %v3057_v38 }
0x1cac   : > { %v3059_v1 = vpop.f32.mrf.mxu0 }
0x1cad   : > { %v3060_v47 = vadd.f32 %v4481_v11, %v3059_v1  ;;  %v5288_v1 = vld [vmem:[%s6382_s2 + $0x168] sm:$0xff]  }
0x1cae   : > { %v4985_v27 = vpop.f32.mrf.mxu0 }
0x1caf   : > { %v3188_v41 = vpack.c.bf16 %v3060_v47, %v3060_v47  ;;  %v5289_v27 = vld [vmem:[%s6382_s2 + $0x180] sm:$0xff]  }
0x1cb0   : > { %v3118_v30 = vpop.f32.mrf.mxu0 }
0x1cb1   : > { %v3119_v3 = vadd.f32 %v4485_v2, %v3118_v30  ;;  %v5290_v30 = vld [vmem:[%s6382_s2 + $0x178] sm:$0xff]  }
0x1cb2   : > { %v4992_v32 = vpop.f32.mrf.mxu0 }
0x1cb3   : > { %v3189_v6 = vpack.c.bf16 %v3119_v3, %v3119_v3  ;;  %v5291_v3 = vld [vmem:[%s6382_s2 + $0x190] sm:$0xff]   ;;  %v5292_v32 = vld [vmem:[%s6382_s2 + $0x188] sm:$0xff]  }
0x1cb4   : > { %v3121_v7 = vpop.f32.mrf.mxu0 }
0x1cb5   : > { %v3122_v14 = vadd.f32 %v4485_v2, %v3121_v7  ;;  %v3196_v60 = vsel %vm3191_vm12, %v3189_v6, 0 }
0x1cb6   : > { %v4993_v35 = vpop.f32.mrf.mxu0  ;;  %5003 = vmatpush3.bf16.xpose.msra.mxu1 %v3196_v60 }
0x1cb7   : > { %v3190_v39 = vpack.c.bf16 %v3122_v14, %v3122_v14  ;;  %5014 = vmatprep.subr.bf16.mxu1 %v5357_v4 }
0x1cb8   : > { %v3180_v33 = vpop.f32.mrf.mxu0 }
0x1cb9   : > { %v3242_v42 = vsel %vm3191_vm12, %v3190_v39, 0  ;;  %v3181_v46 = vadd.f32 %v4489_v53, %v3180_v33 }
0x1cba   : > { %v5000_v44 = vpop.f32.mrf.mxu0  ;;  %5009 = vmatpush3.bf16.xpose.msra.mxu0 %v3242_v42 }
0x1cbb   : > { %v3305_v59 = vpack.c.bf16 %v3181_v46, %v3181_v46  ;;  %5020 = vmatprep.subr.bf16.mxu0 %v5357_v4 }
0x1cbc   : > { %v3183_v23 = vpop.f32.mrf.mxu0 }
0x1cbd   : > { %v3312_v25 = vsel %vm3310_vm13, %v3305_v59, 0  ;;  %v3184_v48 = vadd.f32 %v4489_v53, %v3183_v23  ;;  %5005 = vmatmul.mubr.msk.bf16.vlgmr.msra.gmra.mxu1 %vm3191_vm12, %v3187_v45  ;;  %v4505_v23 = vld [vmem:[%s6383_s3 + $0x28] ss:$0 sm:$0xff] }
0x1cbe   : > { %v5001_v49 = vpop.f32.mrf.mxu0  ;;  %5015 = vmatpush3.bf16.msra.mxu1 %v3312_v25  ;;  %5016 = vmatprep.mubr.msk.bf16.mxu1 %vm5358_vm11, %v5357_v4 }
0x1cbf   : > { %v3306_v43 = vpack.c.bf16 %v3184_v48, %v3184_v48  ;;  %5026 = vmatprep.subr.bf16.mxu1 %v5357_v4  ;;  %v4497_v48 = vld [vmem:[%s6383_s3 + $0x26] ss:$0 sm:$0xff] }
0x1cc1   : > { %v3358_v51 = vsel %vm3310_vm13, %v3306_v43, 0  ;;  %5011 = vmatmul.mubr.msk.bf16.vlgmr.msra.gmra.mxu0 %vm3191_vm12, %v3188_v41 }
0x1cc2   : > { %5021 = vmatpush3.bf16.msra.mxu0 %v3358_v51  ;;  %5022 = vmatprep.mubr.msk.bf16.mxu0 %vm5358_vm11, %v5357_v4 }
0x1cc3   : > { %5034 = vmatprep.subr.bf16.mxu0 %v5357_v4 }
0x1d7d   : > { %v3232_v61 = vpop.f32.mrf.mxu1 }
0x1d7e   : > { %v3284_v24 = vmul.f32 0.25, %v3232_v61 }
0x1d7f   : > { %v5006_v63 = vpop.f32.mrf.mxu1 }
0x1d80   : > { %v3286_v34 = vadd.f32 %v3284_v24, %v6174_v58 }
0x1d81   : > { %v3235_v5 = vpop.f32.mrf.mxu1  ;;  %v3278_v8 = vpop.f32.mrf.mxu0 }
0x1d82   : > { %v3288_v9 = vmul.f32 1.442695, %v3286_v34  ;;  %v3285_v28 = vmul.f32 0.25, %v3278_v8 }
0x1d83   : > { %v5007_v10 = vpop.f32.mrf.mxu1  ;;  %v5012_v12 = vpop.f32.mrf.mxu0 }
0x1d84   : > { %5311 = vpow2.f32 %v3288_v9  ;;  %v3287_v36 = vadd.f32 %v3285_v28, %v6174_v58 }
0x1d85   : > { %v3281_v29 = vpop.f32.mrf.mxu0 }
0x1d86   : > { %v3290_v16 = vmul.f32 1.442695, %v3287_v36 }
0x1d87   : > { %v5013_v50 = vpop.f32.mrf.mxu0 }
0x1d88   : > { %5313 = vpow2.f32 %v3290_v16 }
0x1d91   : > { %v5312_v17 = vpop.eup %5311 }
0x1d92   : > { %v3293_v62 = vsel %vm3292_vm15, %v5312_v17, 0.0 }
0x1d93   : > { %3294 = vadd.xlane.f32.xlu1 %v3293_v62 }
0x1d95   : > { %v5314_v54 = vpop.eup %5313 }
0x1d96   : > { %v3296_v13 = vsel %vm3292_vm15, %v5314_v54, 0.0 }
0x1d97   : > { %3297 = vadd.xlane.f32.xlu0 %v3296_v13 }
0x1e1c   : > { %v3295_v18 = vpop.xlane.xlu1 %3294 }
0x1e1d   : > { %5315 = vrcp.f32 %v3295_v18 }
0x1e20   : > { %v3298_v19 = vpop.xlane.xlu0 %3297 }
0x1e21   : > { %5317 = vrcp.f32 %v3298_v19 }
0x1e2a   : > { %v5316_v20 = vpop.eup %5315 }
0x1e2b   : > { %v3301_v22 = vmul.f32 %v5316_v20, %v5312_v17 }
0x1e2d   : > { %v3303_v31 = vpack.c.bf16 %v3301_v22, %v3301_v22 }
0x1e2e   : > { %v5318_v37 = vpop.eup %5317 }
0x1e2f   : > { %5017 = vmatmul.mubr.msk.bf16.vlgmr.msra.gmra.mxu1 %vm3292_vm15, %v3303_v31  ;;  %v3302_v0 = vmul.f32 %v5318_v37, %v5314_v54 }
0x1e30   : > { %5027 = vmatpush3.bf16.msra.mxu1 %v5287_v15  ;;  %5030 = vmatprep.mubr.msk.bf16.mxu1 %vm5358_vm11, %v5357_v4 }
0x1e31   : > { %v3304_v2 = vpack.c.bf16 %v3302_v0, %v3302_v0  ;;  %5028 = vmatprep.subr.bf16.mxu1 %v5357_v4 }
0x1e33   : > { %5023 = vmatmul.mubr.msk.bf16.vlgmr.msra.gmra.mxu0 %vm3292_vm15, %v3304_v2 }
0x1e34   : > { %5029 = vmatpush3.bf16.msra.mxu1 %v5288_v1  ;;  %5035 = vmatpush3.bf16.msra.mxu0 %v5289_v27 }
0x1e35   : > { %5036 = vmatprep.subr.bf16.mxu0 %v5357_v4  ;;  %5042 = vmatprep.subr.bf16.mxu1 %v5357_v4 }
0x1e36   : > { %5038 = vmatprep.mubr.msk.bf16.mxu0 %vm5358_vm11, %v5357_v4 }
0x1e37   : > { %5031 = vmatmul.mubr.msk.bf16.vlgmr.msra.gmra.mxu1 %vm2957_vm10, %v6121_v21 }
0x1e38   : > { %5037 = vmatpush3.bf16.msra.mxu0 %v5290_v30  ;;  %5043 = vmatpush3.bf16.msra.mxu1 %v5291_v3 }
0x1e39   : > { %5044 = vmatprep.subr.bf16.mxu1 %v5357_v4  ;;  %5046 = vmatprep.mubr.msk.bf16.mxu1 %vm5358_vm11, %v5357_v4 }
0x1e3a   : > { %5050 = vmatprep.subr.bf16.mxu0 %v5357_v4 }
0x1e3b   : > { %5039 = vmatmul.mubr.msk.bf16.vlgmr.msra.gmra.mxu0 %vm2957_vm10, %v6121_v21 }
0x1e3c   : > { %5045 = vmatpush3.bf16.msra.mxu1 %v5292_v32  ;;  %5052 = vmatprep.mubr.msk.bf16.mxu0 %vm5358_vm11, %v5357_v4 }
0x1e3d   : > { %5056 = vmatprep.subr.bf16.mxu1 %v5357_v4 }
0x1e3f   : > { %5047 = vmatmul.mubr.msk.bf16.vlgmr.msra.gmra.mxu1 %vm2957_vm10, %v6121_v21  ;;  %v4501_v21 = vld [vmem:[%s6383_s3 + $0x27] ss:$0 sm:$0xff] }
0x1e40   : > { %5058 = vmatprep.mubr.msk.bf16.mxu1 %vm5358_vm11, %v5357_v4 }
0x1eef   : > { %v6222_v6 = vpop.f32.mrf.mxu1 }
0x1ef1   : > { %v5018_v11 = vpop.f32.mrf.mxu1 }
0x1ef3   : > { %v3351_v7 = vpop.f32.mrf.mxu1  ;;  %v6224_v14 = vpop.f32.mrf.mxu0 }
0x1ef4   : > { %v3400_v60 = vpack.c.bf16 %v6224_v14, %v6222_v6 }
0x1ef5   : > { %v5019_v35 = vpop.f32.mrf.mxu1  ;;  %v5024_v53 = vpop.f32.mrf.mxu0 }
0x1ef7   : > { %v3397_v38 = vpop.f32.mrf.mxu0  ;;  %v3458_v39 = vpop.f32.mrf.mxu1 }
0x1ef8   : > { %v3459_v61 = vadd.f32 %v4497_v48, %v3458_v39  ;;  %v5293_v39 = vld [vmem:[%s6382_s2 + $0x160] sm:$0xff]  }
0x1ef9   : > { %v5025_v33 = vpop.f32.mrf.mxu0  ;;  %v5032_v42 = vpop.f32.mrf.mxu1 }
0x1efa   : > { %v3589_v28 = vpack.c.bf16 %v3459_v61, %v3459_v61  ;;  %v5294_v42 = vld [vmem:[%s6382_s2 + $0x198] sm:$0xff]  }
0x1efb   : > { %v3461_v46 = vpop.f32.mrf.mxu1  ;;  %v3520_v44 = vpop.f32.mrf.mxu0 }
0x1efc   : > { %v3521_v45 = vadd.f32 %v4501_v21, %v3520_v44  ;;  %v3462_v10 = vadd.f32 %v4497_v48, %v3461_v46 }
0x1efd   : > { %v5033_v47 = vpop.f32.mrf.mxu1  ;;  %v5040_v59 = vpop.f32.mrf.mxu0 }
0x1efe   : > { %v3591_v25 = vpack.c.bf16 %v3521_v45, %v3521_v45  ;;  %v3590_v29 = vpack.c.bf16 %v3462_v10, %v3462_v10 }
0x1eff   : > { %v3523_v49 = vpop.f32.mrf.mxu0  ;;  %v3582_v41 = vpop.f32.mrf.mxu1 }
0x1f00   : > { %v3597_v43 = vsel %vm3191_vm12, %v3591_v25, 0  ;;  %v3524_v51 = vadd.f32 %v4501_v21, %v3523_v49  ;;  %v3583_v52 = vadd.f32 %v4505_v23, %v3582_v41 }
0x1f01   : > { %v5041_v57 = vpop.f32.mrf.mxu0  ;;  %v5048_v26 = vpop.f32.mrf.mxu1  ;;  %5051 = vmatpush3.bf16.xpose.msra.mxu0 %v3597_v43  ;;  %v4517_v43 = vld [vmem:[%s6383_s3 + $0x29] ss:$0 sm:$0xff] }
0x1f02   : > { %v3592_v24 = vpack.c.bf16 %v3524_v51, %v3524_v51  ;;  %5062 = vmatprep.subr.bf16.mxu0 %v5357_v4  ;;  %v3705_v5 = vpack.c.bf16 %v3583_v52, %v3583_v52 }
0x1f03   : > { %v3585_v63 = vpop.f32.mrf.mxu1 }
0x1f04   : > { %v3643_v34 = vsel %vm3191_vm12, %v3592_v24, 0  ;;  %v3586_v8 = vadd.f32 %v4505_v23, %v3585_v63  ;;  %v3711_v12 = vsel %vm3310_vm13, %v3705_v5, 0 }
0x1f05   : > { %v5049_v9 = vpop.f32.mrf.mxu1  ;;  %5057 = vmatpush3.bf16.xpose.msra.mxu1 %v3643_v34 }
0x1f06   : > { %5068 = vmatprep.subr.bf16.mxu1 %v5357_v4  ;;  %v3706_v36 = vpack.c.bf16 %v3586_v8, %v3586_v8 }
0x1f08   : > { %5053 = vmatmul.mubr.msk.bf16.vlgmr.msra.gmra.mxu0 %vm3191_vm12, %v3589_v28  ;;  %v3757_v16 = vsel %vm3310_vm13, %v3706_v36, 0 }
0x1f09   : > { %5063 = vmatpush3.bf16.msra.mxu0 %v3711_v12  ;;  %5064 = vmatprep.mubr.msk.bf16.mxu0 %vm5358_vm11, %v5357_v4 }
0x1f0a   : > { %5074 = vmatprep.subr.bf16.mxu0 %v5357_v4 }
0x1f0c   : > { %5059 = vmatmul.mubr.msk.bf16.vlgmr.msra.gmra.mxu1 %vm3191_vm12, %v3590_v29 }
0x1f0d   : > { %5069 = vmatpush3.bf16.msra.mxu1 %v3757_v16  ;;  %5070 = vmatprep.mubr.msk.bf16.mxu1 %vm5358_vm11, %v5357_v4 }
0x1f0e   : > { %5080 = vmatprep.subr.bf16.mxu1 %v5357_v4 }
0x1fc8   : > { %v3633_v50 = vpop.f32.mrf.mxu0 }
0x1fc9   : > { %v3685_v17 = vmul.f32 0.25, %v3633_v50 }
0x1fca   : > { %v5054_v62 = vpop.f32.mrf.mxu0 }
0x1fcb   : > { %v3687_v54 = vadd.f32 %v3685_v17, %v6174_v58  ;;  %v5295_v62 = vld [vmem:[%s6382_s2 + $0x1a8] sm:$0xff]  }
0x1fcc   : > { %v3636_v13 = vpop.f32.mrf.mxu0  ;;  %v3679_v18 = vpop.f32.mrf.mxu1 }
0x1fcd   : > { %v3689_v19 = vmul.f32 1.442695, %v3687_v54  ;;  %v3686_v20 = vmul.f32 0.25, %v3679_v18  ;;  %v5296_v54 = vld [vmem:[%s6382_s2 + $0x1a0] sm:$0xff]  }
0x1fce   : > { %v5055_v22 = vpop.f32.mrf.mxu0  ;;  %v5060_v15 = vpop.f32.mrf.mxu1 }
0x1fcf   : > { %5319 = vpow2.f32 %v3689_v19  ;;  %v3688_v31 = vadd.f32 %v3686_v20, %v6174_v58 }
0x1fd0   : > { %v3682_v37 = vpop.f32.mrf.mxu1 }
0x1fd1   : > { %v3691_v0 = vmul.f32 1.442695, %v3688_v31 }
0x1fd2   : > { %v5061_v1 = vpop.f32.mrf.mxu1 }
0x1fd3   : > { %5321 = vpow2.f32 %v3691_v0  ;;  %v4518_v0 = vld [vmem:[%s6383_s3 + $0x2a] ss:$0 sm:$0xff] }
0x1fdc   : > { %v5320_v27 = vpop.eup %5319 }
0x1fdd   : > { %v3693_v2 = vsel %vm3292_vm15, %v5320_v27, 0.0 }
0x1fde   : > { %3694 = vadd.xlane.f32.xlu0 %v3693_v2 }
0x1fe0   : > { %v5322_v30 = vpop.eup %5321 }
0x1fe1   : > { %v3696_v3 = vsel %vm3292_vm15, %v5322_v30, 0.0 }
0x1fe2   : > { %3697 = vadd.xlane.f32.xlu1 %v3696_v3 }
0x2067   : > { %v3695_v32 = vpop.xlane.xlu0 %3694 }
0x2068   : > { %5323 = vrcp.f32 %v3695_v32 }
0x206b   : > { %v3698_v11 = vpop.xlane.xlu1 %3697 }
0x206c   : > { %5325 = vrcp.f32 %v3698_v11 }
0x2075   : > { %v5324_v7 = vpop.eup %5323 }
0x2076   : > { %v3701_v35 = vmul.f32 %v5324_v7, %v5320_v27 }
0x2078   : > { %v3703_v53 = vpack.c.bf16 %v3701_v35, %v3701_v35  ;;  %v5297_v35 = vld [vmem:[%s6382_s2 + $0x1e8] sm:$0xff]  }
0x2079   : > { %v5326_v58 = vpop.eup %5325 }
0x207a   : > { %5065 = vmatmul.mubr.msk.bf16.vlgmr.msra.gmra.mxu0 %vm3292_vm15, %v3703_v53  ;;  %v3702_v38 = vmul.f32 %v5326_v58, %v5322_v30  ;;  %v4519_v30 = vld [vmem:[%s6383_s3 + $0x2b] ss:$0 sm:$0xff]  ;;  %v5298_v53 = vld [vmem:[%s6382_s2 + $0x1e0] sm:$0xff]   ;;  %v5299_v58 = vld [vmem:[%s6382_s2 + $0x1d8] sm:$0xff]  }
0x207b   : > { %5076 = vmatprep.mubr.msk.bf16.mxu0 %vm5358_vm11, %v5357_v4  ;;  %5075 = vmatpush3.bf16.msra.mxu0 %v5294_v42  ;;  %v5303_v42 = vld [vmem:[%s6382_s2 + $0x1b8] sm:$0xff]  }
0x207c   : > { %v3704_v33 = vpack.c.bf16 %v3702_v38, %v3702_v38  ;;  %5086 = vmatprep.subr.bf16.mxu0 %v5357_v4  ;;  %v5300_v38 = vld [vmem:[%s6382_s2 + $0x1d0] sm:$0xff]  }
0x207e   : > { %5071 = vmatmul.mubr.msk.bf16.vlgmr.msra.gmra.mxu1 %vm3292_vm15, %v3704_v33  ;;  %v5302_v33 = vld [vmem:[%s6382_s2 + $0x1c0] sm:$0xff]  }
0x207f   : > { %5081 = vmatpush3.bf16.msra.mxu1 %v5293_v39  ;;  %5082 = vmatprep.mubr.msk.bf16.mxu1 %vm5358_vm11, %v5357_v4  ;;  %v5301_v39 = vld [vmem:[%s6382_s2 + $0x1c8] sm:$0xff]  }
0x2080   : > { %5094 = vmatprep.subr.bf16.mxu1 %v5357_v4 }
0x2086   : > { %5083 = vmatmul.mubr.msk.bf16.vlgmr.msra.gmra.mxu1 %vm3191_vm12, %v3400_v60 }
0x2087   : > { %5110 = vmatprep.mubr.msk.bf16.mxu1 %vm5358_vm11, %v5357_v4  ;;  %5095 = vmatpush3.bf16.msra.mxu1 %v5297_v35  ;;  %v4535_v35 = vld [vmem:[%s6383_s3 + $0x2e] ss:$0 sm:$0xff] }
0x2088   : > { %5096 = vmatprep.subr.bf16.mxu1 %v5357_v4 }
0x208b   : > { %5097 = vmatpush3.bf16.msra.mxu1 %v5298_v53 }
0x208c   : > { %5098 = vmatprep.subr.bf16.mxu1 %v5357_v4 }
0x208f   : > { %5099 = vmatpush3.bf16.msra.mxu1 %v5299_v58 }
0x2090   : > { %5100 = vmatprep.subr.bf16.mxu1 %v5357_v4 }
0x2093   : > { %5101 = vmatpush3.bf16.msra.mxu1 %v5300_v38 }
0x2094   : > { %5102 = vmatprep.subr.bf16.mxu1 %v5357_v4 }
0x2097   : > { %5103 = vmatpush3.bf16.msra.mxu1 %v5301_v39 }
0x2098   : > { %5104 = vmatprep.subr.bf16.mxu1 %v5357_v4 }
0x209b   : > { %5105 = vmatpush3.bf16.msra.mxu1 %v5302_v33 }
0x209c   : > { %5106 = vmatprep.subr.bf16.mxu1 %v5357_v4 }
0x209f   : > { %5107 = vmatpush3.bf16.msra.mxu1 %v5303_v42 }
0x20a0   : > { %5108 = vmatprep.subr.bf16.mxu1 %v5357_v4 }
0x213a   : > { %v3747_v21 = vpop.f32.mrf.mxu0 }
0x213c   : > { %v5066_v46 = vpop.f32.mrf.mxu0 }
0x213d   : > { %v4520_v46 = vld [vmem:[%s6383_s3 + $0x2c] ss:$0 sm:$0xff] }
0x213e   : > { %v3750_v44 = vpop.f32.mrf.mxu0  ;;  %v3793_v45 = vpop.f32.mrf.mxu1 }
0x213f   : > { %v3799_v47 = vpack.c.bf16 %v3793_v45, %v3747_v21  ;;  %v5304_v21 = vld [vmem:[%s6382_s2 + $0x1b0] sm:$0xff]  }
0x2140   : > { %v5067_v59 = vpop.f32.mrf.mxu0  ;;  %v5072_v23 = vpop.f32.mrf.mxu1  ;;  %5109 = vmatpush3.bf16.msra.mxu1 %v5304_v21 }
0x2141   : > { %5077 = vmatmul.mubr.msk.bf16.vlgmr.msra.gmra.mxu0 %vm3191_vm12, %v3799_v47 }
0x2142   : > { %v3796_v6 = vpop.f32.mrf.mxu1  ;;  %5090 = vmatprep.mubr.msk.bf16.mxu0 %vm5358_vm11, %v5357_v4  ;;  %5087 = vmatpush3.bf16.msra.mxu0 %v5295_v62 }
0x2143   : > { %5088 = vmatprep.subr.bf16.mxu0 %v5357_v4 }
0x2144   : > { %v5073_v14 = vpop.f32.mrf.mxu1 }
0x2146   : > { %v3895_v60 = vpop.f32.mrf.mxu1  ;;  %5089 = vmatpush3.bf16.msra.mxu0 %v5296_v54 }
0x2147   : > { %5114 = vmatprep.subr.bf16.mxu0 %v5357_v4 }
0x2148   : > { %v5084_v25 = vpop.f32.mrf.mxu1 }
0x214a   : > { %v3898_v48 = vpop.f32.mrf.mxu1 }
0x214c   : > { %v5085_v49 = vpop.f32.mrf.mxu1 }
0x2201   : > { %v3845_v41 = vpop.f32.mrf.mxu0 }
0x2202   : > { %v3896_v51 = vadd.f32 %v3895_v60, %v3845_v41 }
0x2203   : > { %v5078_v52 = vpop.f32.mrf.mxu0 }
0x2204   : > { %v3907_v57 = vadd.f32 %v4517_v43, %v3896_v51 }
0x2205   : > { %v3848_v26 = vpop.f32.mrf.mxu0 }
0x2206   : > { %v6282_v61 = vadd.f32 %v3907_v57, %v6086_v40  ;;  %v3899_v24 = vadd.f32 %v3898_v48, %v3848_v26 }
0x2207   : > { %v5079_v63 = vpop.f32.mrf.mxu0 }
0x2208   : > { %v3908_v34 = vadd.f32 %v4517_v43, %v3899_v24  ;;  %v3913_v5 = vsel %vm2957_vm10, %v6282_v61, 0.0 }
0x2209   : > { %3914 = vadd.xlane.f32.xlu0 %v3913_v5 }
0x220a   : > { %v6287_v8 = vadd.f32 %v3908_v34, %v6088_v55  ;;  %v4526_v34 = vld [vmem:[%s6383_s3 + $0x2d] ss:$0 sm:$0xff] }
0x220c   : > { %v3916_v9 = vsel %vm2957_vm10, %v6287_v8, 0.0 }
0x220d   : > { %3917 = vadd.xlane.f32.xlu1 %v3916_v9 }
0x2292   : > { %v3915_v28 = vpop.xlane.xlu0 %3914 }
0x2293   : > { %v3919_v10 = vmul.f32 0.03125, %v3915_v28 }
0x2295   : > { %v3921_v12 = vsub.f32 %v6282_v61, %v3919_v10 }
0x2296   : > { %v3918_v40 = vpop.xlane.xlu1 %3917 }
0x2297   : > { %v3920_v36 = vmul.f32 0.03125, %v3918_v40  ;;  %v3923_v29 = vmul.f32 %v3921_v12, %v3921_v12 }
0x2299   : > { %v3922_v16 = vsub.f32 %v6287_v8, %v3920_v36  ;;  %v3925_v50 = vsel %vm2957_vm10, %v3923_v29, 0.0 }
0x229a   : > { %3926 = vadd.xlane.f32.xlu0 %v3925_v50 }
0x229b   : > { %v3924_v17 = vmul.f32 %v3922_v16, %v3922_v16 }
0x229d   : > { %v3928_v55 = vsel %vm2957_vm10, %v3924_v17, 0.0 }
0x229e   : > { %3929 = vadd.xlane.f32.xlu1 %v3928_v55 }
0x2323   : > { %v3927_v13 = vpop.xlane.xlu0 %3926 }
0x2324   : > { %v3931_v18 = vmul.f32 0.03125, %v3927_v13 }
0x2326   : > { %v3933_v19 = vadd.f32 1e-05, %v3931_v18 }
0x2327   : > { %v3930_v20 = vpop.xlane.xlu1 %3929 }
0x2328   : > { %5327 = vrsqrt.f32 %v3933_v19  ;;  %v3932_v22 = vmul.f32 0.03125, %v3930_v20 }
0x232a   : > { %v3934_v15 = vadd.f32 1e-05, %v3932_v22 }
0x232c   : > { %5329 = vrsqrt.f32 %v3934_v15  ;;  %v4196_v15 = vsub.s32 1, %v6171_v56 }
0x2335   : > { %v5328_v31 = vpop.eup %5327 }
0x2336   : > { %v3937_v37 = vmul.f32 %v5328_v31, %v3921_v12  ;;  %v4186_v31 = vld [vmem:[%s6381_s1 + $0x10] sm:$0x3] }
0x2338   : > { %v3943_v2 = vmul.f32 %v4518_v0, %v3937_v37  ;;  %v4197_v37 = vrot.slane %v4186_v31, %v4196_v15 }
0x2339   : > { %v5330_v1 = vpop.eup %5329 }
0x233a   : > { %v3938_v27 = vmul.f32 %v5330_v1, %v3922_v16  ;;  %v3949_v32 = vadd.f32 %v4519_v30, %v3943_v2  ;;  %v5305_v1 = vld [vmem:[%s6382_s2 + $0x1f8] sm:$0xff]  }
0x233c   : > { %v3944_v3 = vmul.f32 %v4518_v0, %v3938_v27  ;;  %v5306_v27 = vld [vmem:[%s6382_s2 + $0x1f0] sm:$0xff]  }
0x233e   : > { %v3950_v11 = vadd.f32 %v4519_v30, %v3944_v3 }
0x2340   : > { %v3951_v7 = vpack.c.bf16 %v3950_v11, %v3949_v32 }
0x2342   : > { %5091 = vmatmul.mubr.msk.bf16.vlgmr.msra.gmra.mxu0 %vm2957_vm10, %v3951_v7 }
0x2343   : > { %5118 = vmatprep.mubr.msk.bf16.mxu0 %vm5358_vm11, %v5357_v4  ;;  %5115 = vmatpush3.bf16.msra.mxu0 %v5305_v1 }
0x2344   : > { %5116 = vmatprep.subr.bf16.mxu0 %v5357_v4  ;;  %v4536_v4 = vld [vmem:[%s6383_s3 + $0x2f] ss:$0 sm:$0xff] }
0x2347   : > { %5117 = vmatpush3.bf16.msra.mxu0 %v5306_v27 }
0x2402   : > { %v4010_v44 = vpop.f32.mrf.mxu0 }
0x2403   : > { %v4011_v45 = vadd.f32 %v4520_v46, %v4010_v44 }
0x2404   : > { %v5092_v47 = vpop.f32.mrf.mxu0 }
0x2405   : > { %v4524_v59 = vmul.f32 -1.702, %v4011_v45 }
0x2406   : > { %v4013_v23 = vpop.f32.mrf.mxu0 }
0x2407   : > { %v4021_v6 = vmul.f32 1.442695, %v4524_v59  ;;  %v4014_v14 = vadd.f32 %v4520_v46, %v4013_v23 }
0x2408   : > { %v5093_v60 = vpop.f32.mrf.mxu0 }
0x2409   : > { %5331 = vpow2.f32 %v4021_v6  ;;  %v4525_v25 = vmul.f32 -1.702, %v4014_v14 }
0x240b   : > { %v4023_v48 = vmul.f32 1.442695, %v4525_v25 }
0x240d   : > { %5333 = vpow2.f32 %v4023_v48 }
0x2416   : > { %v5332_v49 = vpop.eup %5331 }
0x2417   : > { %v4025_v41 = vadd.f32 1.0, %v5332_v49 }
0x2419   : > { %5335 = vrcp.f32 %v4025_v41 }
0x241a   : > { %v5334_v43 = vpop.eup %5333 }
0x241b   : > { %v4026_v51 = vadd.f32 1.0, %v5334_v43 }
0x241d   : > { %5337 = vrcp.f32 %v4026_v51 }
0x2426   : > { %v5336_v52 = vpop.eup %5335 }
0x2427   : > { %v4031_v26 = vmul.f32 %v5336_v52, %v4011_v45 }
0x242a   : > { %v5338_v57 = vpop.eup %5337 }
0x242b   : > { %v4032_v24 = vmul.f32 %v5338_v57, %v4014_v14 }
0x242d   : > { %v4033_v63 = vpack.c.bf16 %v4032_v24, %v4031_v26 }
0x242f   : > { %5111 = vmatmul.mubr.bf16.vlgmr.msra.gmra.mxu1 %v4033_v63 }
0x24ef   : > { %v4137_v5 = vpop.f32.mrf.mxu1 }
0x24f0   : > { %v4138_v9 = vadd.f32 %v4526_v34, %v4137_v5 }
0x24f1   : > { %v5112_v28 = vpop.f32.mrf.mxu1 }
0x24f2   : > { %v4144_v10 = vadd.f32 %v4138_v9, %v6282_v61 }
0x24f3   : > { %v4140_v12 = vpop.f32.mrf.mxu1 }
0x24f4   : > { %v4141_v40 = vadd.f32 %v4526_v34, %v4140_v12  ;;  %v4148_v36 = vsel %vm2957_vm10, %v4144_v10, 0.0 }
0x24f5   : > { %4149 = vadd.xlane.f32.xlu0 %v4148_v36  ;;  %v5113_v29 = vpop.f32.mrf.mxu1 }
0x24f6   : > { %v4145_v16 = vadd.f32 %v4141_v40, %v6287_v8  ;;  %v4189_v8 = vsub.s32 0, %v6171_v56 }
0x24f8   : > { %v4151_v50 = vsel %vm2957_vm10, %v4145_v16, 0.0  ;;  %v4190_v0 = vrot.slane %v4186_v31, %v4189_v8 }
0x24f9   : > { %4152 = vadd.xlane.f32.xlu1 %v4151_v50 }
0x257e   : > { %v4150_v17 = vpop.xlane.xlu0 %4149 }
0x257f   : > { %v4154_v55 = vmul.f32 0.03125, %v4150_v17 }
0x2581   : > { %v4156_v62 = vsub.f32 %v4144_v10, %v4154_v55 }
0x2582   : > { %v4153_v54 = vpop.xlane.xlu1 %4152 }
0x2583   : > { %v4155_v13 = vmul.f32 0.03125, %v4153_v54  ;;  %v4158_v18 = vmul.f32 %v4156_v62, %v4156_v62 }
0x2585   : > { %v4157_v19 = vsub.f32 %v4145_v16, %v4155_v13  ;;  %v4160_v61 = vsel %vm2957_vm10, %v4158_v18, 0.0 }
0x2586   : > { %4161 = vadd.xlane.f32.xlu0 %v4160_v61 }
0x2587   : > { %v4159_v20 = vmul.f32 %v4157_v19, %v4157_v19 }
0x2589   : > { %v4163_v22 = vsel %vm2957_vm10, %v4159_v20, 0.0 }
0x258a   : > { %4164 = vadd.xlane.f32.xlu1 %v4163_v22 }
0x259b   : > { %4199 = vbcast.lane.b32.xlu1 %v4197_v37, 256 }
0x259c   : > { %4192 = vbcast.lane.b32.xlu0 %v4190_v0, 256 }
0x260f   : > { %v4162_v56 = vpop.xlane.xlu0 %4161 }
0x2610   : > { %v4166_v2 = vmul.f32 0.03125, %v4162_v56 }
0x2612   : > { %v4168_v30 = vadd.f32 1e-05, %v4166_v2 }
0x2613   : > { %v4165_v3 = vpop.xlane.xlu1 %4164  ;;  %v4193_v39 = vpop.permute.xlu0 %4192 }
0x2614   : > { %5339 = vrsqrt.f32 %v4168_v30  ;;  %v4167_v32 = vmul.f32 0.03125, %v4165_v3 }
0x2616   : > { %v4169_v11 = vadd.f32 1e-05, %v4167_v32 }
0x2617   : > { %v4200_v44 = vpop.permute.xlu1 %4199 }
0x2618   : > { %5341 = vrsqrt.f32 %v4169_v11 }
0x2621   : > { %v5340_v7 = vpop.eup %5339 }
0x2622   : > { %v4172_v53 = vmul.f32 %v5340_v7, %v4156_v62 }
0x2624   : > { %v4178_v58 = vmul.f32 %v4535_v35, %v4172_v53 }
0x2625   : > { %v5342_v38 = vpop.eup %5341 }
0x2626   : > { %v4184_v33 = vadd.f32 %v4536_v4, %v4178_v58  ;;  %v4173_v42 = vmul.f32 %v5342_v38, %v4157_v19 }
0x2628   : > { %v4201_v21 = vmul.f32 %v4193_v39, %v4184_v33  ;;  %v4179_v46 = vmul.f32 %v4535_v35, %v4173_v42 }
0x262a   : > { %v4203_v45 = vsel %vm2957_vm10, %v4201_v21, 0.0  ;;  %v4185_v47 = vadd.f32 %v4536_v4, %v4179_v46 }
0x262b   : > { %v4204_v59 = vrot.slane %v4203_v45, 4 }
0x262c   : > { %v4202_v23 = vmul.f32 %v4200_v44, %v4185_v47 }
0x262d   : > { %v4205_v6 = vadd.f32 %v4204_v59, %v4203_v45 }
0x262e   : > { %v4210_v14 = vsel %vm2957_vm10, %v4202_v23, 0.0 }
0x262f   : > { %v4206_v60 = vrot.slane %v4205_v6, 2  ;;  %v4211_v25 = vrot.slane %v4210_v14, 4 }
0x2631   : > { %v4207_v48 = vadd.f32 %v4206_v60, %v4205_v6  ;;  %v4212_v49 = vadd.f32 %v4211_v25, %v4210_v14 }
0x2633   : > { %v4208_v41 = vrot.slane %v4207_v48, 1  ;;  %v4213_v43 = vrot.slane %v4212_v49, 2 }
0x2635   : > { %v4209_v51 = vadd.f32 %v4208_v41, %v4207_v48  ;;  %v4214_v52 = vadd.f32 %v4213_v43, %v4212_v49 }
0x2637   : > { %v4215_v57 = vrot.slane %v4214_v52, 1  ;;  %v4217_v26 = vpack.c.bf16 %v4209_v51, %v4209_v51 }
0x2639   : > { %v4216_v24 = vadd.f32 %v4215_v57, %v4214_v52  ;;  %v4225_v34 = vunpack.c.l.b16 %v4217_v26 }
0x263b   : > { %v4218_v63 = vpack.c.bf16 %v4216_v24, %v4216_v24 }
0x263d   : > { %v4226_v5 = vunpack.c.l.b16 %v4218_v63 }
0x263f   : > { %v4228_v9 = vsel %vm4227_vm0, %v4226_v5, %v4225_v34 }
0x2640   : > { %v4229_v28 = vpack.c.b16 %v4228_v9, %v4228_v9 }
0x2642   : > { %5119 = vmatmul.mubr.msk.bf16.vlgmr.msra.gmra.mxu0 %vm2957_vm10, %v4229_v28 }
0x2702   : > { %v4279_v10 = vpop.f32.mrf.mxu0 }
0x2703   : > { %v4285_v12 = vmul.f32 %v4279_v10, %v4279_v10 }
0x2704   : > { %v5120_v40 = vpop.f32.mrf.mxu0 }
0x2705   : > { %v4287_v36 = vsel %vm4286_vm1, %v4285_v12, 0.0 }
0x2706   : > { %4288 = vadd.xlane.f32.xlu1 %v4287_v36  ;;  %v4282_v29 = vpop.f32.mrf.mxu0 }
0x2708   : > { %v5121_v16 = vpop.f32.mrf.mxu0 }
0x278f   : > { %v4289_v50 = vpop.xlane.xlu1 %4288 }
0x2790   : > { %v4290_v17 = vmax.f32 %v4289_v50, 1e-24 }
0x2792   : > { %5343 = vrsqrt.f32 %v4290_v17 }
0x279f   : > { %v5344_v55 = vpop.eup %5343 }
0x27a0   : > { %v4292_v62 = vmul.f32 %v5344_v55, %v4279_v10 }
0x27a2   : > { %4293 = vst [vmem:[%s5400_s21] sm:$0x3] %v4292_v62 }
0x27a3 PF: > { %s14_s15 = sadd.s32 1, %s5351_s15  }
0x27a4   : > { %p11_p6 = scmp.ge.s32.totalorder %s14_s15, 4  }
0x27a6   :  { %13 = sbr.rel (!%p11_p6) target bundleno = 1 (0x1), region = 71 }

</bundles_post_ra>
